<compile_context>
chip_gen: v7x
topology: tpu7x:2x2x1
jax: 0.10.0
libtpu: 0.0.40
codegen_flags: <defaults>
</compile_context>

<pallas_src>
import functools

import jax
import jax.numpy as jnp
import numpy as np
from jax.experimental import pallas as pl
from jax.experimental.pallas import tpu as pltpu


# ----------------------------- kernel ---------------------------------------


def _cross_win_attention_kernel(
    q_ref, k_ref, v_ref, skip_ref,
    ln_g_ref, ln_b_ref, w_qkv_ref, b_qkv_ref, wp_ref, bp_ref,
    o_ref,
    *, heads, dim_head, scale):
    # q_ref: (n, LB, W1W2, d) bf16   k_ref/v_ref: (n, LB, w1w2, d) bf16
    # skip_ref/o_ref: (LB*W1W2, d) bf16
    n, lb, wq_tok, dim = q_ref.shape
    wk_tok = k_ref.shape[2]
    nq = n * wq_tok                  # query tokens per window
    nk = n * wk_tok                  # key tokens per window
    hd = heads * dim_head
    rows_q = n * lb * wq_tok
    rows_k = n * lb * wk_tok

    def project(ref, rows, idx):
        # Row-wise LayerNorm + Linear on the *natural* row order (no transpose):
        # LayerNorm/bias math in f32 (v5e-friendly), bf16 operands into the MXU,
        # f32 accumulation.
        x = ref[...].reshape(rows, dim).astype(jnp.float32)
        mu = jnp.mean(x, axis=-1, keepdims=True)
        var = jnp.mean(jnp.square(x - mu), axis=-1, keepdims=True)
        xn = (x - mu) * jax.lax.rsqrt(var + 1e-5) * ln_g_ref[idx] + ln_b_ref[idx]
        return jnp.dot(xn.astype(jnp.bfloat16), w_qkv_ref[idx],
                       preferred_element_type=jnp.float32) + b_qkv_ref[idx]

    # attention scale folded into q once, then a single bf16 cast per projection.
    qp = (project(q_ref, rows_q, 0) * scale).astype(jnp.bfloat16)   # (rows_q, hd)
    kp = project(k_ref, rows_k, 1).astype(jnp.bfloat16)             # (rows_k, hd)
    vp = project(v_ref, rows_k, 2).astype(jnp.bfloat16)

    def window_major(x, tok):
        # (n*lb*tok, hd) -> (lb, n*tok, hd): major-dims-only transpose on the
        # *projected bf16* data (half the bytes of the old f32 input transpose).
        xw = jnp.transpose(x.reshape(n, lb, tok, hd), (1, 0, 2, 3))
        return xw.reshape(lb, n * tok, hd)

    qw = window_major(qp, wq_tok)    # (lb, nq, hd)
    kw = window_major(kp, wk_tok)    # (lb, nk, hd)
    vw = window_major(vp, wk_tok)    # (lb, nk, hd)

    def head_batched(x):
        # (lb, tok, heads*dh) -> (heads*lb, tok, dh): heads folded into the
        # leading batch dim once (static 32-lane-aligned slices, bf16).
        return jnp.concatenate(
            [x[:, :, h * dim_head:(h + 1) * dim_head] for h in range(heads)],
            axis=0)

    qh = head_batched(qw)            # (heads*lb, nq, dh)
    kh = head_batched(kw)            # (heads*lb, nk, dh)
    vh = head_batched(vw)            # (heads*lb, nk, dh)

    # one batched QK^T for all (window, head) pairs
    s = jnp.einsum('bqd,bkd->bqk', qh, kh,
                   preferred_element_type=jnp.float32)   # (heads*lb, nq, nk) f32
    s = s - jnp.max(s, axis=-1, keepdims=True)
    e = jnp.exp(s)
    p = e * pl.reciprocal(jnp.sum(e, axis=-1, keepdims=True), approx=True)

    # the module's mean over camera views acts on the query-view axis of the
    # attention output; it commutes with the (linear) P*V and wp maps, so sum
    # the probabilities over the query-view axis first (shrinks P*V by n).
    p_sum = jnp.sum(p.reshape(heads * lb, n, wq_tok, nk), axis=1)   # f32
    a = jnp.einsum('bqk,bkd->bqd', p_sum.astype(jnp.bfloat16), vh,
                   preferred_element_type=jnp.float32)   # (heads*lb, wq_tok, dh)

    # reassemble heads on the lane axis -> one K=hd output-projection matmul.
    a_cat = jnp.concatenate(
        [a[h * lb:(h + 1) * lb] for h in range(heads)], axis=-1)    # (lb, wq_tok, hd)
    a2 = a_cat.reshape(lb * wq_tok, hd).astype(jnp.bfloat16)

    z = jnp.dot(a2, wp_ref[...], preferred_element_type=jnp.float32)
    z = z * (1.0 / n) + bp_ref[...]
    o_ref[...] = (z + skip_ref[...].astype(jnp.float32)).astype(o_ref.dtype)


# ----------------------------- wrapper ---------------------------------------


def _per_window_vmem_bytes(n, W1W2, w1w2, d, HD, heads, dim_head):
    """Generous flat-sum per-window VMEM estimate (I/O tiles + intermediates)."""
    f32, bf16 = 4, 2
    nq, nk = n * W1W2, n * w1w2
    rows = nq + 2 * nk
    io = 2 * bf16 * (nq * d + 2 * nk * d + 2 * W1W2 * d)          # dbl-buffered tiles
    proj = rows * d * f32 + rows * HD * (f32 + bf16)              # LN rows + proj (f32+bf16)
    rearr = 2 * rows * HD * bf16                                  # window-major + head-batched copies
    attn = (heads * nq * nk * 3 * f32                             # s, e, p
            + heads * W1W2 * nk * (f32 + bf16)                    # p_sum (+bf16 cast)
            + heads * W1W2 * dim_head * f32)                      # PV output
    outp = W1W2 * HD * (f32 + bf16) + W1W2 * d * f32              # reassembly + z
    return io + proj + rearr + attn + outp


def cross_win_attention(q, k, v, skip, params, *, heads, dim_head,
                        l_block=None, vmem_budget_bytes=16 * 2**20,
                        min_grid_steps=4):
    b, n, X, Y, W1, W2, d = q.shape
    _, _, x, y, w1, w2, _ = k.shape
    assert k.shape == v.shape
    assert X * Y == x * y
    L = X * Y
    W1W2 = W1 * W2
    w1w2 = w1 * w2
    HD = heads * dim_head
    scale = dim_head ** (-0.5)

    # bf16 HBM I/O; only free row-major reshapes (no host-side transposes).
    q3 = q.reshape(b, n, L, W1W2, d).astype(jnp.bfloat16)
    k3 = k.reshape(b, n, L, w1w2, d).astype(jnp.bfloat16)
    v3 = v.reshape(b, n, L, w1w2, d).astype(jnp.bfloat16)
    skip2 = skip.reshape(b, L * W1W2, d).astype(jnp.bfloat16)

    per_win = _per_window_vmem_bytes(n, W1W2, w1w2, d, HD, heads, dim_head)

    if l_block is None:
        divisors = [c for c in range(1, L + 1) if L % c == 0]
        fitting = [c for c in divisors if c * per_win <= vmem_budget_bytes] or [1]
        l_block = fitting[-1]
        # megacore / load-balance guard (v7x shards "parallel" axes over 2 TCs):
        # keep at least `min_grid_steps` grid steps when a smaller tile exists.
        while b * (L // l_block) < min_grid_steps and l_block > 1:
            smaller = [c for c in fitting if c < l_block]
            if not smaller:
                break
            l_block = smaller[-1]
    assert L % l_block == 0
    num_lb = L // l_block
    lbW = l_block * W1W2

    # explicit scoped-VMEM limit derived from the (intermediate-inclusive) estimate
    vmem_limit = int(min(max(2 * l_block * per_win, 32 * 2**20), 56 * 2**20))

    # Packed parameters: fewer pipeline-managed inputs, bf16 weights for the MXU.
    ln_g = jnp.stack([params["gq"], params["gk"], params["gv"]]).astype(jnp.float32)   # (3,1,d)
    ln_b = jnp.stack([params["bgq"], params["bgk"], params["bgv"]]).astype(jnp.float32)
    w_qkv = jnp.stack([params["wq"], params["wk"], params["wv"]]).astype(jnp.bfloat16)  # (3,d,HD)
    b_qkv = jnp.stack([params["bq"], params["bk"], params["bv"]]).astype(jnp.float32)   # (3,1,HD)
    wp = params["wp"].astype(jnp.bfloat16)                                              # (HD,d)
    bp = params["bp"].astype(jnp.float32)                                               # (1,d)

    kernel = functools.partial(_cross_win_attention_kernel,
                               heads=heads, dim_head=dim_head, scale=scale)

    in_specs = [
        pl.BlockSpec((None, n, l_block, W1W2, d), lambda bi, li: (bi, 0, li, 0, 0)),  # q
        pl.BlockSpec((None, n, l_block, w1w2, d), lambda bi, li: (bi, 0, li, 0, 0)),  # k
        pl.BlockSpec((None, n, l_block, w1w2, d), lambda bi, li: (bi, 0, li, 0, 0)),  # v
        pl.BlockSpec((None, lbW, d), lambda bi, li: (bi, li, 0)),                      # skip
        pl.BlockSpec((3, 1, d), lambda bi, li: (0, 0, 0)),                             # ln gamma
        pl.BlockSpec((3, 1, d), lambda bi, li: (0, 0, 0)),                             # ln beta
        pl.BlockSpec((3, d, HD), lambda bi, li: (0, 0, 0)),                            # wq/wk/wv
        pl.BlockSpec((3, 1, HD), lambda bi, li: (0, 0, 0)),                            # bq/bk/bv
        pl.BlockSpec((HD, d), lambda bi, li: (0, 0)),                                  # wp
        pl.BlockSpec((1, d), lambda bi, li: (0, 0)),                                   # bp
    ]

    out = pl.pallas_call(
        kernel,
        grid=(b, num_lb),
        in_specs=in_specs,
        out_specs=pl.BlockSpec((None, lbW, d), lambda bi, li: (bi, li, 0)),
        out_shape=jax.ShapeDtypeStruct((b, L * W1W2, d), jnp.bfloat16),
        input_output_aliases={3: 0},     # skip buffer reused for the output
        compiler_params=pltpu.CompilerParams(
            dimension_semantics=("parallel", "parallel"),
            vmem_limit_bytes=vmem_limit),
    )(q3, k3, v3, skip2, ln_g, ln_b, w_qkv, b_qkv, wp, bp)

    # free reshape back: rows are ordered ((x,y), (w1,w2)) -> b X Y W1 W2 d
    return out.reshape(b, X, Y, W1, W2, d)


# ----------------------------- pure-JAX reference ----------------------------


def cross_win_attention_ref(q, k, v, skip, p, *, heads, dim_head):
    b, n, X, Y, W1, W2, d = q.shape
    L, Q, K, dim = X * Y, n * W1 * W2, n * k.shape[4] * k.shape[5], d
    scale = dim_head ** (-0.5)

    def ln(x, g, bta):
        mu = x.mean(-1, keepdims=True)
        var = ((x - mu) ** 2).mean(-1, keepdims=True)
        return (x - mu) / jnp.sqrt(var + 1e-5) * g + bta

    q4 = q.transpose(0, 2, 3, 1, 4, 5, 6).reshape(b, L, Q, dim)
    k4 = k.transpose(0, 2, 3, 1, 4, 5, 6).reshape(b, L, K, dim)
    v4 = v.transpose(0, 2, 3, 1, 4, 5, 6).reshape(b, L, K, dim)

    qp = ln(q4, p["gq"], p["bgq"]) @ p["wq"] + p["bq"]
    kp = ln(k4, p["gk"], p["bgk"]) @ p["wk"] + p["bk"]
    vp = ln(v4, p["gv"], p["bgv"]) @ p["wv"] + p["bv"]

    def split(xx):  # (b, L, T, heads*dh) -> (b, heads, L, T, dh)
        return xx.reshape(b, L, -1, heads, dim_head).transpose(0, 3, 1, 2, 4)

    qh, kh, vh = split(qp), split(kp), split(vp)
    dot = scale * jnp.einsum("bhlqd,bhlkd->bhlqk", qh, kh)
    att = jax.nn.softmax(dot, axis=-1)
    a = jnp.einsum("bhlqk,bhlkd->bhlqd", att, vh)
    a = a.transpose(0, 2, 3, 1, 4).reshape(b, L, Q, heads * dim_head)
    z = a @ p["wp"] + p["bp"]
    z = z.reshape(b, L, n, W1 * W2, dim).mean(axis=2)
    return z.reshape(b, X, Y, W1, W2, dim) + skip


# ----------------------------- main ------------------------------------------


if __name__ == "__main__":
    # production-style hyper-params (lane-dense: dim = heads*dim_head = 128)
    dim, heads, dim_head = 128, 4, 32
    HD = heads * dim_head
    # b batches, n camera views, X*Y query windows of W1*W2 tokens,
    # x*y kv windows of w1*w2 tokens (X*Y must equal x*y, as in the module).
    b, n = 2, 2
    X, Y, W1, W2 = 2, 2, 4, 4
    x_, y_, w1, w2 = 2, 2, 4, 4

    key = jax.random.PRNGKey(0)
    ks = jax.random.split(key, 18)

    params = {
        "gq": 1.0 + 0.1 * jax.random.normal(ks[0], (1, dim), jnp.float32),
        "bgq": 0.05 * jax.random.normal(ks[1], (1, dim), jnp.float32),
        "wq": 0.05 * jax.random.normal(ks[2], (dim, HD), jnp.float32),
        "bq": 0.01 * jax.random.normal(ks[3], (1, HD), jnp.float32),
        "gk": 1.0 + 0.1 * jax.random.normal(ks[4], (1, dim), jnp.float32),
        "bgk": 0.05 * jax.random.normal(ks[5], (1, dim), jnp.float32),
        "wk": 0.05 * jax.random.normal(ks[6], (dim, HD), jnp.float32),
        "bk": 0.01 * jax.random.normal(ks[7], (1, HD), jnp.float32),
        "gv": 1.0 + 0.1 * jax.random.normal(ks[8], (1, dim), jnp.float32),
        "bgv": 0.05 * jax.random.normal(ks[9], (1, dim), jnp.float32),
        "wv": 0.05 * jax.random.normal(ks[10], (dim, HD), jnp.float32),
        "bv": 0.01 * jax.random.normal(ks[11], (1, HD), jnp.float32),
        "wp": 0.05 * jax.random.normal(ks[12], (HD, dim), jnp.float32),
        "bp": 0.01 * jax.random.normal(ks[13], (1, dim), jnp.float32),
    }

    q = jax.random.normal(ks[14], (b, n, X, Y, W1, W2, dim), jnp.float32)
    k = jax.random.normal(ks[15], (b, n, x_, y_, w1, w2, dim), jnp.float32)
    v = jax.random.normal(ks[16], (b, n, x_, y_, w1, w2, dim), jnp.float32)
    skip = jax.random.normal(ks[17], (b, X, Y, W1, W2, dim), jnp.float32)

    # bf16 HBM I/O: round once, and feed the same rounded values to both the
    # kernel and the f32 reference so the tolerance only covers kernel math.
    q_bf = q.astype(jnp.bfloat16)
    k_bf = k.astype(jnp.bfloat16)
    v_bf = v.astype(jnp.bfloat16)
    skip_bf = skip.astype(jnp.bfloat16)

    out = cross_win_attention(q_bf, k_bf, v_bf, skip_bf, params,
                              heads=heads, dim_head=dim_head)
    out = jax.block_until_ready(out)

    ref = cross_win_attention_ref(q_bf.astype(jnp.float32), k_bf.astype(jnp.float32),
                                  v_bf.astype(jnp.float32), skip_bf.astype(jnp.float32),
                                  params, heads=heads, dim_head=dim_head)
    ref = jax.block_until_ready(ref)

    # bf16 MXU operands / bf16 output with f32 accumulation -> relaxed tolerance
    np.testing.assert_allclose(np.asarray(out, dtype=np.float32), np.asarray(ref),
                               rtol=3e-2, atol=3e-2)
    print("KERNEL_OK")
</pallas_src>

<mosaic_0001>
module attributes {stable_mosaic.version = 11 : i64} {
  func.func @_cross_win_attention_kernel(%arg0: i32, %arg1: i32, %arg2: memref<1x2x2x16x128xbf16, #tpu.memory_space<vmem>>, %arg3: memref<1x2x2x16x128xbf16, #tpu.memory_space<vmem>>, %arg4: memref<1x2x2x16x128xbf16, #tpu.memory_space<vmem>>, %arg5: memref<1x32x128xbf16, #tpu.memory_space<vmem>>, %arg6: memref<3x1x128xf32, #tpu.memory_space<vmem>>, %arg7: memref<3x1x128xf32, #tpu.memory_space<vmem>>, %arg8: memref<3x128x128xbf16, #tpu.memory_space<vmem>>, %arg9: memref<3x1x128xf32, #tpu.memory_space<vmem>>, %arg10: memref<128x128xbf16, #tpu.memory_space<vmem>>, %arg11: memref<1x128xf32, #tpu.memory_space<vmem>>, %arg12: memref<1x32x128xbf16, #tpu.memory_space<vmem>>) attributes {dimension_semantics = [#tpu.dimension_semantics<parallel>, #tpu.dimension_semantics<parallel>], iteration_bounds = array<i64: 2, 2>, scalar_prefetch = 0 : i64, scratch_operands = 0 : i64, tpu.core_type = #tpu.core_type<tc>, window_params = [{transform_indices = @transform_0, window_bounds = array<i64: 1, 2, 2, 16, 128>}, {transform_indices = @transform_1, window_bounds = array<i64: 1, 2, 2, 16, 128>}, {transform_indices = @transform_2, window_bounds = array<i64: 1, 2, 2, 16, 128>}, {transform_indices = @transform_3, window_bounds = array<i64: 1, 32, 128>}, {pipeline_mode = #tpu.pipeline_mode<synchronous>, transform_indices = @transform_4, window_bounds = array<i64: 3, 1, 128>}, {pipeline_mode = #tpu.pipeline_mode<synchronous>, transform_indices = @transform_5, window_bounds = array<i64: 3, 1, 128>}, {pipeline_mode = #tpu.pipeline_mode<synchronous>, transform_indices = @transform_6, window_bounds = array<i64: 3, 128, 128>}, {pipeline_mode = #tpu.pipeline_mode<synchronous>, transform_indices = @transform_7, window_bounds = array<i64: 3, 1, 128>}, {pipeline_mode = #tpu.pipeline_mode<synchronous>, transform_indices = @transform_8, window_bounds = array<i64: 128, 128>}, {pipeline_mode = #tpu.pipeline_mode<synchronous>, transform_indices = @transform_9, window_bounds = array<i64: 1, 128>}, {transform_indices = @transform_10, window_bounds = array<i64: 1, 32, 128>}]} {
    %c0 = arith.constant 0 : index
    %c0_0 = arith.constant 0 : index
    %c0_1 = arith.constant 0 : index
    %c0_2 = arith.constant 0 : index
    %c0_3 = arith.constant 0 : index
    %0 = vector.load %arg2[%c0, %c0_0, %c0_1, %c0_2, %c0_3] : memref<1x2x2x16x128xbf16, #tpu.memory_space<vmem>>, vector<1x2x2x16x128xbf16>
    %1 = vector.shape_cast %0 : vector<1x2x2x16x128xbf16> to vector<2x2x16x128xbf16>
    %2 = vector.shape_cast %1 : vector<2x2x16x128xbf16> to vector<64x128xbf16>
    %3 = arith.extf %2 : vector<64x128xbf16> to vector<64x128xf32>
    %cst = arith.constant dense<0.000000e+00> : vector<64xf32>
    %4 = vector.multi_reduction <add>, %3, %cst [1] : vector<64x128xf32> to vector<64xf32>
    %5 = vector.shape_cast %4 : vector<64xf32> to vector<64x1xf32>
    %cst_4 = arith.constant 1.280000e+02 : f32
    %6 = vector.broadcast %cst_4 : f32 to vector<64x1xf32>
    %7 = arith.divf %5, %6 : vector<64x1xf32>
    %8 = vector.broadcast %7 : vector<64x1xf32> to vector<64x128xf32>
    %9 = arith.subf %3, %8 : vector<64x128xf32>
    %10 = arith.mulf %9, %9 : vector<64x128xf32>
    %cst_5 = arith.constant dense<0.000000e+00> : vector<64xf32>
    %11 = vector.multi_reduction <add>, %10, %cst_5 [1] : vector<64x128xf32> to vector<64xf32>
    %12 = vector.shape_cast %11 : vector<64xf32> to vector<64x1xf32>
    %cst_6 = arith.constant 1.280000e+02 : f32
    %13 = vector.broadcast %cst_6 : f32 to vector<64x1xf32>
    %14 = arith.divf %12, %13 : vector<64x1xf32>
    %15 = vector.broadcast %7 : vector<64x1xf32> to vector<64x128xf32>
    %16 = arith.subf %3, %15 : vector<64x128xf32>
    %cst_7 = arith.constant 9.99999974E-6 : f32
    %17 = vector.broadcast %cst_7 : f32 to vector<64x1xf32>
    %18 = arith.addf %14, %17 : vector<64x1xf32>
    %19 = math.rsqrt %18 : vector<64x1xf32>
    %20 = vector.broadcast %19 : vector<64x1xf32> to vector<64x128xf32>
    %21 = arith.mulf %16, %20 : vector<64x128xf32>
    %c0_8 = arith.constant 0 : index
    %c0_9 = arith.constant 0 : index
    %c0_10 = arith.constant 0 : index
    %22 = vector.load %arg6[%c0_8, %c0_9, %c0_10] : memref<3x1x128xf32, #tpu.memory_space<vmem>>, vector<1x1x128xf32>
    %23 = vector.shape_cast %22 : vector<1x1x128xf32> to vector<1x128xf32>
    %24 = vector.broadcast %23 : vector<1x128xf32> to vector<64x128xf32>
    %25 = arith.mulf %21, %24 : vector<64x128xf32>
    %c0_11 = arith.constant 0 : index
    %c0_12 = arith.constant 0 : index
    %c0_13 = arith.constant 0 : index
    %26 = vector.load %arg7[%c0_11, %c0_12, %c0_13] : memref<3x1x128xf32, #tpu.memory_space<vmem>>, vector<1x1x128xf32>
    %27 = vector.shape_cast %26 : vector<1x1x128xf32> to vector<1x128xf32>
    %28 = vector.broadcast %27 : vector<1x128xf32> to vector<64x128xf32>
    %29 = arith.addf %25, %28 : vector<64x128xf32>
    %30 = arith.truncf %29 : vector<64x128xf32> to vector<64x128xbf16>
    %c0_14 = arith.constant 0 : index
    %c0_15 = arith.constant 0 : index
    %c0_16 = arith.constant 0 : index
    %31 = vector.load %arg8[%c0_14, %c0_15, %c0_16] : memref<3x128x128xbf16, #tpu.memory_space<vmem>>, vector<1x128x128xbf16>
    %32 = vector.shape_cast %31 : vector<1x128x128xbf16> to vector<128x128xbf16>
    %cst_17 = arith.constant dense<0.000000e+00> : vector<64x128xf32>
    %33 = tpu.matmul %30, %32, %cst_17 {dimension_numbers = #tpu.dot_dimension_numbers<[1], [0], [0], [1], [0, 0, 1, 1], [], []>} : vector<64x128xbf16>, vector<128x128xbf16>, vector<64x128xf32> -> vector<64x128xf32>
    %c0_18 = arith.constant 0 : index
    %c0_19 = arith.constant 0 : index
    %c0_20 = arith.constant 0 : index
    %34 = vector.load %arg9[%c0_18, %c0_19, %c0_20] : memref<3x1x128xf32, #tpu.memory_space<vmem>>, vector<1x1x128xf32>
    %35 = vector.shape_cast %34 : vector<1x1x128xf32> to vector<1x128xf32>
    %36 = vector.broadcast %35 : vector<1x128xf32> to vector<64x128xf32>
    %37 = arith.addf %33, %36 : vector<64x128xf32>
    %cst_21 = arith.constant 0.176776692 : f32
    %38 = vector.broadcast %cst_21 : f32 to vector<64x128xf32>
    %39 = arith.mulf %37, %38 : vector<64x128xf32>
    %40 = arith.truncf %39 : vector<64x128xf32> to vector<64x128xbf16>
    %c0_22 = arith.constant 0 : index
    %c0_23 = arith.constant 0 : index
    %c0_24 = arith.constant 0 : index
    %c0_25 = arith.constant 0 : index
    %c0_26 = arith.constant 0 : index
    %41 = vector.load %arg3[%c0_22, %c0_23, %c0_24, %c0_25, %c0_26] : memref<1x2x2x16x128xbf16, #tpu.memory_space<vmem>>, vector<1x2x2x16x128xbf16>
    %42 = vector.shape_cast %41 : vector<1x2x2x16x128xbf16> to vector<2x2x16x128xbf16>
    %43 = vector.shape_cast %42 : vector<2x2x16x128xbf16> to vector<64x128xbf16>
    %44 = arith.extf %43 : vector<64x128xbf16> to vector<64x128xf32>
    %cst_27 = arith.constant dense<0.000000e+00> : vector<64xf32>
    %45 = vector.multi_reduction <add>, %44, %cst_27 [1] : vector<64x128xf32> to vector<64xf32>
    %46 = vector.shape_cast %45 : vector<64xf32> to vector<64x1xf32>
    %cst_28 = arith.constant 1.280000e+02 : f32
    %47 = vector.broadcast %cst_28 : f32 to vector<64x1xf32>
    %48 = arith.divf %46, %47 : vector<64x1xf32>
    %49 = vector.broadcast %48 : vector<64x1xf32> to vector<64x128xf32>
    %50 = arith.subf %44, %49 : vector<64x128xf32>
    %51 = arith.mulf %50, %50 : vector<64x128xf32>
    %cst_29 = arith.constant dense<0.000000e+00> : vector<64xf32>
    %52 = vector.multi_reduction <add>, %51, %cst_29 [1] : vector<64x128xf32> to vector<64xf32>
    %53 = vector.shape_cast %52 : vector<64xf32> to vector<64x1xf32>
    %cst_30 = arith.constant 1.280000e+02 : f32
    %54 = vector.broadcast %cst_30 : f32 to vector<64x1xf32>
    %55 = arith.divf %53, %54 : vector<64x1xf32>
    %56 = vector.broadcast %48 : vector<64x1xf32> to vector<64x128xf32>
    %57 = arith.subf %44, %56 : vector<64x128xf32>
    %cst_31 = arith.constant 9.99999974E-6 : f32
    %58 = vector.broadcast %cst_31 : f32 to vector<64x1xf32>
    %59 = arith.addf %55, %58 : vector<64x1xf32>
    %60 = math.rsqrt %59 : vector<64x1xf32>
    %61 = vector.broadcast %60 : vector<64x1xf32> to vector<64x128xf32>
    %62 = arith.mulf %57, %61 : vector<64x128xf32>
    %c1 = arith.constant 1 : index
    %c0_32 = arith.constant 0 : index
    %c0_33 = arith.constant 0 : index
    %63 = vector.load %arg6[%c1, %c0_32, %c0_33] : memref<3x1x128xf32, #tpu.memory_space<vmem>>, vector<1x1x128xf32>
    %64 = vector.shape_cast %63 : vector<1x1x128xf32> to vector<1x128xf32>
    %65 = vector.broadcast %64 : vector<1x128xf32> to vector<64x128xf32>
    %66 = arith.mulf %62, %65 : vector<64x128xf32>
    %c1_34 = arith.constant 1 : index
    %c0_35 = arith.constant 0 : index
    %c0_36 = arith.constant 0 : index
    %67 = vector.load %arg7[%c1_34, %c0_35, %c0_36] : memref<3x1x128xf32, #tpu.memory_space<vmem>>, vector<1x1x128xf32>
    %68 = vector.shape_cast %67 : vector<1x1x128xf32> to vector<1x128xf32>
    %69 = vector.broadcast %68 : vector<1x128xf32> to vector<64x128xf32>
    %70 = arith.addf %66, %69 : vector<64x128xf32>
    %71 = arith.truncf %70 : vector<64x128xf32> to vector<64x128xbf16>
    %c1_37 = arith.constant 1 : index
    %c0_38 = arith.constant 0 : index
    %c0_39 = arith.constant 0 : index
    %72 = vector.load %arg8[%c1_37, %c0_38, %c0_39] : memref<3x128x128xbf16, #tpu.memory_space<vmem>>, vector<1x128x128xbf16>
    %73 = vector.shape_cast %72 : vector<1x128x128xbf16> to vector<128x128xbf16>
    %cst_40 = arith.constant dense<0.000000e+00> : vector<64x128xf32>
    %74 = tpu.matmul %71, %73, %cst_40 {dimension_numbers = #tpu.dot_dimension_numbers<[1], [0], [0], [1], [0, 0, 1, 1], [], []>} : vector<64x128xbf16>, vector<128x128xbf16>, vector<64x128xf32> -> vector<64x128xf32>
    %c1_41 = arith.constant 1 : index
    %c0_42 = arith.constant 0 : index
    %c0_43 = arith.constant 0 : index
    %75 = vector.load %arg9[%c1_41, %c0_42, %c0_43] : memref<3x1x128xf32, #tpu.memory_space<vmem>>, vector<1x1x128xf32>
    %76 = vector.shape_cast %75 : vector<1x1x128xf32> to vector<1x128xf32>
    %77 = vector.broadcast %76 : vector<1x128xf32> to vector<64x128xf32>
    %78 = arith.addf %74, %77 : vector<64x128xf32>
    %79 = arith.truncf %78 : vector<64x128xf32> to vector<64x128xbf16>
    %c0_44 = arith.constant 0 : index
    %c0_45 = arith.constant 0 : index
    %c0_46 = arith.constant 0 : index
    %c0_47 = arith.constant 0 : index
    %c0_48 = arith.constant 0 : index
    %80 = vector.load %arg4[%c0_44, %c0_45, %c0_46, %c0_47, %c0_48] : memref<1x2x2x16x128xbf16, #tpu.memory_space<vmem>>, vector<1x2x2x16x128xbf16>
    %81 = vector.shape_cast %80 : vector<1x2x2x16x128xbf16> to vector<2x2x16x128xbf16>
    %82 = vector.shape_cast %81 : vector<2x2x16x128xbf16> to vector<64x128xbf16>
    %83 = arith.extf %82 : vector<64x128xbf16> to vector<64x128xf32>
    %cst_49 = arith.constant dense<0.000000e+00> : vector<64xf32>
    %84 = vector.multi_reduction <add>, %83, %cst_49 [1] : vector<64x128xf32> to vector<64xf32>
    %85 = vector.shape_cast %84 : vector<64xf32> to vector<64x1xf32>
    %cst_50 = arith.constant 1.280000e+02 : f32
    %86 = vector.broadcast %cst_50 : f32 to vector<64x1xf32>
    %87 = arith.divf %85, %86 : vector<64x1xf32>
    %88 = vector.broadcast %87 : vector<64x1xf32> to vector<64x128xf32>
    %89 = arith.subf %83, %88 : vector<64x128xf32>
    %90 = arith.mulf %89, %89 : vector<64x128xf32>
    %cst_51 = arith.constant dense<0.000000e+00> : vector<64xf32>
    %91 = vector.multi_reduction <add>, %90, %cst_51 [1] : vector<64x128xf32> to vector<64xf32>
    %92 = vector.shape_cast %91 : vector<64xf32> to vector<64x1xf32>
    %cst_52 = arith.constant 1.280000e+02 : f32
    %93 = vector.broadcast %cst_52 : f32 to vector<64x1xf32>
    %94 = arith.divf %92, %93 : vector<64x1xf32>
    %95 = vector.broadcast %87 : vector<64x1xf32> to vector<64x128xf32>
    %96 = arith.subf %83, %95 : vector<64x128xf32>
    %cst_53 = arith.constant 9.99999974E-6 : f32
    %97 = vector.broadcast %cst_53 : f32 to vector<64x1xf32>
    %98 = arith.addf %94, %97 : vector<64x1xf32>
    %99 = math.rsqrt %98 : vector<64x1xf32>
    %100 = vector.broadcast %99 : vector<64x1xf32> to vector<64x128xf32>
    %101 = arith.mulf %96, %100 : vector<64x128xf32>
    %c2 = arith.constant 2 : index
    %c0_54 = arith.constant 0 : index
    %c0_55 = arith.constant 0 : index
    %102 = vector.load %arg6[%c2, %c0_54, %c0_55] : memref<3x1x128xf32, #tpu.memory_space<vmem>>, vector<1x1x128xf32>
    %103 = vector.shape_cast %102 : vector<1x1x128xf32> to vector<1x128xf32>
    %104 = vector.broadcast %103 : vector<1x128xf32> to vector<64x128xf32>
    %105 = arith.mulf %101, %104 : vector<64x128xf32>
    %c2_56 = arith.constant 2 : index
    %c0_57 = arith.constant 0 : index
    %c0_58 = arith.constant 0 : index
    %106 = vector.load %arg7[%c2_56, %c0_57, %c0_58] : memref<3x1x128xf32, #tpu.memory_space<vmem>>, vector<1x1x128xf32>
    %107 = vector.shape_cast %106 : vector<1x1x128xf32> to vector<1x128xf32>
    %108 = vector.broadcast %107 : vector<1x128xf32> to vector<64x128xf32>
    %109 = arith.addf %105, %108 : vector<64x128xf32>
    %110 = arith.truncf %109 : vector<64x128xf32> to vector<64x128xbf16>
    %c2_59 = arith.constant 2 : index
    %c0_60 = arith.constant 0 : index
    %c0_61 = arith.constant 0 : index
    %111 = vector.load %arg8[%c2_59, %c0_60, %c0_61] : memref<3x128x128xbf16, #tpu.memory_space<vmem>>, vector<1x128x128xbf16>
    %112 = vector.shape_cast %111 : vector<1x128x128xbf16> to vector<128x128xbf16>
    %cst_62 = arith.constant dense<0.000000e+00> : vector<64x128xf32>
    %113 = tpu.matmul %110, %112, %cst_62 {dimension_numbers = #tpu.dot_dimension_numbers<[1], [0], [0], [1], [0, 0, 1, 1], [], []>} : vector<64x128xbf16>, vector<128x128xbf16>, vector<64x128xf32> -> vector<64x128xf32>
    %c2_63 = arith.constant 2 : index
    %c0_64 = arith.constant 0 : index
    %c0_65 = arith.constant 0 : index
    %114 = vector.load %arg9[%c2_63, %c0_64, %c0_65] : memref<3x1x128xf32, #tpu.memory_space<vmem>>, vector<1x1x128xf32>
    %115 = vector.shape_cast %114 : vector<1x1x128xf32> to vector<1x128xf32>
    %116 = vector.broadcast %115 : vector<1x128xf32> to vector<64x128xf32>
    %117 = arith.addf %113, %116 : vector<64x128xf32>
    %118 = arith.truncf %117 : vector<64x128xf32> to vector<64x128xbf16>
    %119 = vector.shape_cast %40 : vector<64x128xbf16> to vector<2x2x16x128xbf16>
    %120 = tpu.transpose %119, [1, 0, 2, 3] : vector<2x2x16x128xbf16> -> vector<2x2x16x128xbf16>
    %121 = vector.shape_cast %120 : vector<2x2x16x128xbf16> to vector<2x32x128xbf16>
    %122 = vector.shape_cast %79 : vector<64x128xbf16> to vector<2x2x16x128xbf16>
    %123 = tpu.transpose %122, [1, 0, 2, 3] : vector<2x2x16x128xbf16> -> vector<2x2x16x128xbf16>
    %124 = vector.shape_cast %123 : vector<2x2x16x128xbf16> to vector<2x32x128xbf16>
    %125 = vector.shape_cast %118 : vector<64x128xbf16> to vector<2x2x16x128xbf16>
    %126 = tpu.transpose %125, [1, 0, 2, 3] : vector<2x2x16x128xbf16> -> vector<2x2x16x128xbf16>
    %127 = vector.shape_cast %126 : vector<2x2x16x128xbf16> to vector<2x32x128xbf16>
    %128 = vector.extract_strided_slice %121 {offsets = [0, 0, 0], sizes = [2, 32, 32], strides = [1, 1, 1]} : vector<2x32x128xbf16> to vector<2x32x32xbf16>
    %129 = vector.extract_strided_slice %121 {offsets = [0, 0, 32], sizes = [2, 32, 32], strides = [1, 1, 1]} : vector<2x32x128xbf16> to vector<2x32x32xbf16>
    %130 = vector.extract_strided_slice %121 {offsets = [0, 0, 64], sizes = [2, 32, 32], strides = [1, 1, 1]} : vector<2x32x128xbf16> to vector<2x32x32xbf16>
    %131 = vector.extract_strided_slice %121 {offsets = [0, 0, 96], sizes = [2, 32, 32], strides = [1, 1, 1]} : vector<2x32x128xbf16> to vector<2x32x32xbf16>
    %132 = tpu.concatenate %128, %129, %130, %131 in 0 : vector<2x32x32xbf16>, vector<2x32x32xbf16>, vector<2x32x32xbf16>, vector<2x32x32xbf16> -> vector<8x32x32xbf16>
    %133 = vector.extract_strided_slice %124 {offsets = [0, 0, 0], sizes = [2, 32, 32], strides = [1, 1, 1]} : vector<2x32x128xbf16> to vector<2x32x32xbf16>
    %134 = vector.extract_strided_slice %124 {offsets = [0, 0, 32], sizes = [2, 32, 32], strides = [1, 1, 1]} : vector<2x32x128xbf16> to vector<2x32x32xbf16>
    %135 = vector.extract_strided_slice %124 {offsets = [0, 0, 64], sizes = [2, 32, 32], strides = [1, 1, 1]} : vector<2x32x128xbf16> to vector<2x32x32xbf16>
    %136 = vector.extract_strided_slice %124 {offsets = [0, 0, 96], sizes = [2, 32, 32], strides = [1, 1, 1]} : vector<2x32x128xbf16> to vector<2x32x32xbf16>
    %137 = tpu.concatenate %133, %134, %135, %136 in 0 : vector<2x32x32xbf16>, vector<2x32x32xbf16>, vector<2x32x32xbf16>, vector<2x32x32xbf16> -> vector<8x32x32xbf16>
    %138 = vector.extract_strided_slice %127 {offsets = [0, 0, 0], sizes = [2, 32, 32], strides = [1, 1, 1]} : vector<2x32x128xbf16> to vector<2x32x32xbf16>
    %139 = vector.extract_strided_slice %127 {offsets = [0, 0, 32], sizes = [2, 32, 32], strides = [1, 1, 1]} : vector<2x32x128xbf16> to vector<2x32x32xbf16>
    %140 = vector.extract_strided_slice %127 {offsets = [0, 0, 64], sizes = [2, 32, 32], strides = [1, 1, 1]} : vector<2x32x128xbf16> to vector<2x32x32xbf16>
    %141 = vector.extract_strided_slice %127 {offsets = [0, 0, 96], sizes = [2, 32, 32], strides = [1, 1, 1]} : vector<2x32x128xbf16> to vector<2x32x32xbf16>
    %142 = tpu.concatenate %138, %139, %140, %141 in 0 : vector<2x32x32xbf16>, vector<2x32x32xbf16>, vector<2x32x32xbf16>, vector<2x32x32xbf16> -> vector<8x32x32xbf16>
    "tpu.trace_start"() <{level = 10 : i32, message = "bqd,bkd->bqk"}> : () -> ()
    %cst_66 = arith.constant dense<0.000000e+00> : vector<8x32x32xf32>
    %143 = tpu.matmul %132, %137, %cst_66 {dimension_numbers = #tpu.dot_dimension_numbers<[2], [2], [1], [1], [0, 0, 0, 1, 1, 1], [0], [0]>} : vector<8x32x32xbf16>, vector<8x32x32xbf16>, vector<8x32x32xf32> -> vector<8x32x32xf32>
    "tpu.trace_stop"() : () -> ()
    %cst_67 = arith.constant dense<0xFF800000> : vector<8x32xf32>
    %144 = vector.multi_reduction <maximumf>, %143, %cst_67 [2] : vector<8x32x32xf32> to vector<8x32xf32>
    %145 = vector.shape_cast %144 : vector<8x32xf32> to vector<8x32x1xf32>
    %146 = vector.broadcast %145 : vector<8x32x1xf32> to vector<8x32x32xf32>
    %147 = arith.subf %143, %146 : vector<8x32x32xf32>
    %148 = math.exp %147 : vector<8x32x32xf32>
    %cst_68 = arith.constant dense<0.000000e+00> : vector<8x32xf32>
    %149 = vector.multi_reduction <add>, %148, %cst_68 [2] : vector<8x32x32xf32> to vector<8x32xf32>
    %150 = vector.shape_cast %149 : vector<8x32xf32> to vector<8x32x1xf32>
    %151 = tpu.reciprocal %150 {approx = true} : vector<8x32x1xf32> -> vector<8x32x1xf32>
    %152 = vector.broadcast %151 : vector<8x32x1xf32> to vector<8x32x32xf32>
    %153 = arith.mulf %148, %152 : vector<8x32x32xf32>
    %154 = vector.shape_cast %153 : vector<8x32x32xf32> to vector<8x2x16x32xf32>
    %cst_69 = arith.constant dense<0.000000e+00> : vector<8x16x32xf32>
    %155 = vector.multi_reduction <add>, %154, %cst_69 [1] : vector<8x2x16x32xf32> to vector<8x16x32xf32>
    %156 = arith.truncf %155 : vector<8x16x32xf32> to vector<8x16x32xbf16>
    "tpu.trace_start"() <{level = 10 : i32, message = "bqk,bkd->bqd"}> : () -> ()
    %cst_70 = arith.constant dense<0.000000e+00> : vector<8x16x32xf32>
    %157 = tpu.matmul %156, %142, %cst_70 {dimension_numbers = #tpu.dot_dimension_numbers<[2], [1], [1], [2], [0, 0, 0, 1, 1, 2], [0], [0]>} : vector<8x16x32xbf16>, vector<8x32x32xbf16>, vector<8x16x32xf32> -> vector<8x16x32xf32>
    "tpu.trace_stop"() : () -> ()
    %158 = vector.extract_strided_slice %157 {offsets = [0, 0, 0], sizes = [2, 16, 32], strides = [1, 1, 1]} : vector<8x16x32xf32> to vector<2x16x32xf32>
    %159 = vector.extract_strided_slice %157 {offsets = [2, 0, 0], sizes = [2, 16, 32], strides = [1, 1, 1]} : vector<8x16x32xf32> to vector<2x16x32xf32>
    %160 = vector.extract_strided_slice %157 {offsets = [4, 0, 0], sizes = [2, 16, 32], strides = [1, 1, 1]} : vector<8x16x32xf32> to vector<2x16x32xf32>
    %161 = vector.extract_strided_slice %157 {offsets = [6, 0, 0], sizes = [2, 16, 32], strides = [1, 1, 1]} : vector<8x16x32xf32> to vector<2x16x32xf32>
    %162 = tpu.concatenate %158, %159, %160, %161 in 2 : vector<2x16x32xf32>, vector<2x16x32xf32>, vector<2x16x32xf32>, vector<2x16x32xf32> -> vector<2x16x128xf32>
    %163 = vector.shape_cast %162 : vector<2x16x128xf32> to vector<32x128xf32>
    %164 = arith.truncf %163 : vector<32x128xf32> to vector<32x128xbf16>
    %c0_71 = arith.constant 0 : index
    %c0_72 = arith.constant 0 : index
    %165 = vector.load %arg10[%c0_71, %c0_72] : memref<128x128xbf16, #tpu.memory_space<vmem>>, vector<128x128xbf16>
    %cst_73 = arith.constant dense<0.000000e+00> : vector<32x128xf32>
    %166 = tpu.matmul %164, %165, %cst_73 {dimension_numbers = #tpu.dot_dimension_numbers<[1], [0], [0], [1], [0, 0, 1, 1], [], []>} : vector<32x128xbf16>, vector<128x128xbf16>, vector<32x128xf32> -> vector<32x128xf32>
    %cst_74 = arith.constant 5.000000e-01 : f32
    %167 = vector.broadcast %cst_74 : f32 to vector<32x128xf32>
    %168 = arith.mulf %166, %167 : vector<32x128xf32>
    %c0_75 = arith.constant 0 : index
    %c0_76 = arith.constant 0 : index
    %169 = vector.load %arg11[%c0_75, %c0_76] : memref<1x128xf32, #tpu.memory_space<vmem>>, vector<1x128xf32>
    %170 = vector.broadcast %169 : vector<1x128xf32> to vector<32x128xf32>
    %171 = arith.addf %168, %170 : vector<32x128xf32>
    %c0_77 = arith.constant 0 : index
    %c0_78 = arith.constant 0 : index
    %c0_79 = arith.constant 0 : index
    %172 = vector.load %arg5[%c0_77, %c0_78, %c0_79] : memref<1x32x128xbf16, #tpu.memory_space<vmem>>, vector<1x32x128xbf16>
    %173 = vector.shape_cast %172 : vector<1x32x128xbf16> to vector<32x128xbf16>
    %174 = arith.extf %173 : vector<32x128xbf16> to vector<32x128xf32>
    %175 = arith.addf %171, %174 : vector<32x128xf32>
    %176 = arith.truncf %175 : vector<32x128xf32> to vector<32x128xbf16>
    %c0_80 = arith.constant 0 : index
    %c0_81 = arith.constant 0 : index
    %c0_82 = arith.constant 0 : index
    %177 = vector.load %arg12[%c0_80, %c0_81, %c0_82] : memref<1x32x128xbf16, #tpu.memory_space<vmem>>, vector<1x32x128xbf16>
    %178 = vector.shape_cast %177 : vector<1x32x128xbf16> to vector<32x128xbf16>
    %179 = vector.shape_cast %176 : vector<32x128xbf16> to vector<1x32x128xbf16>
    tpu.vector_store %arg12[%c0_80, %c0_81, %c0_82], %179 {strides = array<i32>} : memref<1x32x128xbf16, #tpu.memory_space<vmem>>, vector<1x32x128xbf16>,
    return
  }
  func.func @transform_0(%arg0: i32, %arg1: i32) -> (i32, i32, i32, i32, i32) {
    %c0_i32 = arith.constant 0 : i32
    %c0_i32_0 = arith.constant 0 : i32
    %c0_i32_1 = arith.constant 0 : i32
    %c0_i32_2 = arith.constant 0 : i32
    return %arg0, %c0_i32, %arg1, %c0_i32_0, %c0_i32_1 : i32, i32, i32, i32, i32
  }
  func.func @transform_1(%arg0: i32, %arg1: i32) -> (i32, i32, i32, i32, i32) {
    %c0_i32 = arith.constant 0 : i32
    %c0_i32_0 = arith.constant 0 : i32
    %c0_i32_1 = arith.constant 0 : i32
    %c0_i32_2 = arith.constant 0 : i32
    return %arg0, %c0_i32, %arg1, %c0_i32_0, %c0_i32_1 : i32, i32, i32, i32, i32
  }
  func.func @transform_2(%arg0: i32, %arg1: i32) -> (i32, i32, i32, i32, i32) {
    %c0_i32 = arith.constant 0 : i32
    %c0_i32_0 = arith.constant 0 : i32
    %c0_i32_1 = arith.constant 0 : i32
    %c0_i32_2 = arith.constant 0 : i32
    return %arg0, %c0_i32, %arg1, %c0_i32_0, %c0_i32_1 : i32, i32, i32, i32, i32
  }
  func.func @transform_3(%arg0: i32, %arg1: i32) -> (i32, i32, i32) {
    %c0_i32 = arith.constant 0 : i32
    %c0_i32_0 = arith.constant 0 : i32
    return %arg0, %arg1, %c0_i32 : i32, i32, i32
  }
  func.func @transform_4(%arg0: i32, %arg1: i32) -> (i32, i32, i32) {
    %c0_i32 = arith.constant 0 : i32
    %c0_i32_0 = arith.constant 0 : i32
    %c0_i32_1 = arith.constant 0 : i32
    %c0_i32_2 = arith.constant 0 : i32
    return %c0_i32, %c0_i32_0, %c0_i32_1 : i32, i32, i32
  }
  func.func @transform_5(%arg0: i32, %arg1: i32) -> (i32, i32, i32) {
    %c0_i32 = arith.constant 0 : i32
    %c0_i32_0 = arith.constant 0 : i32
    %c0_i32_1 = arith.constant 0 : i32
    %c0_i32_2 = arith.constant 0 : i32
    return %c0_i32, %c0_i32_0, %c0_i32_1 : i32, i32, i32
  }
  func.func @transform_6(%arg0: i32, %arg1: i32) -> (i32, i32, i32) {
    %c0_i32 = arith.constant 0 : i32
    %c0_i32_0 = arith.constant 0 : i32
    %c0_i32_1 = arith.constant 0 : i32
    %c0_i32_2 = arith.constant 0 : i32
    return %c0_i32, %c0_i32_0, %c0_i32_1 : i32, i32, i32
  }
  func.func @transform_7(%arg0: i32, %arg1: i32) -> (i32, i32, i32) {
    %c0_i32 = arith.constant 0 : i32
    %c0_i32_0 = arith.constant 0 : i32
    %c0_i32_1 = arith.constant 0 : i32
    %c0_i32_2 = arith.constant 0 : i32
    return %c0_i32, %c0_i32_0, %c0_i32_1 : i32, i32, i32
  }
  func.func @transform_8(%arg0: i32, %arg1: i32) -> (i32, i32) {
    %c0_i32 = arith.constant 0 : i32
    %c0_i32_0 = arith.constant 0 : i32
    %c0_i32_1 = arith.constant 0 : i32
    return %c0_i32, %c0_i32_0 : i32, i32
  }
  func.func @transform_9(%arg0: i32, %arg1: i32) -> (i32, i32) {
    %c0_i32 = arith.constant 0 : i32
    %c0_i32_0 = arith.constant 0 : i32
    %c0_i32_1 = arith.constant 0 : i32
    return %c0_i32, %c0_i32_0 : i32, i32
  }
  func.func @transform_10(%arg0: i32, %arg1: i32) -> (i32, i32, i32) {
    %c0_i32 = arith.constant 0 : i32
    %c0_i32_0 = arith.constant 0 : i32
    return %arg0, %arg1, %c0_i32 : i32, i32, i32
  }
}

</mosaic_0001>

<bundles_post_ra>
// kernel: tpu_custom_call.1
= control target key start
LH: loop header
LB: loop body
LE: loop exit
PB: predicated region body
PF: predicated region fallthrough
CT: control target
= control target key end

     0   :  { %s5682_s0 = inlined_call_operand.vmem [shape: bf16[2,2,4,16,128], index: 0, kind: input, shape index: {}]   ;;  %s5683_s1 = inlined_call_operand.hbm [shape: bf16[2,2,4,16,128], index: 1, kind: input, shape index: {}]   ;;  %s5684_s2 = inlined_call_operand.hbm [shape: bf16[2,2,4,16,128], index: 2, kind: input, shape index: {}]   ;;  %s5685_s3 = inlined_call_operand.hbm [shape: bf16[2,64,128], index: 3, kind: input, shape index: {}, may-alias: {3,10}]   ;;  %s5686_s4 = inlined_call_operand.vmem [shape: f32[3,1,128], index: 4, kind: input, shape index: {}]   ;;  %s5687_s5 = inlined_call_operand.vmem [shape: f32[3,1,128], index: 5, kind: input, shape index: {}]   ;;  %s5688_s6 = inlined_call_operand.hbm [shape: bf16[3,128,128], index: 6, kind: input, shape index: {}]   ;;  %s5689_s7 = inlined_call_operand.vmem [shape: f32[3,1,128], index: 7, kind: input, shape index: {}]   ;;  %s5690_s8 = inlined_call_operand.hbm [shape: bf16[128,128], index: 8, kind: input, shape index: {}]   ;;  %s5691_s9 = inlined_call_operand.vmem [shape: f32[1,128], index: 9, kind: input, shape index: {}]   ;;  %s5692_s10 = inlined_call_operand.hbm [shape: bf16[2,64,128], index: 10, kind: output, shape index: {}, may-alias: {3,10}]  }
   0x1   :  { %5707 = sst [smem:[#allocation31_spill]] %s5682_s0 }
   0x2   :  { %5708 = sst [smem:[#allocation32_spill]] %s5683_s1 }
   0x3   :  { %5709 = sst [smem:[#allocation33_spill]] %s5684_s2 }
   0x4   :  { %5710 = sst [smem:[#allocation34_spill]] %s5689_s7 }
   0x5   :  { %5711 = sst [smem:[#allocation35_spill]] %s5691_s9 }
   0x6   :  { %5712 = sst [smem:[#allocation36_spill]] %s5692_s10 }
   0x7   :  { %15 = vsyncpa [#allocation4], 0 }
   0x8   :  { %17 = vsyncpa [#allocation4 + $0x1], 0 }
   0x9   :  { %18 = vsyncpa [#allocation7], 0 }
   0xa   :  { %20 = vsyncpa [#allocation7 + $0x1], 0 }
   0xb   :  { %21 = vsyncpa [#allocation10], 0 }
   0xc   :  { %22 = vsyncpa [#allocation5], 0 }
   0xd   :  { %24 = vsyncpa [#allocation5 + $0x1], 0  ;;  %s4460_s13 = smov 0   ;;  %s4462_s14 = smov 0  }
   0xe   :  { %s4464_s15 = smov 0   ;;  %s4466_s16 = smov 0  }
   0xf   :  { %s4468_s17 = smov 0   ;;  %s4470_s18 = smov 0  }
  0x10   :  { %s4472_s19 = smov 0   ;;  %s4474_s20 = smov 0  }
  0x11 LB: > { %5713 = sst [smem:[#allocation23_spill]] %s4351_s13  ;;  %s4501_s21 = sadd.s32 4294967295, %s4379_s20   ;;  %s4379_s20 = sphi %s4474_s20, %s30_s20   ;;  %s4375_s19 = sphi %s4472_s19, %s5756_s19   ;;  %s4371_s18 = sphi %s4470_s18, %s5755_s18   ;;  %s4367_s17 = sphi %s4468_s17, %s5754_s17   ;;  %s4363_s16 = sphi %s4466_s16, %s5753_s16   ;;  %s4359_s15 = sphi %s4464_s15, %s5752_s15   ;;  %s4355_s14 = sphi %s4462_s14, %s5751_s14   ;;  %s4351_s13 = sphi %s4460_s13, %s5750_s13  }
  0x12   : > { %5714 = sst [smem:[#allocation24_spill]] %s4363_s16  ;;  %s3279_s22 = sadd.s32 4294967294, %s4379_s20  }
  0x13   : > { %5715 = sst [smem:[#allocation25_spill]] %s4367_s17  ;;  %s39_s23 = sadd.s32 1, %s4371_s18 }
  0x14   : > { %s42_s24 = sadd.s32 1, %s4375_s19  ;;  %p40_p0 = scmp.ge.s32.totalorder %s39_s23, 2 }
  0x15   : > { %s51_s25 = sadd.s32 1, %s4359_s15  ;;  %p58_p1 = scmp.ne.s32.totalorder %s4359_s15, %s4355_s14 }
  0x16   : > { %p59_p2 = scmp.eq.s32.totalorder %s4379_s20, 0  ;;  %s5758_s23 = smov (%p40_p0, %s39_s23), 0 }
  0x17   : > { %5716 = sst [smem:[#allocation26_spill]] %s5758_s23  ;;  %s5760_s24 = smov (!%p40_p0, %s42_s24), %s4375_s19 }
  0x18   : > { %s47_s26 = ssub.s32 %s4371_s18, %s5758_s23  ;;  %p4515_p3 = por %p59_p2, %p58_p1 }
  0x19   : > { %p44_p4 = scmp.ge.s32.totalorder %s5760_s24, 2  ;;  %p92_p5 = scmp.ne.s32.totalorder %s4355_s14, %s4351_s13 }
  0x1a   : > { %s5717_s27 = scalar_select %p4515_p3, 1, 0 }
  0x1b   : > { %p5700_p6 = scmp.eq.s32.totalorder %s4501_s21, 0  ;;  %p300_p7 = scmp.eq.s32.totalorder %s4501_s21, 3 }
  0x1c   : > { %s5762_s24 = smov (%p44_p4, %s5760_s24), 0  ;;  %p306_p10 = scmp.eq.s32.totalorder %s3279_s22, 3 }
  0x1d   : > { %5718 = sst [smem:[#allocation27_spill]] %s5762_s24  ;;  %p4527_p8 = por %p5700_p6, %p92_p5 }
  0x1e   : > { %p4531_p9 = por %p300_p7, %p58_p1  ;;  %s46_s30 = ssub.s32 %s4375_s19, %s5762_s24 }
  0x1f   : > { %s5719_s28 = scalar_select %p4527_p8, 1, 0 }
  0x20   : > { %s5720_s29 = scalar_select %p4531_p9, 1, 0 }
  0x21   : > { %s48_s11 = sor.u32 %s47_s26, %s46_s30  ;;  %p3280_p11 = scmp.ge.s32.totalorder %s4379_s20, 1 }
  0x22   : > { %5721 = sst [smem:[#allocation28_spill]] %s5720_s29  ;;  %p49_p12 = scmp.eq.s32.totalorder %s48_s11, 0 }
  0x23   : > { %p4538_p13 = por %p306_p10, %p92_p5  ;;  %p313_p0 = scmp.lt.s32.totalorder %s4379_s20, 5 }
  0x24   : > { %s4544_s23 = scalar_select %p49_p12, %s4359_s15, %s51_s25  }
  0x25   : > { %s5722_s12 = scalar_select %p4538_p13, 1, 0 }
  0x26   : > { %5724 = sst [smem:[#allocation30_spill]] %s4544_s23  ;;  %p4546_p2 = pnand %p3280_p11, %p313_p0 }
  0x27   : > { %5723 = sst [smem:[#allocation29_spill]] %s5722_s12  ;;  %s4381_s10 = smov [#allocation9]  }
  0x28   : > { %s5725_s13 = scalar_select %p4546_p2, 1, 0 }
  0x29   : > { %s331_s9 = sshll.u32 %s4381_s10, 4  ;;  %p3849_p1 = pneg %p4546_p2  ;;  %s332_s9 = int_to_ptr.vmem [resolvable:$true] %s331_s9 }
  0x2a   : > { %s4382_s26 = smov [#allocation11]   ;;  %s4189_s24 = scalar_lea.hbm %s5688_s6, 3072 }
  0x2b   : > { %p4554_p4 = pnand %p3849_p1, %p5700_p6  ;;  %s347_s25 = sshll.u32 %s4382_s26, 4  ;;  %s4558_s25 = int_to_ptr.vmem [resolvable:$true] %s347_s25 }
  0x2c   : > { %p4190_p5 = scmp.ne.s32.totalorder %s5688_s6, %s4189_s24  ;;  %p4196_p12 = scmp.lt.u32.totalorder %s4189_s24, %s5688_s6 }
  0x2d   : > { %p4191_p7 = pneg %p4554_p4 }
  0x2f   : > { %p4192_p10 = pnand %p4191_p7, %p4190_p5 }
  0x31   : > { %p4193_p11 = pneg %p4192_p10 }
  0x33   : > { %p4198_p0 = pnand %p4196_p12, %p4193_p11 }
  0x35   : > { %4201 = shalt.err (!%p4198_p0)
}
  0x36   : > { %s4202_s26 = scalar_lea.vmem %s332_s9, 3072  ;;  %p4210_p9 = scmp.lt.s32.totalorder %s332_s9, %s332_s9 }
  0x37   : > { %p4203_p1 = scmp.ne.s32.totalorder %s332_s9, %s4202_s26  ;;  %p4211_p8 = scmp.lt.s32.totalorder %s4202_s26, %s4202_s26 }
  0x39   : > { %p4205_p6 = pnand %p4203_p1, %p4191_p7  ;;  %p4212_p2 = por %p4211_p8, %p4210_p9 }
  0x3b   : > { %p4206_p13 = pneg %p4205_p6 }
  0x3d   : > { %p4213_p3 = pnand %p4212_p2, %p4206_p13 }
  0x3f   : > { %4216 = shalt.err (!%p4213_p3)
}
  0x40   : > { %s4383_s23 = smov 64   ;;  %s4384_s30 = smov 4  }
  0x41   : > { %3852 = dma.hbm_to_vmem [thread:$0]  (!%p4554_p4), %s5688_s6, 3072, %s332_s9, [#allocation10], %s4383_s23, %s4383_s23, %s4384_s30  }
  0x42   : > { %s4217_s10 = scalar_lea.hbm %s5690_s8, 1024 }
  0x43   : > { %p4218_p6 = scmp.ne.s32.totalorder %s5690_s8, %s4217_s10  ;;  %p4224_p9 = scmp.lt.u32.totalorder %s4217_s10, %s5690_s8 }
  0x45   : > { %p4220_p3 = pnand %p4218_p6, %p4191_p7 }
  0x47   : > { %p4221_p8 = pneg %p4220_p3 }
  0x49   : > { %p4226_p13 = pnand %p4224_p9, %p4221_p8 }
  0x4b   : > { %4229 = shalt.err (!%p4226_p13)
}
  0x4c   : > { %s4230_s9 = scalar_lea.vmem %s4558_s25, 1024  ;;  %p4238_p11 = scmp.lt.s32.totalorder %s4558_s25, %s4558_s25 }
  0x4d   : > { %p4231_p2 = scmp.ne.s32.totalorder %s4558_s25, %s4230_s9  ;;  %p4239_p12 = scmp.lt.s32.totalorder %s4230_s9, %s4230_s9 }
  0x4f   : > { %p4233_p5 = pnand %p4231_p2, %p4191_p7  ;;  %p4240_p0 = por %p4239_p12, %p4238_p11 }
  0x51   : > { %p4234_p10 = pneg %p4233_p5 }
  0x53   : > { %p4241_p1 = pnand %p4240_p0, %p4234_p10 }
  0x55   : > { %4244 = shalt.err (!%p4241_p1)
}
  0x56   : > { %3855 = dma.hbm_to_vmem [thread:$0]  (!%p4554_p4), %s5690_s8, 1024, %s4558_s25, [#allocation10], %s4383_s23, %s4383_s23, %s4384_s30  }
  0x57   : > { %p3283_p6 = scmp.ge.s32.totalorder %s4379_s20, 4 }
  0x58   : > { %p5727_p3 = scmp.ne.s32.totalorder (!%p3283_p6), %s5717_s27, 0 }
  0x59   : > { %360 = sbr.rel (%p3283_p6) target bundleno = 165 (0xa5), region = 40 }
  0x60   : > { %363 = sbr.rel (!%p5727_p3) target bundleno = 108 (0x6c), region = 44  ;;  %s365_s17 = sand.u32 (%p5727_p3), 1, %s4359_s15  }
  0x61   : > { %s3397_s24 = sshll.u32 (%p5727_p3), %s4371_s18, 2  ;;  %s3284_s29 = sshll.u32 (%p5727_p3), %s365_s17, 5 }
  0x62   : > { %s3287_s12 = sshll.u32 (%p5727_p3), %s4375_s19, 4  ;;  %s5728_s0 = sld [smem:[#allocation31_spill]] (%p5727_p3) }
  0x63   : > { %s371_s11 = sadd.s32 (%p5727_p3), %s3397_s24, %s3287_s12  ;;  %s367_s25 = scalar_lea.vmem (%p5727_p3), [#allocation2], %s3284_s29 }
  0x64   : > { %s3288_s22 = sshll.u32 (%p5727_p3), %s371_s11, 2 }
  0x68   : > { %s373_s9 = scalar_lea.vmem %s5728_s0, %s3288_s22 }
  0x69   : > { %v389_v0 = vld [vmem:[%s373_s9] sm:$0xff]   ;;  %v393_v1 = vld [vmem:[%s373_s9 + $0x8] sm:$0xff]  }
  0x6a   : > { %v397_v2 = vld [vmem:[%s373_s9 + $0x20] sm:$0xff]   ;;  %390 = vst [vmem:[%s367_s25] sm:$0xff] %v389_v0   ;;  %394 = vst [vmem:[%s367_s25 + $0x8] sm:$0xff] %v393_v1   ;;  %v401_v3 = vld [vmem:[%s373_s9 + $0x28] sm:$0xff]  }
  0x6b   : > { %398 = vst [vmem:[%s367_s25 + $0x10] sm:$0xff] %v397_v2   ;;  %402 = vst [vmem:[%s367_s25 + $0x18] sm:$0xff] %v401_v3  }
  0x6c PF: > { %s4617_s23 = sand.u32 1, %s4359_s15   ;;  %s5706_s30 = sshll.u32 %s4371_s18, 2 }
  0x6d   : > { %s3289_s7 = sshll.u32 %s4617_s23, 5  ;;  %s3292_s16 = sshll.u32 %s4375_s19, 4 }
  0x6e   : > { %s455_s17 = sadd.s32 %s5706_s30, %s3292_s16  ;;  %s448_s24 = scalar_lea.vmem [#allocation3], %s3289_s7 }
  0x6f   : > { %s470_s29 = sshll.u32 %s448_s24, 4  ;;  %s3293_s12 = sshll.u32 %s455_s17, 6  ;;  %s471_s29 = int_to_ptr.vmem [resolvable:$true] %s470_s29 }
  0x70   : > { %p5729_p4 = scmp.ne.s32.totalorder %s5717_s27, 0  ;;  %s4385_s22 = smov 512  }
  0x71   : > { %s4386_s26 = smov 256   ;;  %s4387_s9 = smov 4  }
  0x72   : > { %s3823_s11 = scalar_select %p5729_p4, [#allocation0], [#allocation17] }
  0x73   : > { %3824 = sst [smem:[#allocation14]] (%p5729_p4), %s4385_s22  ;;  %s4388_s25 = smov 64  }
  0x74   : > { %s462_s10 = sld [smem:[%s3823_s11]]   ;;  %s445_s30 = scalar_lea.sflag [#allocation4], %s4617_s23 }
  0x75   : > { %3825 = sst [smem:[#allocation14 + $0x1]] (%p5729_p4), %s4386_s26  ;;  %s4389_s0 = smov [#allocation13]  }
  0x76   : > { %3826 = sst [smem:[#allocation14 + $0x2]] (%p5729_p4), %s4387_s9  ;;  %s5730_s1 = sld [smem:[#allocation32_spill]] }
  0x77   : > { %3827 = sst [smem:[#allocation14 + $0x3]] (%p5729_p4), %s4388_s25 }
  0x78   : > { %3828 = sst [smem:[#allocation14 + $0x4]] (%p5729_p4), %s4388_s25 }
  0x79   : > { %3829 = sst [smem:[#allocation14 + $0x5]] (%p5729_p4), %s4387_s9 }
  0x7a   : > { %s3294_s22 = sshll.u32 %s462_s10, 26 }
  0x7b   : > { %s3295_s11 = sadd.s32 134217728, %s3294_s22 }
  0x7c   : > { %s457_s24 = scalar_lea.hbm %s5730_s1, %s3293_s12 }
  0x7d   : > { %3830 = dma.general (%p5729_p4), %s457_s24, 512, %s471_s29, %s445_s30, %s4389_s0, [#allocation14], %s3295_s11, 0  }
  0x7e   : > { %s493_s26 = sand.u32 1, %s4379_s20   ;;  %s5731_s2 = sld [smem:[#allocation33_spill]] }
  0x7f   : > { %s3831_s16 = scalar_select %p5729_p4, [#allocation0], [#allocation18] }
  0x80   : > { %s497_s22 = scalar_lea.vmem [#allocation6], %s3289_s7  ;;  %s4390_s0 = smov 512  }
  0x81   : > { %s511_s9 = sld [smem:[%s3831_s16]]   ;;  %s519_s1 = sshll.u32 %s497_s22, 4  ;;  %s520_s1 = int_to_ptr.vmem [resolvable:$true] %s519_s1 }
  0x82   : > { %3832 = sst [smem:[#allocation16]] (%p5729_p4), %s4390_s0  ;;  %s4391_s30 = smov 256  }
  0x83   : > { %3833 = sst [smem:[#allocation16 + $0x1]] (%p5729_p4), %s4391_s30  ;;  %s4392_s29 = smov 4  }
  0x84   : > { %s506_s10 = scalar_lea.hbm %s5731_s2, %s3293_s12  ;;  %3834 = sst [smem:[#allocation16 + $0x2]] (%p5729_p4), %s4392_s29 }
  0x85   : > { %s4393_s24 = smov 64   ;;  %3837 = sst [smem:[#allocation16 + $0x5]] (%p5729_p4), %s4392_s29 }
  0x86   : > { %3835 = sst [smem:[#allocation16 + $0x3]] (%p5729_p4), %s4393_s24  ;;  %s4662_s11 = scalar_lea.sflag [#allocation7], %s493_s26 }
  0x87   : > { %3836 = sst [smem:[#allocation16 + $0x4]] (%p5729_p4), %s4393_s24  ;;  %s3301_s12 = sshll.u32 %s511_s9, 26 }
  0x88   : > { %s3302_s7 = sadd.s32 134217728, %s3301_s12  ;;  %s4394_s16 = smov [#allocation15]  }
  0x89   : > { %3838 = dma.general (%p5729_p4), %s506_s10, 512, %s520_s1, %s4662_s11, %s4394_s16, [#allocation16], %s3302_s7, 0  }
  0x8a   : > { %s3303_s17 = sshll.u32 %s4617_s23, 4  ;;  %s3305_s25 = sshll.u32 %s4375_s19, 3 }
  0x8b   : > { %s5732_s22 = sshll.u32 %s4371_s18, 2  ;;  %s546_s24 = scalar_lea.vmem [#allocation8], %s3303_s17 }
  0x8c   : > { %s552_s0 = sadd.s32 %s5732_s22, %s3305_s25  ;;  %s555_s9 = sshll.u32 %s546_s24, 4  ;;  %s4676_s9 = int_to_ptr.vmem [resolvable:$true] %s555_s9 }
  0x8d   : > { %s3306_s30 = sshll.u32 %s552_s0, 6  ;;  %s4249_s12 = scalar_lea.hbm %s5685_s3, 1024 }
  0x8e   : > { %s4674_s26 = scalar_lea.hbm %s5685_s3, %s3306_s30 }
  0x8f   : > { %s4245_s1 = scalar_lea.hbm %s4674_s26, 256  ;;  %p4250_p13 = scmp.lt.u32.totalorder %s4674_s26, %s5685_s3 }
  0x90   : > { %p4246_p7 = scmp.ne.s32.totalorder %s4674_s26, %s4245_s1  ;;  %p4251_p2 = scmp.lt.u32.totalorder %s4249_s12, %s4245_s1 }
  0x91   : > { %p4253_p10 = scmp.lt.u32.totalorder %s4245_s1, %s4674_s26 }
  0x92   : > { %p4247_p8 = pnand %p4246_p7, %p5729_p4  ;;  %p4252_p5 = por %p4251_p2, %p4250_p13 }
  0x94   : > { %p4248_p9 = pneg %p4247_p8  ;;  %p4254_p11 = por %p4253_p10, %p4252_p5 }
  0x96   : > { %p4255_p12 = pnand %p4254_p11, %p4248_p9 }
  0x98   : > { %4258 = shalt.err (!%p4255_p12)
}
  0x99   : > { %s4259_s2 = scalar_lea.vmem %s4676_s9, 256  ;;  %s4395_s17 = smov [#allocation8]  }
  0x9a   : > { %p4260_p0 = scmp.ne.s32.totalorder %s4676_s9, %s4259_s2  ;;  %s4263_s25 = sshll.u32 %s4395_s17, 4  ;;  %s4264_s25 = int_to_ptr.vmem [resolvable:$false] %s4263_s25 }
  0x9b   : > { %s4265_s22 = scalar_lea.vmem %s4264_s25, 512  ;;  %p4266_p3 = scmp.lt.s32.totalorder %s4676_s9, %s4264_s25 }
  0x9c   : > { %p4261_p1 = pnand %p4260_p0, %p5729_p4  ;;  %p4267_p7 = scmp.lt.s32.totalorder %s4265_s22, %s4259_s2 }
  0x9e   : > { %p4262_p6 = pneg %p4261_p1  ;;  %p4268_p8 = por %p4267_p7, %p4266_p3 }
  0xa0   : > { %p4269_p13 = pnand %p4268_p8, %p4262_p6 }
  0xa2   : > { %4272 = shalt.err (!%p4269_p13)
}
  0xa3   : > { %s4396_s0 = smov 64   ;;  %s4397_s30 = smov 4  }
  0xa4   : > { %3839 = dma.hbm_to_vmem [thread:$0]  (%p5729_p4), %s4674_s26, 256, %s4676_s9, %s4662_s11, %s4396_s0, %s4396_s0, %s4397_s30  }
  0xa5 PF: > { %p5733_p9 = scmp.ne.s32.totalorder %s5725_s13, 0 }
  0xa6   : > { %s4703_s24 = sand.u32 (!%p5733_p9), 1, %s4355_s14   ;;  %p5734_p2 = scmp.ne.s32.totalorder (!%p5733_p9), %s5719_s28, 0 }
  0xa7   : > { %567 = sbr.rel (%p5733_p9) target bundleno = 2040 (0x7f8), region = 97  ;;  %s3308_s29 = sshll.u32 (!%p5733_p9), %s4703_s24, 5 }
  0xa8   : > { %s4706_s1 = scalar_lea.vmem (!%p5733_p9), [#allocation2], %s3308_s29  ;;  %s577_s23 = scalar_lea.sflag (!%p5733_p9), [#allocation4], %s4703_s24 }
  0xa9   : > { %s4709_s10 = scalar_lea.vmem (!%p5733_p9), [#allocation3], %s3308_s29 }
  0xae   : > { %4334 = dma.done.wait (%p5734_p2), %s577_s23, 512  }
  0xaf   : > { %4336 = vsyncadd (%p5734_p2), %s577_s23, 4294966784  ;;  %s585_s13 = sand.u32 1, %s4501_s21   ;;  %s4716_s11 = scalar_lea.vmem [#allocation6], %s3308_s29 }
  0xb0   : > { %s586_s27 = scalar_lea.sflag [#allocation7], %s585_s13 }
  0xb1   : > { %4338 = dma.done.wait (%p5734_p2), %s586_s27, 768  }
  0xb2   : > { %4340 = vsyncadd (%p5734_p2), %s586_s27, 4294966528  ;;  %s3311_s9 = sshll.u32 %s4703_s24, 4  ;;  %p5735_p4 = scmp.eq.s32.totalorder %s4501_s21, 0 }
  0xb3   : > { %s4725_s26 = scalar_lea.vmem [#allocation8], %s3311_s9 }
  0xb4   : > { %4342 = dma.done.wait (%p5735_p4), [#allocation10], 4096   ;;  %p5736_p5 = pmov %p5735_p4 }
  0xb5   : > { %v3421_v4 = vld [vmem:[%s4709_s10] sm:$0xff]   ;;  %v3473_v5 = vld [vmem:[%s4709_s10 + $0x8] sm:$0xff]   ;;  %v4742_v14 = vld [vmem:[%s4709_s10 + $0x10] sm:$0xff]   ;;  %vm1610_vm0 = vcmask 261120   ;;  %s4399_s21 = smov 64   ;;  %s4400_s28 = smov 32  }
  0xb6   : > { %4344 = vsyncadd (%p5736_p5), [#allocation10], 4294963200  ;;  %v3422_v6 = vunpack.c.l.bf16 %v3421_v4  ;;  %v3426_v7 = vunpack.c.l.bf16 %v3473_v5  ;;  %v4734_v8 = vld [vmem:[%s4706_s1] sm:$0xff]   ;;  %v3423_v9 = vunpack.c.h.bf16 %v3421_v4  ;;  %v3427_v10 = vunpack.c.h.bf16 %v3473_v5  ;;  %v4737_v11 = vld [vmem:[%s4706_s1 + $0x8] sm:$0xff]   ;;  %s5738_s16 = sld [smem:[#allocation24_spill]]  ;;  %s5739_s2 = sld [smem:[#allocation25_spill]] }
  0xb7   : > { %v3406_v12 = vunpack.c.l.bf16 %v4734_v8  ;;  %v3407_v13 = vunpack.c.h.bf16 %v4734_v8  ;;  %v3410_v15 = vunpack.c.l.bf16 %v4737_v11  ;;  %v3411_v16 = vunpack.c.h.bf16 %v4737_v11  ;;  %v4747_v17 = vld [vmem:[%s4709_s10 + $0x18] sm:$0xff]   ;;  %v4752_v20 = vld [vmem:[%s4706_s1 + $0x10] sm:$0xff]   ;;  %v3981_v28 = vld [vmem:[#allocation9 + $0x40] sm:$0xff]   ;;  %s5737_s10 = sld [smem:[#allocation34_spill]]  ;;  %s5740_s22 = sld [smem:[#allocation35_spill]] }
  0xb8   : > { %966 = vadd.xlane.f32.xlu0 %v3422_v6  ;;  %970 = vadd.xlane.f32.xlu1 %v3426_v7  ;;  %v3430_v18 = vunpack.c.l.bf16 %v4742_v14  ;;  %v3431_v19 = vunpack.c.h.bf16 %v4742_v14  ;;  %v3434_v21 = vunpack.c.l.bf16 %v4747_v17  ;;  %v3435_v22 = vunpack.c.h.bf16 %v4747_v17  ;;  %v4767_v25 = vld [vmem:[%s4706_s1 + $0x18] sm:$0xff]   ;;  %v3982_v8 = vld [vmem:[#allocation9 + $0x48] sm:$0xff]   ;;  %s5741_s23 = sld [smem:[#allocation28_spill]]  ;;  %s3084_s7 = scalar_lea.sflag [#allocation5], %s4703_s24 }
  0xb9   : > { %v3414_v23 = vunpack.c.l.bf16 %v4752_v20  ;;  %v3415_v24 = vunpack.c.h.bf16 %v4752_v20  ;;  %v3418_v26 = vunpack.c.l.bf16 %v4767_v25  ;;  %v3419_v27 = vunpack.c.h.bf16 %v4767_v25  ;;  %3607 = vmatprep.subr.bf16.mxu1 %v3981_v28 }
  0xba   : > { %3608 = vmatpush3.bf16.msra.mxu1 %v3981_v28  ;;  %vm4402_vm1 = vmmov 0   ;;  %vm2911_vm2 = vcmask 523264   ;;  %vm2916_vm3 = vcmask 785408  }
  0xbb   : > { %3609 = vmatprep.subr.bf16.mxu1 %v3982_v8 }
  0xbc   : > { %968 = vadd.xlane.f32.xlu0 %v3423_v9  ;;  %972 = vadd.xlane.f32.xlu1 %v3427_v10  ;;  %s3392_s0 = sshll.u32 %s5738_s16, 2  ;;  %s3393_s30 = sshll.u32 %s5739_s2, 3 }
  0xbd   : > { %s3096_s29 = sadd.s32 %s3393_s30, %s3392_s0 }
  0xbe   : > { %3610 = vmatpush3.bf16.msra.mxu1 %v3982_v8  ;;  %s3394_s1 = sshll.u32 %s3096_s29, 6  ;;  %p5743_p11 = scmp.ne.s32.totalorder %s5741_s23, 0 }
  0xc0   : > { %679 = vadd.xlane.f32.xlu0 %v3406_v12  ;;  %681 = vadd.xlane.f32.xlu1 %v3407_v13 }
  0xc4   : > { %683 = vadd.xlane.f32.xlu0 %v3410_v15  ;;  %685 = vadd.xlane.f32.xlu1 %v3411_v16 }
  0xc8   : > { %974 = vadd.xlane.f32.xlu0 %v3430_v18  ;;  %976 = vadd.xlane.f32.xlu1 %v3431_v19 }
  0xcc   : > { %978 = vadd.xlane.f32.xlu0 %v3434_v21  ;;  %980 = vadd.xlane.f32.xlu1 %v3435_v22 }
  0xd0   : > { %687 = vadd.xlane.f32.xlu0 %v3414_v23  ;;  %689 = vadd.xlane.f32.xlu1 %v3415_v24 }
  0xd4   : > { %691 = vadd.xlane.f32.xlu0 %v3418_v26  ;;  %693 = vadd.xlane.f32.xlu1 %v3419_v27 }
 0x145   : > { %v967_v29 = vpop.xlane.xlu0 %966  ;;  %v971_v30 = vpop.xlane.xlu1 %970 }
 0x146   : > { %v982_v31 = vmul.f32 0.0078125, %v967_v29  ;;  %v984_v32 = vmul.f32 0.0078125, %v971_v30 }
 0x148   : > { %v4779_v33 = vsub.f32 %v3422_v6, %v982_v31  ;;  %v4781_v34 = vsub.f32 %v3426_v7, %v984_v32 }
 0x149   : > { %v969_v35 = vpop.xlane.xlu0 %968  ;;  %v973_v36 = vpop.xlane.xlu1 %972 }
 0x14a   : > { %v983_v37 = vmul.f32 0.0078125, %v969_v35  ;;  %v998_v38 = vmul.f32 %v4779_v33, %v4779_v33  ;;  %v985_v39 = vmul.f32 0.0078125, %v973_v36  ;;  %v1000_v41 = vmul.f32 %v4781_v34, %v4781_v34  ;;  %v3985_v35 = vld [vmem:[#allocation9 + $0x8] sm:$0xff]   ;;  %v3986_v36 = vld [vmem:[#allocation9 + $0x58] sm:$0xff]  }
 0x14c   : > { %1006 = vadd.xlane.f32.xlu0 %v998_v38  ;;  %v4785_v40 = vsub.f32 %v3423_v9, %v983_v37  ;;  %v4789_v42 = vsub.f32 %v3427_v10, %v985_v39  ;;  %v4856_v37 = vld [vmem:[%s4716_s11] sm:$0xff]  }
 0x14d   : > { %v680_v43 = vpop.xlane.xlu0 %679  ;;  %v682_v44 = vpop.xlane.xlu1 %681  ;;  %v3988_v39 = vld [vmem:[#allocation9 + $0x60] sm:$0xff]  }
 0x14e   : > { %v696_v45 = vmul.f32 0.0078125, %v680_v43  ;;  %v999_v46 = vmul.f32 %v4785_v40, %v4785_v40  ;;  %v697_v47 = vmul.f32 0.0078125, %v682_v44  ;;  %v1001_v48 = vmul.f32 %v4789_v42, %v4789_v42 }
 0x14f   : > { %v3439_v43 = vunpack.c.h.bf16 %v4856_v37 }
 0x150   : > { %1008 = vadd.xlane.f32.xlu1 %v999_v46  ;;  %1010 = vadd.xlane.f32.xlu0 %v1000_v41  ;;  %v4795_v49 = vsub.f32 %v3406_v12, %v696_v45  ;;  %v4797_v50 = vsub.f32 %v3407_v13, %v697_v47  ;;  %v4864_v41 = vld [vmem:[%s4716_s11 + $0x8] sm:$0xff]   ;;  %v3989_v45 = vld [vmem:[#allocation9 + $0x18] sm:$0xff]   ;;  %v4871_v47 = vld [vmem:[%s4716_s11 + $0x10] sm:$0xff]  }
 0x151   : > { %v684_v51 = vpop.xlane.xlu0 %683  ;;  %v686_v52 = vpop.xlane.xlu1 %685  ;;  %v3442_v44 = vunpack.c.l.bf16 %v4864_v41  ;;  %v3990_v46 = vld [vmem:[#allocation9 + $0x68] sm:$0xff]  }
 0x152   : > { %v698_v53 = vmul.f32 0.0078125, %v684_v51  ;;  %v712_v54 = vmul.f32 %v4795_v49, %v4795_v49  ;;  %v699_v55 = vmul.f32 0.0078125, %v686_v52  ;;  %v713_v56 = vmul.f32 %v4797_v50, %v4797_v50  ;;  %v3991_v52 = vld [vmem:[#allocation9 + $0x20] sm:$0xff]  }
 0x153   : > { %v3446_v51 = vunpack.c.l.bf16 %v4871_v47 }
 0x154   : > { %1012 = vadd.xlane.f32.xlu1 %v1001_v48  ;;  %720 = vadd.xlane.f32.xlu0 %v712_v54  ;;  %v4803_v57 = vsub.f32 %v3410_v15, %v698_v53  ;;  %v4805_v58 = vsub.f32 %v3411_v16, %v699_v55  ;;  %v3443_v48 = vunpack.c.h.bf16 %v4864_v41  ;;  %v3992_v53 = vld [vmem:[#allocation9 + $0x70] sm:$0xff]   ;;  %v4880_v54 = vld [vmem:[%s4716_s11 + $0x18] sm:$0xff]   ;;  %v3447_v55 = vunpack.c.h.bf16 %v4871_v47  ;;  %s4398_s11 = smov 96  }
 0x155   : > { %v975_v59 = vpop.xlane.xlu0 %974  ;;  %v977_v60 = vpop.xlane.xlu1 %976 }
 0x156   : > { %v986_v61 = vmul.f32 0.0078125, %v975_v59  ;;  %v714_v62 = vmul.f32 %v4803_v57, %v4803_v57  ;;  %v987_v63 = vmul.f32 0.0078125, %v977_v60  ;;  %v715_v0 = vmul.f32 %v4805_v58, %v4805_v58  ;;  %v3993_v59 = vld [vmem:[#allocation9 + $0x28] sm:$0xff]   ;;  %v3994_v60 = vld [vmem:[#allocation9 + $0x78] sm:$0xff]  }
 0x158   : > { %722 = vadd.xlane.f32.xlu1 %v713_v56  ;;  %724 = vadd.xlane.f32.xlu0 %v714_v62  ;;  %v4813_v1 = vsub.f32 %v3430_v18, %v986_v61  ;;  %v4817_v2 = vsub.f32 %v3431_v19, %v987_v63  ;;  %v3450_v56 = vunpack.c.l.bf16 %v4880_v54  ;;  %v3451_v61 = vunpack.c.h.bf16 %v4880_v54  ;;  %v3995_v62 = vld [vmem:[#allocation9 + $0x30] sm:$0xff]   ;;  %v3996_v63 = vld [vmem:[#allocation9 + $0x38] sm:$0xff]   ;;  %v4002_v54 = vld [vmem:[#allocation9 + $0xa8] sm:$0xff]  }
 0x159   : > { %v979_v3 = vpop.xlane.xlu0 %978  ;;  %v981_v4 = vpop.xlane.xlu1 %980 }
 0x15a   : > { %v988_v5 = vmul.f32 0.0078125, %v979_v3  ;;  %v1002_v6 = vmul.f32 %v4813_v1, %v4813_v1  ;;  %v989_v7 = vmul.f32 0.0078125, %v981_v4  ;;  %v1003_v9 = vmul.f32 %v4817_v2, %v4817_v2 }
 0x15c   : > { %726 = vadd.xlane.f32.xlu1 %v715_v0  ;;  %1014 = vadd.xlane.f32.xlu0 %v1002_v6  ;;  %v4825_v10 = vsub.f32 %v3434_v21, %v988_v5  ;;  %v4829_v11 = vsub.f32 %v3435_v22, %v989_v7  ;;  %v3983_v21 = vld [vmem:[#allocation9] sm:$0xff]   ;;  %v3984_v22 = vld [vmem:[#allocation9 + $0x50] sm:$0xff]  }
 0x15d   : > { %v688_v12 = vpop.xlane.xlu0 %687  ;;  %v690_v13 = vpop.xlane.xlu1 %689  ;;  %3583 = vmatprep.subr.bf16.mxu0 %v3983_v21  ;;  %3611 = vmatprep.subr.bf16.mxu1 %v3984_v22  ;;  %v4895_v0 = vld [vmem:[#allocation9 + $0x80] sm:$0xff]  }
 0x15e   : > { %v700_v14 = vmul.f32 0.0078125, %v688_v12  ;;  %v1004_v15 = vmul.f32 %v4825_v10, %v4825_v10  ;;  %v701_v16 = vmul.f32 0.0078125, %v690_v13  ;;  %v1005_v18 = vmul.f32 %v4829_v11, %v4829_v11  ;;  %3584 = vmatpush3.bf16.msra.mxu0 %v3983_v21  ;;  %3612 = vmatpush3.bf16.msra.mxu1 %v3984_v22 }
 0x15f   : > { %3585 = vmatprep.subr.bf16.mxu0 %v3985_v35  ;;  %3613 = vmatprep.subr.bf16.mxu1 %v3986_v36 }
 0x160   : > { %1016 = vadd.xlane.f32.xlu1 %v1003_v9  ;;  %1018 = vadd.xlane.f32.xlu0 %v1004_v15  ;;  %v4837_v19 = vsub.f32 %v3414_v23, %v700_v14  ;;  %v4841_v17 = vsub.f32 %v3415_v24, %v701_v16 }
 0x161   : > { %v692_v28 = vpop.xlane.xlu0 %691  ;;  %v694_v29 = vpop.xlane.xlu1 %693 }
 0x162   : > { %v702_v30 = vmul.f32 0.0078125, %v692_v28  ;;  %v716_v31 = vmul.f32 %v4837_v19, %v4837_v19  ;;  %v703_v32 = vmul.f32 0.0078125, %v694_v29  ;;  %v717_v20 = vmul.f32 %v4841_v17, %v4841_v17  ;;  %3586 = vmatpush3.bf16.msra.mxu0 %v3985_v35  ;;  %3614 = vmatpush3.bf16.msra.mxu1 %v3986_v36 }
 0x163   : > { %3615 = vmatprep.subr.bf16.mxu1 %v3988_v39 }
 0x164   : > { %1020 = vadd.xlane.f32.xlu1 %v1005_v18  ;;  %728 = vadd.xlane.f32.xlu0 %v716_v31  ;;  %v4849_v23 = vsub.f32 %v3418_v26, %v702_v30  ;;  %v4853_v24 = vsub.f32 %v3419_v27, %v703_v32  ;;  %v3438_v26 = vunpack.c.l.bf16 %v4856_v37  ;;  %v3987_v27 = vld [vmem:[#allocation9 + $0x10] sm:$0xff]  }
 0x165   : > { %3587 = vmatprep.subr.bf16.mxu0 %v3987_v27 }
 0x166   : > { %v718_v38 = vmul.f32 %v4849_v23, %v4849_v23  ;;  %v719_v25 = vmul.f32 %v4853_v24, %v4853_v24  ;;  %3588 = vmatpush3.bf16.msra.mxu0 %v3987_v27  ;;  %3616 = vmatpush3.bf16.msra.mxu1 %v3988_v39 }
 0x167   : > { %3589 = vmatprep.subr.bf16.mxu0 %v3989_v45  ;;  %3617 = vmatprep.subr.bf16.mxu1 %v3990_v46 }
 0x168   : > { %730 = vadd.xlane.f32.xlu1 %v717_v20  ;;  %732 = vadd.xlane.f32.xlu0 %v718_v38 }
 0x16a   : > { %3590 = vmatpush3.bf16.msra.mxu0 %v3989_v45  ;;  %3618 = vmatpush3.bf16.msra.mxu1 %v3990_v46  ;;  %v4902_v45 = vld [vmem:[%s5686_s4 + $0x1] ss:$0 sm:$0xff] }
 0x16b   : > { %3591 = vmatprep.subr.bf16.mxu0 %v3991_v52  ;;  %3619 = vmatprep.subr.bf16.mxu1 %v3992_v53 }
 0x16c   : > { %734 = vadd.xlane.f32.xlu1 %v719_v25  ;;  %1248 = vadd.xlane.f32.xlu0 %v3438_v26 }
 0x16e   : > { %3592 = vmatpush3.bf16.msra.mxu0 %v3991_v52  ;;  %3620 = vmatpush3.bf16.msra.mxu1 %v3992_v53 }
 0x16f   : > { %3593 = vmatprep.subr.bf16.mxu0 %v3993_v59  ;;  %3621 = vmatprep.subr.bf16.mxu1 %v3994_v60 }
 0x170   : > { %1250 = vadd.xlane.f32.xlu1 %v3439_v43  ;;  %1252 = vadd.xlane.f32.xlu0 %v3442_v44 }
 0x172   : > { %3594 = vmatpush3.bf16.msra.mxu0 %v3993_v59  ;;  %3622 = vmatpush3.bf16.msra.mxu1 %v3994_v60 }
 0x173   : > { %3595 = vmatprep.subr.bf16.mxu0 %v3995_v62 }
 0x174   : > { %1254 = vadd.xlane.f32.xlu1 %v3443_v48  ;;  %1256 = vadd.xlane.f32.xlu0 %v3446_v51 }
 0x176   : > { %3596 = vmatpush3.bf16.msra.mxu0 %v3995_v62 }
 0x177   : > { %3597 = vmatprep.subr.bf16.mxu0 %v3996_v63 }
 0x178   : > { %1258 = vadd.xlane.f32.xlu1 %v3447_v55  ;;  %1260 = vadd.xlane.f32.xlu0 %v3450_v56 }
 0x17a   : > { %3598 = vmatpush3.bf16.msra.mxu0 %v3996_v63 }
 0x17b   : > { %3631 = vmatprep.subr.bf16.mxu0 %v4895_v0 }
 0x17c   : > { %1262 = vadd.xlane.f32.xlu1 %v3451_v61 }
 0x1d9   : > { %v1007_v3 = vpop.xlane.xlu0 %1006 }
 0x1da   : > { %v1022_v4 = vmul.f32 0.0078125, %v1007_v3 }
 0x1dc   : > { %v1030_v5 = vadd.f32 1e-05, %v1022_v4 }
 0x1dd   : > { %v1009_v6 = vpop.xlane.xlu1 %1008  ;;  %v1011_v7 = vpop.xlane.xlu0 %1010 }
 0x1de   : > { %4013 = vrsqrt.f32 %v1030_v5  ;;  %v1023_v8 = vmul.f32 0.0078125, %v1009_v6  ;;  %v1024_v9 = vmul.f32 0.0078125, %v1011_v7  ;;  %v4909_v5 = vld [vmem:[%s5687_s5 + $0x1] ss:$0 sm:$0xff] }
 0x1e0   : > { %v1031_v12 = vadd.f32 1e-05, %v1023_v8  ;;  %v1032_v13 = vadd.f32 1e-05, %v1024_v9 }
 0x1e1   : > { %v1013_v14 = vpop.xlane.xlu1 %1012  ;;  %v721_v15 = vpop.xlane.xlu0 %720 }
 0x1e2   : > { %4015 = vrsqrt.f32 %v1031_v12  ;;  %v1025_v16 = vmul.f32 0.0078125, %v1013_v14  ;;  %v736_v18 = vmul.f32 0.0078125, %v721_v15 }
 0x1e3   : > { %4017 = vrsqrt.f32 %v1032_v13 }
 0x1e4   : > { %v1033_v21 = vadd.f32 1e-05, %v1025_v16  ;;  %v744_v22 = vadd.f32 1e-05, %v736_v18 }
 0x1e5   : > { %v723_v28 = vpop.xlane.xlu1 %722  ;;  %v725_v29 = vpop.xlane.xlu0 %724 }
 0x1e6   : > { %4019 = vrsqrt.f32 %v1033_v21  ;;  %v737_v30 = vmul.f32 0.0078125, %v723_v28  ;;  %v738_v31 = vmul.f32 0.0078125, %v725_v29  ;;  %v4920_v28 = vld [vmem:[%s5686_s4] ss:$0 sm:$0xff] }
 0x1e7   : > { %4021 = vrsqrt.f32 %v744_v22 }
 0x1e8   : > { %v4014_v32 = vpop.eup %4013  ;;  %v745_v20 = vadd.f32 1e-05, %v737_v30  ;;  %v746_v35 = vadd.f32 1e-05, %v738_v31 }
 0x1e9   : > { %v727_v36 = vpop.xlane.xlu1 %726  ;;  %v1015_v38 = vpop.xlane.xlu0 %1014  ;;  %v1046_v25 = vmul.f32 %v4014_v32, %v4779_v33 }
 0x1ea   : > { %4023 = vrsqrt.f32 %v745_v20  ;;  %v739_v27 = vmul.f32 0.0078125, %v727_v36  ;;  %v1026_v39 = vmul.f32 0.0078125, %v1015_v38 }
 0x1eb   : > { %4025 = vrsqrt.f32 %v746_v35  ;;  %v1062_v3 = vmul.f32 %v4902_v45, %v1046_v25 }
 0x1ec   : > { %v4016_v46 = vpop.eup %4015  ;;  %v747_v52 = vadd.f32 1e-05, %v739_v27  ;;  %v1034_v53 = vadd.f32 1e-05, %v1026_v39 }
 0x1ed   : > { %v4018_v59 = vpop.eup %4017  ;;  %v1017_v60 = vpop.xlane.xlu1 %1016  ;;  %v1047_v63 = vmul.f32 %v4016_v46, %v4785_v40  ;;  %v1078_v15 = vadd.f32 %v4909_v5, %v1062_v3 }
 0x1ee   : > { %v1019_v62 = vpop.xlane.xlu0 %1018  ;;  %4027 = vrsqrt.f32 %v747_v52  ;;  %v1027_v33 = vmul.f32 0.0078125, %v1017_v60  ;;  %v1048_v6 = vmul.f32 %v4018_v59, %v4781_v34 }
 0x1ef   : > { %v1028_v4 = vmul.f32 0.0078125, %v1019_v62  ;;  %4029 = vrsqrt.f32 %v1034_v53  ;;  %v1063_v7 = vmul.f32 %v4902_v45, %v1047_v63 }
 0x1f0   : > { %v4020_v8 = vpop.eup %4019  ;;  %v1035_v9 = vadd.f32 1e-05, %v1027_v33  ;;  %v1064_v21 = vmul.f32 %v4902_v45, %v1048_v6 }
 0x1f1   : > { %v1036_v12 = vadd.f32 1e-05, %v1028_v4  ;;  %v4022_v13 = vpop.eup %4021  ;;  %v1021_v40 = vpop.xlane.xlu1 %1020  ;;  %v1079_v16 = vadd.f32 %v4909_v5, %v1063_v7  ;;  %v1049_v18 = vmul.f32 %v4020_v8, %v4789_v42 }
 0x1f2   : > { %v729_v14 = vpop.xlane.xlu0 %728  ;;  %4031 = vrsqrt.f32 %v1035_v9  ;;  %v1029_v22 = vmul.f32 0.0078125, %v1021_v40  ;;  %v760_v31 = vmul.f32 %v4022_v13, %v4795_v49  ;;  %v1080_v25 = vadd.f32 %v4909_v5, %v1064_v21  ;;  %v4931_v49 = vld [vmem:[%s5687_s5] ss:$0 sm:$0xff] }
 0x1f3   : > { %v740_v34 = vmul.f32 0.0078125, %v729_v14  ;;  %4033 = vrsqrt.f32 %v1036_v12  ;;  %v1086_v29 = vpack.c.bf16 %v1079_v16, %v1078_v15  ;;  %v1065_v30 = vmul.f32 %v4902_v45, %v1049_v18 }
 0x1f4   : > { %v4024_v32 = vpop.eup %4023  ;;  %v1037_v20 = vadd.f32 1e-05, %v1029_v22  ;;  %v775_v46 = vmul.f32 %v4920_v28, %v760_v31 }
 0x1f5   : > { %v748_v35 = vadd.f32 1e-05, %v740_v34  ;;  %v4026_v42 = vpop.eup %4025  ;;  %v731_v36 = vpop.xlane.xlu1 %730  ;;  %3623 = vmatprep.mubr.bf16.mxu1 %v1086_v29  ;;  %v1081_v27 = vadd.f32 %v4909_v5, %v1065_v30  ;;  %v761_v39 = vmul.f32 %v4024_v32, %v4797_v50 }
 0x1f6   : > { %v733_v38 = vpop.xlane.xlu0 %732  ;;  %4035 = vrsqrt.f32 %v1037_v20  ;;  %v741_v52 = vmul.f32 0.0078125, %v731_v36  ;;  %v762_v59 = vmul.f32 %v4026_v42, %v4803_v57  ;;  %v790_v7 = vadd.f32 %v4931_v49, %v775_v46 }
 0x1f7   : > { %v742_v53 = vmul.f32 0.0078125, %v733_v38  ;;  %4037 = vrsqrt.f32 %v748_v35  ;;  %v1087_v60 = vpack.c.bf16 %v1081_v27, %v1080_v25  ;;  %v776_v62 = vmul.f32 %v4920_v28, %v761_v39 }
 0x1f8   : > { %v4028_v63 = vpop.eup %4027  ;;  %v749_v3 = vadd.f32 1e-05, %v741_v52  ;;  %v777_v12 = vmul.f32 %v4920_v28, %v762_v59 }
 0x1f9   : > { %v750_v33 = vadd.f32 1e-05, %v742_v53  ;;  %v4030_v50 = vpop.eup %4029  ;;  %v735_v4 = vpop.xlane.xlu1 %734  ;;  %3624 = vmatmul.mubr.bf16.vlgmr.msra.gmra.mrb[0].mxu1 %v1087_v60  ;;  %v791_v8 = vadd.f32 %v4931_v49, %v776_v62  ;;  %v763_v9 = vmul.f32 %v4028_v63, %v4805_v58 }
 0x1fa   : > { %v1249_v6 = vpop.xlane.xlu0 %1248  ;;  %4039 = vrsqrt.f32 %v749_v3  ;;  %v743_v57 = vmul.f32 0.0078125, %v735_v4  ;;  %v1050_v15 = vmul.f32 %v4030_v50, %v4813_v1  ;;  %v792_v29 = vadd.f32 %v4931_v49, %v777_v12 }
 0x1fb   : > { %v1264_v13 = vmul.f32 0.0078125, %v1249_v6  ;;  %4041 = vrsqrt.f32 %v750_v33  ;;  %v798_v40 = vpack.c.bf16 %v791_v8, %v790_v7  ;;  %v778_v14 = vmul.f32 %v4920_v28, %v763_v9 }
 0x1fc   : > { %v4032_v16 = vpop.eup %4031  ;;  %v751_v18 = vadd.f32 1e-05, %v743_v57  ;;  %v1066_v32 = vmul.f32 %v4902_v45, %v1050_v15 }
 0x1fd   : > { %v4943_v21 = vsub.f32 %v3438_v26, %v1264_v13  ;;  %v4034_v22 = vpop.eup %4033  ;;  %v1251_v34 = vpop.xlane.xlu1 %1250  ;;  %3599 = vmatprep.mubr.bf16.mxu0 %v798_v40  ;;  %v793_v30 = vadd.f32 %v4931_v49, %v778_v14  ;;  %v1051_v31 = vmul.f32 %v4032_v16, %v4817_v2 }
 0x1fe   : > { %v1253_v58 = vpop.xlane.xlu0 %1252  ;;  %4043 = vrsqrt.f32 %v751_v18  ;;  %v1265_v1 = vmul.f32 0.0078125, %v1251_v34  ;;  %v1052_v36 = vmul.f32 %v4034_v22, %v4825_v10  ;;  %v1082_v46 = vadd.f32 %v4909_v5, %v1066_v32  ;;  %v3999_v32 = vld [vmem:[#allocation9 + $0x90] sm:$0xff]  }
 0x1ff   : > { %v1266_v20 = vmul.f32 0.0078125, %v1253_v58  ;;  %v1280_v35 = vmul.f32 %v4943_v21, %v4943_v21  ;;  %v799_v26 = vpack.c.bf16 %v793_v30, %v792_v29  ;;  %v1067_v42 = vmul.f32 %v4902_v45, %v1051_v31  ;;  %v3998_v31 = vld [vmem:[#allocation9 + $0x88] sm:$0xff]  }
 0x200   : > { %v4036_v38 = vpop.eup %4035  ;;  %v4955_v25 = vsub.f32 %v3439_v43, %v1265_v1  ;;  %v1068_v59 = vmul.f32 %v4902_v45, %v1052_v36  ;;  %v4001_v1 = vld [vmem:[#allocation9 + $0xa0] sm:$0xff]  }
 0x201   : > { %1288 = vadd.xlane.f32.xlu0 %v1280_v35  ;;  %v4959_v2 = vsub.f32 %v3442_v44, %v1266_v20  ;;  %v4038_v27 = vpop.eup %4037  ;;  %v1255_v39 = vpop.xlane.xlu1 %1254  ;;  %3600 = vmatmul.mubr.bf16.vlgmr.msra.gmra.mrb[0].mxu0 %v799_v26  ;;  %v1083_v52 = vadd.f32 %v4909_v5, %v1067_v42  ;;  %v1053_v10 = vmul.f32 %v4036_v38, %v4829_v11  ;;  %v4004_v20 = vld [vmem:[#allocation9 + $0xb8] sm:$0xff]  }
 0x202   : > { %v1257_v53 = vpop.xlane.xlu0 %1256  ;;  %v1267_v60 = vmul.f32 0.0078125, %v1255_v39  ;;  %v1281_v37 = vmul.f32 %v4955_v25, %v4955_v25  ;;  %3632 = vmatpush3.bf16.msra.mxu0 %v4895_v0  ;;  %v764_v3 = vmul.f32 %v4038_v27, %v4837_v19  ;;  %v1084_v0 = vadd.f32 %v4909_v5, %v1068_v59 }
 0x203   : > { %v1282_v43 = vmul.f32 %v4959_v2, %v4959_v2  ;;  %v1268_v44 = vmul.f32 0.0078125, %v1257_v53  ;;  %v1088_v62 = vpack.c.bf16 %v1083_v52, %v1082_v46  ;;  %v1069_v63 = vmul.f32 %v4902_v45, %v1053_v10  ;;  %3633 = vmatprep.subr.bf16.mxu0 %v3998_v31 }
 0x204   : > { %v4040_v33 = vpop.eup %4039  ;;  %1290 = vadd.xlane.f32.xlu1 %v1281_v37  ;;  %v4974_v11 = vsub.f32 %v3443_v48, %v1267_v60  ;;  %v779_v7 = vmul.f32 %v4920_v28, %v764_v3  ;;  %v3341_v3 = vld [vmem:[%s5686_s4 + $0x2] ss:$0 sm:$0xff] }
 0x205   : > { %1292 = vadd.xlane.f32.xlu0 %v1282_v43  ;;  %v4978_v50 = vsub.f32 %v3446_v51, %v1268_v44  ;;  %v4042_v4 = vpop.eup %4041  ;;  %3627 = vmatprep.mubr.bf16.mxu1 %v1088_v62  ;;  %v1259_v6 = vpop.xlane.xlu1 %1258  ;;  %v1085_v45 = vadd.f32 %v4909_v5, %v1069_v63  ;;  %v765_v19 = vmul.f32 %v4040_v33, %v4841_v17 }
 0x206   : > { %v1261_v8 = vpop.xlane.xlu0 %1260  ;;  %v1283_v41 = vmul.f32 %v4974_v11, %v4974_v11  ;;  %v1269_v48 = vmul.f32 0.0078125, %v1259_v6  ;;  %v766_v12 = vmul.f32 %v4042_v4, %v4849_v23  ;;  %v794_v40 = vadd.f32 %v4931_v49, %v779_v7  ;;  %3634 = vmatpush3.bf16.msra.mxu0 %v3998_v31 }
 0x207   : > { %v1089_v9 = vpack.c.bf16 %v1085_v45, %v1084_v0  ;;  %v780_v51 = vmul.f32 %v4920_v28, %v765_v19  ;;  %v1284_v13 = vmul.f32 %v4978_v50, %v4978_v50  ;;  %v1270_v5 = vmul.f32 0.0078125, %v1261_v8  ;;  %3635 = vmatprep.subr.bf16.mxu0 %v3999_v32 }
 0x208   : > { %v4044_v57 = vpop.eup %4043  ;;  %1294 = vadd.xlane.f32.xlu1 %v1283_v41  ;;  %v4992_v17 = vsub.f32 %v3447_v55, %v1269_v48  ;;  %v781_v23 = vmul.f32 %v4920_v28, %v766_v12 }
 0x209   : > { %3628 = vmatmul.mubr.bf16.gmra.mrb[4].mxu1 %v1089_v9  ;;  %v795_v14 = vadd.f32 %v4931_v49, %v780_v51  ;;  %v1263_v15 = vpop.xlane.xlu1 %1262  ;;  %v767_v16 = vmul.f32 %v4044_v57, %v4853_v24  ;;  %v5003_v55 = vsub.f32 %v3450_v56, %v1270_v5 }
 0x20a   : > { %v1285_v34 = vmul.f32 %v4992_v17, %v4992_v17  ;;  %v1271_v47 = vmul.f32 0.0078125, %v1263_v15  ;;  %v796_v58 = vadd.f32 %v4931_v49, %v781_v23  ;;  %3636 = vmatpush3.bf16.msra.mxu0 %v3999_v32 }
 0x20b   : > { %v800_v18 = vpack.c.bf16 %v795_v14, %v794_v40  ;;  %v782_v22 = vmul.f32 %v4920_v28, %v767_v16  ;;  %v1286_v30 = vmul.f32 %v5003_v55, %v5003_v55 }
 0x20c   : > { %1296 = vadd.xlane.f32.xlu1 %v1284_v13  ;;  %v5011_v28 = vsub.f32 %v3451_v61, %v1271_v47  ;;  %v4003_v61 = vld [vmem:[#allocation9 + $0xb0] sm:$0xff]  }
 0x20d   : > { %3603 = vmatprep.mubr.bf16.mxu0 %v800_v18  ;;  %v797_v29 = vadd.f32 %v4931_v49, %v782_v22  ;;  %v4000_v49 = vld [vmem:[#allocation9 + $0x98] sm:$0xff]  }
 0x20e   : > { %v1287_v56 = vmul.f32 %v5011_v28, %v5011_v28  ;;  %3637 = vmatprep.subr.bf16.mxu0 %v4000_v49 }
 0x20f   : > { %v801_v24 = vpack.c.bf16 %v797_v29, %v796_v58  ;;  %3638 = vmatpush3.bf16.msra.mxu0 %v4000_v49 }
 0x210   : > { %1298 = vadd.xlane.f32.xlu1 %v1285_v34  ;;  %3639 = vmatprep.subr.bf16.mxu0 %v4001_v1 }
 0x211   : > { %3604 = vmatmul.mubr.bf16.gmra.mrb[4].mxu0 %v801_v24 }
 0x213   : > { %3640 = vmatpush3.bf16.msra.mxu0 %v4001_v1 }
 0x214   : > { %1300 = vadd.xlane.f32.xlu1 %v1286_v30  ;;  %3641 = vmatprep.subr.bf16.mxu0 %v4002_v54 }
 0x217   : > { %3642 = vmatpush3.bf16.msra.mxu0 %v4002_v54 }
 0x218   : > { %1302 = vadd.xlane.f32.xlu1 %v1287_v56  ;;  %3643 = vmatprep.subr.bf16.mxu0 %v4003_v61 }
 0x21b   : > { %3644 = vmatpush3.bf16.msra.mxu0 %v4003_v61 }
 0x21c   : > { %3645 = vmatprep.subr.bf16.mxu0 %v4004_v20 }
 0x21f   : > { %3646 = vmatpush3.bf16.msra.mxu0 %v4004_v20 }
 0x28e   : > { %v1289_v35 = vpop.xlane.xlu0 %1288 }
 0x28f   : > { %v1304_v26 = vmul.f32 0.0078125, %v1289_v35 }
 0x291   : > { %v1312_v42 = vadd.f32 1e-05, %v1304_v26  ;;  %v1291_v36 = vpop.xlane.xlu1 %1290 }
 0x292   : > { %v1293_v38 = vpop.xlane.xlu0 %1292  ;;  %v1305_v27 = vmul.f32 0.0078125, %v1291_v36 }
 0x293   : > { %4045 = vrsqrt.f32 %v1312_v42  ;;  %v1306_v39 = vmul.f32 0.0078125, %v1293_v38 }
 0x294   : > { %v1313_v46 = vadd.f32 1e-05, %v1305_v27 }
 0x295   : > { %v1314_v52 = vadd.f32 1e-05, %v1306_v39  ;;  %v1295_v53 = vpop.xlane.xlu1 %1294 }
 0x296   : > { %4047 = vrsqrt.f32 %v1313_v46  ;;  %v1307_v10 = vmul.f32 0.0078125, %v1295_v53  ;;  %v3317_v53 = vld [vmem:[%s5737_s10] ss:$0 sm:$0xff] }
 0x297   : > { %4049 = vrsqrt.f32 %v1314_v52 }
 0x298   : > { %v1315_v59 = vadd.f32 1e-05, %v1307_v10 }
 0x299   : > { %v1297_v60 = vpop.xlane.xlu1 %1296 }
 0x29a   : > { %4051 = vrsqrt.f32 %v1315_v59  ;;  %v1308_v37 = vmul.f32 0.0078125, %v1297_v60 }
 0x29c   : > { %v1316_v44 = vadd.f32 1e-05, %v1308_v37 }
 0x29d   : > { %v4046_v43 = vpop.eup %4045  ;;  %v1299_v62 = vpop.xlane.xlu1 %1298 }
 0x29e   : > { %v1328_v63 = vmul.f32 %v4046_v43, %v4943_v21  ;;  %4053 = vrsqrt.f32 %v1316_v44  ;;  %v1309_v33 = vmul.f32 0.0078125, %v1299_v62  ;;  %v3343_v21 = vld [vmem:[%s5687_s5 + $0x2] ss:$0 sm:$0xff] }
 0x2a0   : > { %v4048_v4 = vpop.eup %4047  ;;  %v1317_v6 = vadd.f32 1e-05, %v1309_v33  ;;  %v1344_v7 = vmul.f32 %v3341_v3, %v1328_v63 }
 0x2a1   : > { %v4050_v0 = vpop.eup %4049  ;;  %v1301_v45 = vpop.xlane.xlu1 %1300  ;;  %v1329_v19 = vmul.f32 %v4048_v4, %v4955_v25 }
 0x2a2   : > { %v1330_v8 = vmul.f32 %v4050_v0, %v4959_v2  ;;  %4055 = vrsqrt.f32 %v1317_v6  ;;  %v1310_v41 = vmul.f32 0.0078125, %v1301_v45  ;;  %v1360_v5 = vadd.f32 %v3343_v21, %v1344_v7 }
 0x2a3   : > { %v1345_v48 = vmul.f32 %v3341_v3, %v1329_v19 }
 0x2a4   : > { %v4052_v9 = vpop.eup %4051  ;;  %v1318_v51 = vadd.f32 1e-05, %v1310_v41  ;;  %v1346_v12 = vmul.f32 %v3341_v3, %v1330_v8 }
 0x2a5   : > { %v1331_v57 = vmul.f32 %v4052_v9, %v4974_v11  ;;  %v1303_v13 = vpop.xlane.xlu1 %1302  ;;  %v1361_v40 = vadd.f32 %v3343_v21, %v1345_v48 }
 0x2a6   : > { %4057 = vrsqrt.f32 %v1318_v51  ;;  %v1311_v25 = vmul.f32 0.0078125, %v1303_v13  ;;  %v1362_v23 = vadd.f32 %v3343_v21, %v1346_v12 }
 0x2a7   : > { %v1347_v14 = vmul.f32 %v3341_v3, %v1331_v57  ;;  %v1368_v15 = vpack.c.bf16 %v1361_v40, %v1360_v5 }
 0x2a8   : > { %v4054_v2 = vpop.eup %4053  ;;  %v1319_v16 = vadd.f32 1e-05, %v1311_v25 }
 0x2a9   : > { %3647 = vmatprep.mubr.bf16.mxu0 %v1368_v15  ;;  %v1363_v18 = vadd.f32 %v3343_v21, %v1347_v14  ;;  %v1332_v22 = vmul.f32 %v4054_v2, %v4978_v50 }
 0x2aa   : > { %4059 = vrsqrt.f32 %v1319_v16 }
 0x2ab   : > { %v1369_v34 = vpack.c.bf16 %v1363_v18, %v1362_v23  ;;  %v1348_v58 = vmul.f32 %v3341_v3, %v1332_v22 }
 0x2ac   : > { %v4056_v47 = vpop.eup %4055 }
 0x2ad   : > { %3648 = vmatmul.mubr.bf16.vlgmr.msra.gmra.mrb[8].mxu0 %v1369_v34  ;;  %v1333_v11 = vmul.f32 %v4056_v47, %v4992_v17  ;;  %v1364_v30 = vadd.f32 %v3343_v21, %v1348_v58  ;;  %v3331_v17 = vld [vmem:[%s5737_s10 + $0x1] ss:$0 sm:$0xff] }
 0x2af   : > { %v1349_v29 = vmul.f32 %v3341_v3, %v1333_v11 }
 0x2b0   : > { %v4058_v24 = vpop.eup %4057 }
 0x2b1   : > { %v1365_v31 = vadd.f32 %v3343_v21, %v1349_v29  ;;  %v1334_v56 = vmul.f32 %v4058_v24, %v5003_v55 }
 0x2b3   : > { %v1370_v32 = vpack.c.bf16 %v1365_v31, %v1364_v30  ;;  %v1350_v54 = vmul.f32 %v3341_v3, %v1334_v56 }
 0x2b4   : > { %v4060_v49 = vpop.eup %4059 }
 0x2b5   : > { %3651 = vmatprep.mubr.bf16.mxu0 %v1370_v32  ;;  %v1335_v1 = vmul.f32 %v4060_v49, %v5011_v28  ;;  %v1366_v61 = vadd.f32 %v3343_v21, %v1350_v54 }
 0x2b7   : > { %v1351_v50 = vmul.f32 %v3341_v3, %v1335_v1 }
 0x2b9   : > { %v1367_v20 = vadd.f32 %v3343_v21, %v1351_v50 }
 0x2bb   : > { %v1371_v35 = vpack.c.bf16 %v1367_v20, %v1366_v61 }
 0x2bd   : > { %3652 = vmatmul.mubr.bf16.gmra.mrb[12].mxu0 %v1371_v35 }
 0x2cc   : > { %v3625_v26 = vpop.f32.mrb[0].mxu1 }
 0x2cd   : > { %v1197_v42 = vpop.f32.mrb[1].mxu1  ;;  %v1206_v38 = vadd.f32 %v3625_v26, %v3331_v17 }
 0x2ce   : > { %v3626_v36 = vpop.f32.mrb[2].mxu1  ;;  %v1198_v39 = vadd.f32 %v3331_v17, %v1197_v42 }
 0x2cf   : > { %v1209_v55 = vadd.f32 %v3626_v36, %v3331_v17  ;;  %v1200_v27 = vpop.f32.mrb[3].mxu1 }
 0x2d0   : > { %v1201_v46 = vadd.f32 %v3331_v17, %v1200_v27 }
 0x2d1   : > { %v5032_v52 = vpack.c.bf16 %v1209_v55, %v1206_v38 }
 0x2d2   : > { %v5034_v28 = vpack.c.bf16 %v1201_v46, %v1198_v39 }
 0x2d3   : > { %v1679_v24 = vsel %vm1610_vm0, %v5032_v52, 0 }
 0x2d4   : > { %v3601_v10 = vpop.f32.mrb[0].mxu0  ;;  %3803 = vmatprep.subr.msk.bf16.mxu1 %vm1610_vm0, %v5034_v28  ;;  %1546 = vrot.lane.b32.xlu0 %v5034_v28, %s4398_s11  ;;  %v1618_v59 = vsel %vm1610_vm0, %v5034_v28, 0 }
 0x2d5   : > { %v916_v60 = vadd.f32 %v3601_v10, %v3317_v53  ;;  %v907_v37 = vpop.f32.mrb[1].mxu0  ;;  %3656 = vmatpush3.bf16.xpose.msra.mxu1 %v1618_v59 }
 0x2d6   : > { %v908_v43 = vadd.f32 %v3317_v53, %v907_v37  ;;  %v3602_v44 = vpop.f32.mrb[2].mxu0 }
 0x2d7   : > { %v919_v62 = vadd.f32 %v3602_v44, %v3317_v53  ;;  %v910_v63 = vpop.f32.mrb[3].mxu0  ;;  %v940_v33 = vmul.f32 0.17677669, %v916_v60 }
 0x2d8   : > { %v911_v3 = vadd.f32 %v3317_v53, %v910_v63  ;;  %v938_v6 = vmul.f32 0.17677669, %v908_v43 }
 0x2d9   : > { %v941_v4 = vmul.f32 0.17677669, %v919_v62 }
 0x2da   : > { %v939_v0 = vmul.f32 0.17677669, %v911_v3  ;;  %v4401_v3 = vmov 0.0  }
 0x2db   : > { %v947_v45 = vpack.c.bf16 %v941_v4, %v940_v33  ;;  %v3345_v4 = vld [vmem:[%s5737_s10 + $0x2] ss:$0 sm:$0xff] }
 0x2dc   : > { %v946_v19 = vpack.c.bf16 %v939_v0, %v938_v6  ;;  %v3629_v7 = vpop.f32.mrb[4].mxu1 }
 0x2dd   : > { %v1213_v8 = vpop.f32.mrb[5].mxu1  ;;  %v1222_v21 = vadd.f32 %v3629_v7, %v3331_v17 }
 0x2de   : > { %v3630_v41 = vpop.f32.mrb[6].mxu1  ;;  %3659 = vmatprep.mubr.msk.bf16.mxu1 %vm1610_vm0, %v946_v19  ;;  %1518 = vrot.lane.b32.xlu0 %v946_v19, %s4398_s11  ;;  %v1214_v51 = vadd.f32 %v3331_v17, %v1213_v8 }
 0x2df   : > { %v1225_v48 = vadd.f32 %v3630_v41, %v3331_v17  ;;  %v1216_v9 = vpop.f32.mrb[7].mxu1 }
 0x2e0   : > { %v1217_v12 = vadd.f32 %v3331_v17, %v1216_v9 }
 0x2e1   : > { %v1231_v57 = vpack.c.bf16 %v1225_v48, %v1222_v21 }
 0x2e2   : > { %v1230_v13 = vpack.c.bf16 %v1217_v12, %v1214_v51  ;;  %1550 = vrot.lane.b32.xlu0 %v5032_v52, %s4398_s11 }
 0x2e3   : > { %v1682_v30 = vsel %vm1610_vm0, %v1231_v57, 0 }
 0x2e4   : > { %v3605_v5 = vpop.f32.mrb[4].mxu0  ;;  %3804 = vmatprep.subr.msk.bf16.mxu1 %vm1610_vm0, %v1230_v13  ;;  %1548 = vrot.lane.b32.xlu1 %v1230_v13, %s4398_s11  ;;  %v1621_v40 = vsel %vm1610_vm0, %v1230_v13, 0 }
 0x2e5   : > { %v932_v25 = vadd.f32 %v3605_v5, %v3317_v53  ;;  %v923_v14 = vpop.f32.mrb[5].mxu0  ;;  %3658 = vmatpush3.bf16.xpose.msra.mxu1 %v1621_v40 }
 0x2e6   : > { %v924_v15 = vadd.f32 %v3317_v53, %v923_v14  ;;  %v3606_v2 = vpop.f32.mrb[6].mxu0  ;;  %3805 = vmatprep.subr.msk.bf16.mxu1 %vm1610_vm0, %v5032_v52 }
 0x2e7   : > { %v935_v16 = vadd.f32 %v3606_v2, %v3317_v53  ;;  %v926_v23 = vpop.f32.mrb[7].mxu0  ;;  %v944_v22 = vmul.f32 0.17677669, %v932_v25 }
 0x2e8   : > { %v927_v18 = vadd.f32 %v3317_v53, %v926_v23  ;;  %1552 = vrot.lane.b32.xlu1 %v1231_v57, %s4398_s11  ;;  %v942_v47 = vmul.f32 0.17677669, %v924_v15 }
 0x2e9   : > { %v945_v34 = vmul.f32 0.17677669, %v935_v16 }
 0x2ea   : > { %v943_v11 = vmul.f32 0.17677669, %v927_v18 }
 0x2eb   : > { %v949_v58 = vpack.c.bf16 %v945_v34, %v944_v22 }
 0x2ec   : > { %v948_v29 = vpack.c.bf16 %v943_v11, %v942_v47  ;;  %1522 = vrot.lane.b32.xlu1 %v947_v45, %s4398_s11 }
 0x2ee   : > { %3660 = vmatmul.mubr.msk.bf16.vlgmr.msra.gmra.mrb[8].mxu1 %vm1610_vm0, %v948_v29  ;;  %1520 = vrot.lane.b32.xlu0 %v948_v29, %s4398_s11 }
 0x2ef   : > { %3664 = vmatpush3.bf16.xpose.msra.mxu1 %v1679_v24  ;;  %3667 = vmatprep.mubr.msk.bf16.mxu1 %vm1610_vm0, %v947_v45 }
 0x2f0   : > { %3806 = vmatprep.subr.msk.bf16.mxu1 %vm1610_vm0, %v1231_v57  ;;  %1524 = vrot.lane.b32.xlu1 %v949_v58, %s4398_s11 }
 0x2f2   : > { %1554 = vrot.lane.b32.xlu0 %v5034_v28, %s4399_s21 }
 0x2f4   : > { %1560 = vrot.lane.b32.xlu1 %v1231_v57, %s4399_s21 }
 0x2f6   : > { %1558 = vrot.lane.b32.xlu0 %v5032_v52, %s4399_s21 }
 0x2f7   : > { %3666 = vmatpush3.bf16.xpose.msra.mxu1 %v1682_v30 }
 0x2f8   : > { %1562 = vrot.lane.b32.xlu1 %v5034_v28, %s4400_s28 }
 0x2fa   : > { %1556 = vrot.lane.b32.xlu0 %v1230_v13, %s4399_s21 }
 0x2fc   : > { %1530 = vrot.lane.b32.xlu1 %v947_v45, %s4399_s21 }
 0x2fe   : > { %3668 = vmatmul.mubr.msk.bf16.vlgmr.msra.gmra.mrb[12].mxu1 %vm1610_vm0, %v949_v58  ;;  %1526 = vrot.lane.b32.xlu0 %v946_v19, %s4399_s21 }
 0x300   : > { %1532 = vrot.lane.b32.xlu1 %v949_v58, %s4399_s21 }
 0x302   : > { %1528 = vrot.lane.b32.xlu0 %v948_v29, %s4399_s21 }
 0x304   : > { %1568 = vrot.lane.b32.xlu1 %v1231_v57, %s4400_s28 }
 0x306   : > { %1566 = vrot.lane.b32.xlu0 %v5032_v52, %s4400_s28 }
 0x308   : > { %1536 = vrot.lane.b32.xlu1 %v948_v29, %s4400_s28 }
 0x30a   : > { %1564 = vrot.lane.b32.xlu0 %v1230_v13, %s4400_s28 }
 0x30c   : > { %1540 = vrot.lane.b32.xlu1 %v949_v58, %s4400_s28 }
 0x30e   : > { %1534 = vrot.lane.b32.xlu0 %v946_v19, %s4400_s28 }
 0x312   : > { %1538 = vrot.lane.b32.xlu0 %v947_v45, %s4400_s28 }
 0x346   : > { %v1547_v31 = vpop.permute.xlu0 %1546 }
 0x347   : > { %3807 = vmatprep.subr.msk.bf16.mxu1 %vm1610_vm0, %v1547_v31  ;;  %v1740_v56 = vsel %vm1610_vm0, %v1547_v31, 0 }
 0x348   : > { %3672 = vmatpush3.bf16.xpose.msra.mxu1 %v1740_v56 }
 0x350   : > { %v1519_v32 = vpop.permute.xlu0 %1518 }
 0x351   : > { %3675 = vmatprep.mubr.msk.bf16.mxu1 %vm1610_vm0, %v1519_v32 }
 0x354   : > { %v1551_v54 = vpop.permute.xlu0 %1550 }
 0x355   : > { %v1801_v35 = vsel %vm1610_vm0, %v1551_v54, 0 }
 0x356   : > { %v1549_v49 = vpop.permute.xlu1 %1548 }
 0x357   : > { %3808 = vmatprep.subr.msk.bf16.mxu1 %vm1610_vm0, %v1549_v49  ;;  %v1743_v1 = vsel %vm1610_vm0, %v1549_v49, 0 }
 0x358   : > { %3674 = vmatpush3.bf16.xpose.msra.mxu1 %v1743_v1 }
 0x359   : > { %3809 = vmatprep.subr.msk.bf16.mxu1 %vm1610_vm0, %v1551_v54 }
 0x35a   : > { %v1553_v50 = vpop.permute.xlu1 %1552 }
 0x35b   : > { %v1804_v55 = vsel %vm1610_vm0, %v1553_v50, 0 }
 0x35e   : > { %v1523_v61 = vpop.permute.xlu1 %1522 }
 0x360   : > { %v1521_v20 = vpop.permute.xlu0 %1520 }
 0x361   : > { %3676 = vmatmul.mubr.msk.bf16.vlgmr.msra.gmra.mrb[16].mxu1 %vm1610_vm0, %v1521_v20 }
 0x362   : > { %3680 = vmatpush3.bf16.xpose.msra.mxu1 %v1801_v35  ;;  %v1525_v26 = vpop.permute.xlu1 %1524  ;;  %3683 = vmatprep.mubr.msk.bf16.mxu1 %vm1610_vm0, %v1523_v61 }
 0x363   : > { %3810 = vmatprep.subr.msk.bf16.mxu1 %vm1610_vm0, %v1553_v50 }
 0x364   : > { %v1555_v17 = vpop.permute.xlu0 %1554 }
 0x365   : > { %3811 = vmatprep.subr.msk.bf16.mxu0 %vm1610_vm0, %v1555_v17  ;;  %v1862_v42 = vsel %vm1610_vm0, %v1555_v17, 0 }
 0x366   : > { %v1561_v36 = vpop.permute.xlu1 %1560  ;;  %3688 = vmatpush3.bf16.xpose.msra.mxu0 %v1862_v42 }
 0x367   : > { %v1926_v43 = vsel %vm1610_vm0, %v1561_v36, 0 }
 0x368   : > { %v1559_v38 = vpop.permute.xlu0 %1558 }
 0x369   : > { %v1923_v28 = vsel %vm1610_vm0, %v1559_v38, 0 }
 0x36a   : > { %3682 = vmatpush3.bf16.xpose.msra.mxu1 %v1804_v55  ;;  %v1563_v27 = vpop.permute.xlu1 %1562 }
 0x36b   : > { %3813 = vmatprep.subr.msk.bf16.mxu1 %vm1610_vm0, %v1559_v38  ;;  %v1984_v59 = vsel %vm1610_vm0, %v1563_v27, 0 }
 0x36c   : > { %v1557_v39 = vpop.permute.xlu0 %1556 }
 0x36d   : > { %v1865_v46 = vsel %vm1610_vm0, %v1557_v39, 0  ;;  %3812 = vmatprep.subr.msk.bf16.mxu0 %vm1610_vm0, %v1557_v39 }
 0x36e   : > { %3690 = vmatpush3.bf16.xpose.msra.mxu0 %v1865_v46  ;;  %v1531_v53 = vpop.permute.xlu1 %1530 }
 0x36f   : > { %3815 = vmatprep.subr.msk.bf16.mxu0 %vm1610_vm0, %v1563_v27 }
 0x370   : > { %v1527_v52 = vpop.permute.xlu0 %1526 }
 0x371   : > { %3684 = vmatmul.mubr.msk.bf16.vlgmr.msra.gmra.mrb[20].mxu1 %vm1610_vm0, %v1525_v26  ;;  %3691 = vmatprep.mubr.msk.bf16.mxu0 %vm1610_vm0, %v1527_v52 }
 0x372   : > { %3696 = vmatpush3.bf16.xpose.msra.mxu1 %v1923_v28  ;;  %3699 = vmatprep.mubr.msk.bf16.mxu1 %vm1610_vm0, %v1531_v53  ;;  %v1533_v60 = vpop.permute.xlu1 %1532 }
 0x373   : > { %3814 = vmatprep.subr.msk.bf16.mxu1 %vm1610_vm0, %v1561_v36 }
 0x374   : > { %v1529_v10 = vpop.permute.xlu0 %1528 }
 0x375   : > { %3692 = vmatmul.mubr.msk.bf16.vlgmr.msra.gmra.mrb[16].mxu0 %vm1610_vm0, %v1529_v10 }
 0x376   : > { %3704 = vmatpush3.bf16.xpose.msra.mxu0 %v1984_v59  ;;  %v1569_v63 = vpop.permute.xlu1 %1568 }
 0x377   : > { %v2048_v13 = vsel %vm1610_vm0, %v1569_v63, 0 }
 0x378   : > { %v1567_v37 = vpop.permute.xlu0 %1566 }
 0x379   : > { %v2045_v0 = vsel %vm1610_vm0, %v1567_v37, 0 }
 0x37a   : > { %3698 = vmatpush3.bf16.xpose.msra.mxu1 %v1926_v43  ;;  %v1537_v21 = vpop.permute.xlu1 %1536 }
 0x37b   : > { %3817 = vmatprep.subr.msk.bf16.mxu1 %vm1610_vm0, %v1567_v37 }
 0x37c   : > { %v1565_v44 = vpop.permute.xlu0 %1564 }
 0x37d   : > { %v1987_v62 = vsel %vm1610_vm0, %v1565_v44, 0  ;;  %3816 = vmatprep.subr.msk.bf16.mxu0 %vm1610_vm0, %v1565_v44 }
 0x37e   : > { %3706 = vmatpush3.bf16.xpose.msra.mxu0 %v1987_v62  ;;  %v1541_v5 = vpop.permute.xlu1 %1540 }
 0x37f   : > { %3719 = vmatprep.subr.bf16.mxu0 %v4401_v3 }
 0x380   : > { %v3649_v33 = vpop.f32.mrb[8].mxu0  ;;  %v1535_v6 = vpop.permute.xlu0 %1534 }
 0x381   : > { %3700 = vmatmul.mubr.msk.bf16.vlgmr.msra.gmra.mrb[24].mxu1 %vm1610_vm0, %v1533_v60  ;;  %v1479_v45 = vpop.f32.mrb[9].mxu0  ;;  %3707 = vmatprep.mubr.msk.bf16.mxu0 %vm1610_vm0, %v1535_v6  ;;  %v1488_v7 = vadd.f32 %v3649_v33, %v3345_v4 }
 0x382   : > { %3712 = vmatpush3.bf16.xpose.msra.mxu1 %v2045_v0  ;;  %v3650_v19 = vpop.f32.mrb[10].mxu0  ;;  %v1480_v48 = vadd.f32 %v3345_v4, %v1479_v45 }
 0x383   : > { %v1491_v8 = vadd.f32 %v3650_v19, %v3345_v4  ;;  %3818 = vmatprep.subr.msk.bf16.mxu1 %vm1610_vm0, %v1569_v63  ;;  %v1482_v41 = vpop.f32.mrb[11].mxu0 }
 0x384   : > { %v1483_v9 = vadd.f32 %v3345_v4, %v1482_v41  ;;  %v1539_v51 = vpop.permute.xlu0 %1538 }
 0x385   : > { %v5121_v12 = vpack.c.bf16 %v1491_v8, %v1488_v7  ;;  %3708 = vmatmul.mubr.msk.bf16.vlgmr.msra.gmra.mrb[20].mxu0 %vm1610_vm0, %v1537_v21  ;;  %3715 = vmatprep.mubr.msk.bf16.mxu1 %vm1610_vm0, %v1539_v51 }
 0x386   : > { %v5125_v57 = vpack.c.bf16 %v1483_v9, %v1480_v48  ;;  %3723 = vmatprep.mubr.msk.bf16.mxu0 %vm4402_vm1, %v4401_v3 }
 0x387   : > { %1578 = vrot.lane.b32.xlu1 %v5121_v12, %s4398_s11 }
 0x388   : > { %1574 = vrot.lane.b32.xlu0 %v5125_v57, %s4398_s11  ;;  %3720 = vmatpush3.bf16.msra.mxu0 %v5125_v57 }
 0x389   : > { %3721 = vmatprep.subr.bf16.mxu0 %v4401_v3 }
 0x38a   : > { %3714 = vmatpush3.bf16.xpose.msra.mxu1 %v2048_v13 }
 0x38b   : > { %1590 = vrot.lane.b32.xlu1 %v5121_v12, %s4399_s21  ;;  %3727 = vmatprep.subr.bf16.mxu1 %v4401_v3 }
 0x38c   : > { %1586 = vrot.lane.b32.xlu0 %v5125_v57, %s4399_s21 }
 0x390   : > { %v3653_v40 = vpop.f32.mrb[12].mxu0 }
 0x391   : > { %3716 = vmatmul.mubr.msk.bf16.vlgmr.msra.gmra.mrb[28].mxu1 %vm1610_vm0, %v1541_v5  ;;  %v1495_v25 = vpop.f32.mrb[13].mxu0  ;;  %v1504_v15 = vadd.f32 %v3653_v40, %v3345_v4 }
 0x392   : > { %3728 = vmatpush3.bf16.msra.mxu1 %v5121_v12  ;;  %v3654_v14 = vpop.f32.mrb[14].mxu0  ;;  %v1496_v23 = vadd.f32 %v3345_v4, %v1495_v25  ;;  %3731 = vmatprep.mubr.msk.bf16.mxu1 %vm4402_vm1, %v4401_v3 }
 0x393   : > { %v1507_v2 = vadd.f32 %v3654_v14, %v3345_v4  ;;  %v1498_v16 = vpop.f32.mrb[15].mxu0  ;;  %3729 = vmatprep.subr.bf16.mxu1 %v4401_v3 }
 0x394   : > { %v1499_v18 = vadd.f32 %v3345_v4, %v1498_v16 }
 0x395   : > { %v5142_v22 = vpack.c.bf16 %v1507_v2, %v1504_v15 }
 0x396   : > { %v5144_v34 = vpack.c.bf16 %v1499_v18, %v1496_v23 }
 0x397   : > { %1580 = vrot.lane.b32.xlu1 %v5142_v22, %s4398_s11  ;;  %3730 = vmatpush3.bf16.msra.mxu1 %v5142_v22 }
 0x398   : > { %1588 = vrot.lane.b32.xlu0 %v5144_v34, %s4399_s21  ;;  %3722 = vmatpush3.bf16.msra.mxu0 %v5144_v34 }
 0x399   : > { %3735 = vmatprep.subr.bf16.mxu0 %v4401_v3  ;;  %3743 = vmatprep.subr.bf16.mxu1 %v4401_v3 }
 0x39b   : > { %1592 = vrot.lane.b32.xlu1 %v5142_v22, %s4399_s21 }
 0x39f   : > { %1576 = vrot.lane.b32.xlu1 %v5144_v34, %s4398_s11 }
 0x3c1   : > { %v5158_v47 = vpop.f32.mrb[8].mxu1 }
 0x3c2   : > { %v5160_v11 = vpop.f32.mrb[9].mxu1  ;;  %v2105_v58 = vsel %vm1610_vm0, %v5158_v47, -inf }
 0x3c3   : > { %v5164_v29 = vpop.f32.mrb[10].mxu1  ;;  %2106 = vmax.xlane.f32.xlu0 %v2105_v58  ;;  %v2099_v31 = vsel %vm1610_vm0, %v5160_v11, -inf }
 0x3c4   : > { %v5166_v24 = vpop.f32.mrb[11].mxu1  ;;  %v2108_v56 = vsel %vm1610_vm0, %v5164_v29, -inf }
 0x3c5   : > { %v2102_v30 = vsel %vm1610_vm0, %v5166_v24, -inf }
 0x3c6   : > { %2103 = vmax.xlane.f32.xlu1 %v2102_v30 }
 0x3c7   : > { %2100 = vmax.xlane.f32.xlu0 %v2099_v31 }
 0x3cb   : > { %2109 = vmax.xlane.f32.xlu0 %v2108_v56 }
 0x3d1   : > { %v5174_v32 = vpop.f32.mrb[12].mxu1 }
 0x3d2   : > { %v5176_v49 = vpop.f32.mrb[13].mxu1  ;;  %v2117_v1 = vsel %vm1610_vm0, %v5174_v32, -inf }
 0x3d3   : > { %v5180_v54 = vpop.f32.mrb[14].mxu1  ;;  %2118 = vmax.xlane.f32.xlu0 %v2117_v1  ;;  %v2111_v20 = vsel %vm1610_vm0, %v5176_v49, -inf }
 0x3d4   : > { %v5182_v50 = vpop.f32.mrb[15].mxu1  ;;  %v2120_v61 = vsel %vm1610_vm0, %v5180_v54, -inf }
 0x3d5   : > { %2121 = vmax.xlane.f32.xlu1 %v2120_v61  ;;  %v2114_v35 = vsel %vm1610_vm0, %v5182_v50, -inf }
 0x3d7   : > { %2112 = vmax.xlane.f32.xlu0 %v2111_v20 }
 0x3d9   : > { %2115 = vmax.xlane.f32.xlu1 %v2114_v35 }
 0x3f9   : > { %v5202_v27 = vpop.permute.xlu1 %1578 }
 0x3fa   : > { %v5204_v39 = vpop.permute.xlu0 %1574 }
 0x3fd   : > { %v5212_v53 = vpop.permute.xlu1 %1590 }
 0x3fe   : > { %v5216_v59 = vpop.permute.xlu0 %1586 }
 0x409   : > { %v5226_v62 = vpop.permute.xlu1 %1580 }
 0x40a   : > { %v5232_v4 = vpop.permute.xlu0 %1588 }
 0x40d   : > { %v5238_v19 = vpop.permute.xlu1 %1592 }
 0x411   : > { %v5252_v13 = vpop.permute.xlu1 %1576 }
 0x434   : > { %v5190_v26 = vpop.f32.mrb[16].mxu1 }
 0x435   : > { %v5192_v17 = vpop.f32.mrb[17].mxu1  ;;  %v2129_v42 = vsel %vm1610_vm0, %v5190_v26, -inf }
 0x436   : > { %2130 = vmax.xlane.f32.xlu0 %v2129_v42  ;;  %v5196_v36 = vpop.f32.mrb[18].mxu1  ;;  %v2123_v6 = vsel %vm1610_vm0, %v5192_v17, -inf }
 0x437   : > { %v5198_v38 = vpop.f32.mrb[19].mxu1  ;;  %v2132_v55 = vsel %vm1610_vm0, %v5196_v36, -inf }
 0x438   : > { %2133 = vmax.xlane.f32.xlu1 %v2132_v55  ;;  %v2126_v0 = vsel %vm1610_vm0, %v5198_v38, -inf }
 0x444   : > { %v5206_v46 = vpop.f32.mrb[20].mxu1 }
 0x445   : > { %v5208_v52 = vpop.f32.mrb[21].mxu1  ;;  %v2141_v9 = vsel %vm1610_vm0, %v5206_v46, -inf }
 0x446   : > { %v5210_v28 = vpop.f32.mrb[22].mxu1  ;;  %v2135_v1 = vsel %vm1610_vm0, %v5208_v52, -inf }
 0x447   : > { %v5214_v10 = vpop.f32.mrb[23].mxu1  ;;  %v2144_v40 = vsel %vm1610_vm0, %v5210_v28, -inf }
 0x448   : > { %v5218_v60 = vpop.f32.mrb[16].mxu0 }
 0x449   : > { %v5220_v37 = vpop.f32.mrb[17].mxu0  ;;  %v2153_v43 = vsel %vm1610_vm0, %v5218_v60, -inf }
 0x44a   : > { %2154 = vmax.xlane.f32.xlu0 %v2153_v43  ;;  %v5224_v44 = vpop.f32.mrb[18].mxu0  ;;  %v2147_v7 = vsel %vm1610_vm0, %v5220_v37, -inf }
 0x44b   : > { %v5228_v63 = vpop.f32.mrb[19].mxu0  ;;  %v2156_v33 = vsel %vm1610_vm0, %v5224_v44, -inf }
 0x44c   : > { %2157 = vmax.xlane.f32.xlu1 %v2156_v33  ;;  %v2150_v8 = vsel %vm1610_vm0, %v5228_v63, -inf }
 0x44e   : > { %2124 = vmax.xlane.f32.xlu0 %v2123_v6 }
 0x450   : > { %2127 = vmax.xlane.f32.xlu1 %v2126_v0  ;;  %v2107_v45 = vpop.xlane.xlu0 %2106 }
 0x451   : > { %v2197_v25 = vsub.f32 %v5158_v47, %v2107_v45 }
 0x452   : > { %2148 = vmax.xlane.f32.xlu0 %v2147_v7 }
 0x453   : > { %v2104_v58 = vpop.xlane.xlu1 %2103  ;;  %v2231_v31 = vmul.f32 1.442695, %v2197_v25 }
 0x454   : > { %v5244_v41 = vpop.f32.mrb[24].mxu1  ;;  %2151 = vmax.xlane.f32.xlu1 %v2150_v8  ;;  %v2101_v21 = vpop.xlane.xlu0 %2100  ;;  %v2196_v61 = vsub.f32 %v5166_v24, %v2104_v58 }
 0x455   : > { %v5246_v48 = vpop.f32.mrb[25].mxu1  ;;  %v2195_v56 = vsub.f32 %v5160_v11, %v2101_v21  ;;  %4061 = vpow2.f32 %v2231_v31  ;;  %v2165_v33 = vsel %vm1610_vm0, %v5244_v41, -inf }
 0x456   : > { %v5250_v51 = vpop.f32.mrb[26].mxu1  ;;  %2142 = vmax.xlane.f32.xlu0 %v2141_v9  ;;  %v2229_v55 = vmul.f32 1.442695, %v2196_v61  ;;  %v2159_v7 = vsel %vm1610_vm0, %v5246_v48, -inf }
 0x457   : > { %v5254_v5 = vpop.f32.mrb[27].mxu1  ;;  %v2227_v35 = vmul.f32 1.442695, %v2195_v56  ;;  %v2168_v45 = vsel %vm1610_vm0, %v5250_v51, -inf }
 0x458   : > { %2145 = vmax.xlane.f32.xlu1 %v2144_v40  ;;  %v5259_v14 = vpop.f32.mrb[20].mxu0  ;;  %v2110_v15 = vpop.xlane.xlu0 %2109  ;;  %v2162_v21 = vsel %vm1610_vm0, %v5254_v5, -inf }
 0x459   : > { %v5261_v2 = vpop.f32.mrb[21].mxu0  ;;  %v2177_v16 = vsel %vm1610_vm0, %v5259_v14, -inf  ;;  %v2198_v23 = vsub.f32 %v5164_v29, %v2110_v15  ;;  %v2138_v29 = vsel %vm1610_vm0, %v5214_v10, -inf }
 0x45a   : > { %2178 = vmax.xlane.f32.xlu0 %v2177_v16  ;;  %v5266_v18 = vpop.f32.mrb[22].mxu0  ;;  %v2171_v42 = vsel %vm1610_vm0, %v5261_v2, -inf }
 0x45b   : > { %v5268_v30 = vpop.f32.mrb[23].mxu0  ;;  %v2180_v47 = vsel %vm1610_vm0, %v5266_v18, -inf  ;;  %v2233_v20 = vmul.f32 1.442695, %v2198_v23 }
 0x45c   : > { %2181 = vmax.xlane.f32.xlu1 %v2180_v47  ;;  %v2174_v11 = vsel %vm1610_vm0, %v5268_v30, -inf }
 0x45d   : > { %4063 = vpow2.f32 %v2233_v20 }
 0x45e   : > { %2136 = vmax.xlane.f32.xlu0 %v2135_v1  ;;  %4065 = vpow2.f32 %v2227_v35 }
 0x45f   : > { %4067 = vpow2.f32 %v2229_v55  ;;  %v5296_v8 = vpop.eup %4061 }
 0x460   : > { %2139 = vmax.xlane.f32.xlu1 %v2138_v29  ;;  %v2297_v40 = vsel %vm1610_vm0, %v5296_v8, 0.0  ;;  %v2119_v61 = vpop.xlane.xlu0 %2118 }
 0x461   : > { %v2201_v29 = vsub.f32 %v5174_v32, %v2119_v61 }
 0x462   : > { %2172 = vmax.xlane.f32.xlu0 %v2171_v42  ;;  %v2122_v20 = vpop.xlane.xlu1 %2121 }
 0x463   : > { %v2202_v42 = vsub.f32 %v5180_v54, %v2122_v20 }
 0x464   : > { %v5282_v43 = vpop.f32.mrb[28].mxu1  ;;  %2175 = vmax.xlane.f32.xlu1 %v2174_v11  ;;  %v2113_v35 = vpop.xlane.xlu0 %2112  ;;  %v2239_v11 = vmul.f32 1.442695, %v2201_v29 }
 0x465   : > { %v5284_v24 = vpop.f32.mrb[29].mxu1  ;;  %v2189_v47 = vsel %vm1610_vm0, %v5282_v43, -inf }
 0x466   : > { %v5288_v6 = vpop.f32.mrb[30].mxu1  ;;  %2166 = vmax.xlane.f32.xlu0 %v2165_v33  ;;  %v2183_v56 = vsel %vm1610_vm0, %v5284_v24, -inf  ;;  %v2116_v55 = vpop.xlane.xlu1 %2115  ;;  %v2241_v33 = vmul.f32 1.442695, %v2202_v42  ;;  %4069 = vpow2.f32 %v2239_v11 }
 0x467   : > { %v5290_v0 = vpop.f32.mrb[31].mxu1  ;;  %v5300_v9 = vpop.eup %4063  ;;  %v2192_v31 = vsel %vm1610_vm0, %v5288_v6, -inf }
 0x468   : > { %2169 = vmax.xlane.f32.xlu1 %v2168_v45  ;;  %v5304_v25 = vpop.eup %4065  ;;  %v2300_v15 = vsel %vm1610_vm0, %v5300_v9, 0.0  ;;  %v2186_v1 = vsel %vm1610_vm0, %v5290_v0, -inf  ;;  %4071 = vpow2.f32 %v2241_v33 }
 0x469   : > { %v5308_v16 = vpop.eup %4067  ;;  %v2291_v23 = vsel %vm1610_vm0, %v5304_v25, 0.0 }
 0x46a   : > { %2160 = vmax.xlane.f32.xlu0 %v2159_v7  ;;  %v2294_v58 = vsel %vm1610_vm0, %v5308_v16, 0.0 }
 0x46c   : > { %2163 = vmax.xlane.f32.xlu1 %v2162_v21 }
 0x46e   : > { %2298 = vadd.xlane.f32.xlu0 %v2297_v40 }
 0x470   : > { %2301 = vadd.xlane.f32.xlu1 %v2300_v15  ;;  %v5334_v21 = vpop.eup %4069 }
 0x471   : > { %v2309_v32 = vsel %vm1610_vm0, %v5334_v21, 0.0 }
 0x472   : > { %2292 = vadd.xlane.f32.xlu0 %v2291_v23  ;;  %v5336_v40 = vpop.eup %4071 }
 0x474   : > { %2295 = vadd.xlane.f32.xlu1 %v2294_v58 }
 0x476   : > { %2190 = vmax.xlane.f32.xlu0 %v2189_v47 }
 0x478   : > { %2193 = vmax.xlane.f32.xlu1 %v2192_v31 }
 0x47a   : > { %2184 = vmax.xlane.f32.xlu0 %v2183_v56 }
 0x47c   : > { %2187 = vmax.xlane.f32.xlu1 %v2186_v1 }
 0x48d   : > { %1602 = vrot.lane.b32.xlu1 %v5121_v12, %s4400_s28  ;;  %v2199_v12 = vsub.f32 %v5176_v49, %v2113_v35  ;;  %v2312_v49 = vsel %vm1610_vm0, %v5336_v40, 0.0 }
 0x48f   : > { %v2235_v45 = vmul.f32 1.442695, %v2199_v12 }
 0x490   : > { %1598 = vrot.lane.b32.xlu0 %v5125_v57, %s4400_s28  ;;  %v2200_v57 = vsub.f32 %v5182_v50, %v2116_v55 }
 0x491   : > { %4073 = vpow2.f32 %v2235_v45 }
 0x492   : > { %v2237_v7 = vmul.f32 1.442695, %v2200_v57 }
 0x494   : > { %4075 = vpow2.f32 %v2237_v7 }
 0x49b   : > { %v5340_v54 = vpop.eup %4073 }
 0x49c   : > { %v2303_v15 = vsel %vm1610_vm0, %v5340_v54, 0.0 }
 0x49e   : > { %v5344_v50 = vpop.eup %4075 }
 0x49f   : > { %v2306_v23 = vsel %vm1610_vm0, %v5344_v50, 0.0 }
 0x4af   : > { %2310 = vadd.xlane.f32.xlu0 %v2309_v32 }
 0x4b1   : > { %2313 = vadd.xlane.f32.xlu1 %v2312_v49 }
 0x4b3   : > { %2304 = vadd.xlane.f32.xlu0 %v2303_v15 }
 0x4b5   : > { %2307 = vadd.xlane.f32.xlu1 %v2306_v23 }
 0x4c3   : > { %v2131_v58 = vpop.xlane.xlu0 %2130 }
 0x4c4   : > { %v2205_v47 = vsub.f32 %v5190_v26, %v2131_v58 }
 0x4c5   : > { %v2134_v31 = vpop.xlane.xlu1 %2133 }
 0x4c6   : > { %v2247_v56 = vmul.f32 1.442695, %v2205_v47  ;;  %v2206_v1 = vsub.f32 %v5196_v36, %v2134_v31 }
 0x4c8   : > { %4077 = vpow2.f32 %v2247_v56  ;;  %v2249_v61 = vmul.f32 1.442695, %v2206_v1 }
 0x4ca   : > { %4079 = vpow2.f32 %v2249_v61 }
 0x4d2   : > { %v5352_v20 = vpop.eup %4077 }
 0x4d3   : > { %v2321_v29 = vsel %vm1610_vm0, %v5352_v20, 0.0 }
 0x4d4   : > { %v5356_v35 = vpop.eup %4079  ;;  %2322 = vadd.xlane.f32.xlu0 %v2321_v29 }
 0x4d5   : > { %v2324_v42 = vsel %vm1610_vm0, %v5356_v35, 0.0 }
 0x4d6   : > { %2325 = vadd.xlane.f32.xlu1 %v2324_v42 }
 0x4d7   : > { %v2155_v26 = vpop.xlane.xlu0 %2154 }
 0x4d8   : > { %v2213_v55 = vsub.f32 %v5218_v60, %v2155_v26 }
 0x4d9   : > { %v2158_v11 = vpop.xlane.xlu1 %2157 }
 0x4da   : > { %v2263_v36 = vmul.f32 1.442695, %v2213_v55  ;;  %v2214_v12 = vsub.f32 %v5224_v44, %v2158_v11 }
 0x4db   : > { %v2125_v33 = vpop.xlane.xlu0 %2124 }
 0x4dc   : > { %4081 = vpow2.f32 %v2263_v36  ;;  %v2265_v57 = vmul.f32 1.442695, %v2214_v12  ;;  %v2203_v45 = vsub.f32 %v5192_v17, %v2125_v33 }
 0x4dd   : > { %v2128_v7 = vpop.xlane.xlu1 %2127 }
 0x4de   : > { %4083 = vpow2.f32 %v2265_v57  ;;  %v2243_v32 = vmul.f32 1.442695, %v2203_v45  ;;  %v2204_v49 = vsub.f32 %v5198_v38, %v2128_v7 }
 0x4df   : > { %v2149_v15 = vpop.xlane.xlu0 %2148 }
 0x4e0   : > { %4085 = vpow2.f32 %v2243_v32  ;;  %v2245_v23 = vmul.f32 1.442695, %v2204_v49  ;;  %v2211_v58 = vsub.f32 %v5220_v37, %v2149_v15 }
 0x4e1   : > { %v2152_v60 = vpop.xlane.xlu1 %2151 }
 0x4e2   : > { %4087 = vpow2.f32 %v2245_v23  ;;  %v2259_v47 = vmul.f32 1.442695, %v2211_v58  ;;  %v2212_v44 = vsub.f32 %v5228_v63, %v2152_v60 }
 0x4e3   : > { %v2143_v31 = vpop.xlane.xlu0 %2142 }
 0x4e4   : > { %4089 = vpow2.f32 %v2259_v47  ;;  %v2261_v56 = vmul.f32 1.442695, %v2212_v44  ;;  %v2209_v17 = vsub.f32 %v5206_v46, %v2143_v31 }
 0x4e5   : > { %v2146_v1 = vpop.xlane.xlu1 %2145 }
 0x4e6   : > { %v5367_v61 = vpop.eup %4081  ;;  %4091 = vpow2.f32 %v2261_v56  ;;  %v2255_v38 = vmul.f32 1.442695, %v2209_v17  ;;  %v2210_v29 = vsub.f32 %v5210_v28, %v2146_v1 }
 0x4e7   : > { %v2179_v42 = vpop.xlane.xlu0 %2178  ;;  %v2345_v37 = vsel %vm1610_vm0, %v5367_v61, 0.0 }
 0x4e8   : > { %v5372_v26 = vpop.eup %4083  ;;  %4093 = vpow2.f32 %v2255_v38  ;;  %v2257_v63 = vmul.f32 1.442695, %v2210_v29  ;;  %v2221_v55 = vsub.f32 %v5259_v14, %v2179_v42  ;;  %2346 = vadd.xlane.f32.xlu0 %v2345_v37 }
 0x4e9   : > { %v2182_v11 = vpop.xlane.xlu1 %2181  ;;  %v2348_v46 = vsel %vm1610_vm0, %v5372_v26, 0.0 }
 0x4ea   : > { %v5377_v36 = vpop.eup %4085  ;;  %4095 = vpow2.f32 %v2257_v63  ;;  %v2279_v12 = vmul.f32 1.442695, %v2221_v55  ;;  %v2222_v28 = vsub.f32 %v5266_v18, %v2182_v11  ;;  %2349 = vadd.xlane.f32.xlu1 %v2348_v46 }
 0x4eb   : > { %v2137_v33 = vpop.xlane.xlu0 %2136  ;;  %v2315_v57 = vsel %vm1610_vm0, %v5377_v36, 0.0 }
 0x4ec   : > { %v5382_v45 = vpop.eup %4087  ;;  %4097 = vpow2.f32 %v2279_v12  ;;  %v2281_v14 = vmul.f32 1.442695, %v2222_v28  ;;  %v2207_v7 = vsub.f32 %v5208_v52, %v2137_v33  ;;  %2316 = vadd.xlane.f32.xlu0 %v2315_v57 }
 0x4ed   : > { %v2140_v32 = vpop.xlane.xlu1 %2139  ;;  %v2318_v49 = vsel %vm1610_vm0, %v5382_v45, 0.0 }
 0x4ee   : > { %v5387_v15 = vpop.eup %4089  ;;  %4099 = vpow2.f32 %v2281_v14  ;;  %v2251_v18 = vmul.f32 1.442695, %v2207_v7  ;;  %v2208_v23 = vsub.f32 %v5214_v10, %v2140_v32  ;;  %2319 = vadd.xlane.f32.xlu1 %v2318_v49 }
 0x4ef   : > { %v2173_v58 = vpop.xlane.xlu0 %2172  ;;  %v2339_v60 = vsel %vm1610_vm0, %v5387_v15, 0.0 }
 0x4f0   : > { %v5392_v47 = vpop.eup %4091  ;;  %4101 = vpow2.f32 %v2251_v18  ;;  %v2253_v52 = vmul.f32 1.442695, %v2208_v23  ;;  %v2219_v44 = vsub.f32 %v5261_v2, %v2173_v58  ;;  %2340 = vadd.xlane.f32.xlu0 %v2339_v60 }
 0x4f1   : > { %v2176_v31 = vpop.xlane.xlu1 %2175  ;;  %v2342_v56 = vsel %vm1610_vm0, %v5392_v47, 0.0 }
 0x4f2   : > { %v5397_v17 = vpop.eup %4093  ;;  %4103 = vpow2.f32 %v2253_v52  ;;  %v2275_v10 = vmul.f32 1.442695, %v2219_v44  ;;  %v2220_v1 = vsub.f32 %v5268_v30, %v2176_v31  ;;  %2343 = vadd.xlane.f32.xlu1 %v2342_v56 }
 0x4f3   : > { %v2167_v38 = vpop.xlane.xlu0 %2166  ;;  %v2333_v29 = vsel %vm1610_vm0, %v5397_v17, 0.0 }
 0x4f4   : > { %v5402_v42 = vpop.eup %4095  ;;  %4105 = vpow2.f32 %v2275_v10  ;;  %v2277_v2 = vmul.f32 1.442695, %v2220_v1  ;;  %v2217_v37 = vsub.f32 %v5244_v41, %v2167_v38  ;;  %2334 = vadd.xlane.f32.xlu0 %v2333_v29 }
 0x4f5   : > { %v2170_v63 = vpop.xlane.xlu1 %2169  ;;  %v2336_v55 = vsel %vm1610_vm0, %v5402_v42, 0.0 }
 0x4f6   : > { %v5407_v11 = vpop.eup %4097  ;;  %4107 = vpow2.f32 %v2277_v2  ;;  %v2271_v30 = vmul.f32 1.442695, %v2217_v37  ;;  %v2218_v46 = vsub.f32 %v5250_v51, %v2170_v63  ;;  %2337 = vadd.xlane.f32.xlu1 %v2336_v55 }
 0x4f7   : > { %v2161_v12 = vpop.xlane.xlu0 %2160  ;;  %v2369_v28 = vsel %vm1610_vm0, %v5407_v11, 0.0 }
 0x4f8   : > { %v5412_v33 = vpop.eup %4099  ;;  %4109 = vpow2.f32 %v2271_v30  ;;  %v2273_v41 = vmul.f32 1.442695, %v2218_v46  ;;  %v2215_v57 = vsub.f32 %v5246_v48, %v2161_v12  ;;  %2370 = vadd.xlane.f32.xlu0 %v2369_v28 }
 0x4f9   : > { %v2164_v14 = vpop.xlane.xlu1 %2163  ;;  %v2372_v7 = vsel %vm1610_vm0, %v5412_v33, 0.0 }
 0x4fa   : > { %v5417_v32 = vpop.eup %4101  ;;  %4111 = vpow2.f32 %v2273_v41  ;;  %v2267_v51 = vmul.f32 1.442695, %v2215_v57  ;;  %v2216_v49 = vsub.f32 %v5254_v5, %v2164_v14  ;;  %2373 = vadd.xlane.f32.xlu1 %v2372_v7 }
 0x4fb   : > { %v2299_v18 = vpop.xlane.xlu0 %2298  ;;  %v2327_v23 = vsel %vm1610_vm0, %v5417_v32, 0.0 }
 0x4fc   : > { %v5422_v58 = vpop.eup %4103  ;;  %4113 = vpow2.f32 %v2267_v51  ;;  %v2269_v48 = vmul.f32 1.442695, %v2216_v49  ;;  %2328 = vadd.xlane.f32.xlu0 %v2327_v23 }
 0x4fd   : > { %4115 = vrcp.f32 %v2299_v18  ;;  %v2302_v60 = vpop.xlane.xlu1 %2301  ;;  %v2330_v52 = vsel %vm1610_vm0, %v5422_v58, 0.0 }
 0x4fe   : > { %v5426_v44 = vpop.eup %4105  ;;  %4117 = vpow2.f32 %v2269_v48  ;;  %2331 = vadd.xlane.f32.xlu1 %v2330_v52 }
 0x4ff   : > { %4119 = vrcp.f32 %v2302_v60  ;;  %v2293_v5 = vpop.xlane.xlu0 %2292  ;;  %v2363_v31 = vsel %vm1610_vm0, %v5426_v44, 0.0 }
 0x500   : > { %v5430_v56 = vpop.eup %4107  ;;  %4121 = vrcp.f32 %v2293_v5  ;;  %2364 = vadd.xlane.f32.xlu0 %v2363_v31 }
 0x501   : > { %v2296_v10 = vpop.xlane.xlu1 %2295  ;;  %v2366_v1 = vsel %vm1610_vm0, %v5430_v56, 0.0 }
 0x502   : > { %v5434_v38 = vpop.eup %4109  ;;  %4123 = vrcp.f32 %v2296_v10  ;;  %2367 = vadd.xlane.f32.xlu1 %v2366_v1 }
 0x503   : > { %v2191_v29 = vpop.xlane.xlu0 %2190  ;;  %v2357_v2 = vsel %vm1610_vm0, %v5434_v38, 0.0 }
 0x504   : > { %v5438_v37 = vpop.eup %4111  ;;  %v2225_v63 = vsub.f32 %v5282_v43, %v2191_v29  ;;  %2358 = vadd.xlane.f32.xlu0 %v2357_v2 }
 0x505   : > { %v2194_v55 = vpop.xlane.xlu1 %2193  ;;  %v2360_v30 = vsel %vm1610_vm0, %v5438_v37, 0.0 }
 0x506   : > { %v5443_v46 = vpop.eup %4113  ;;  %v2287_v12 = vmul.f32 1.442695, %v2225_v63  ;;  %v2226_v28 = vsub.f32 %v5288_v6, %v2194_v55  ;;  %2361 = vadd.xlane.f32.xlu1 %v2360_v30 }
 0x507   : > { %v4116_v41 = vpop.eup %4115  ;;  %v2185_v57 = vpop.xlane.xlu0 %2184  ;;  %v2351_v14 = vsel %vm1610_vm0, %v5443_v46, 0.0 }
 0x508   : > { %v5448_v7 = vpop.eup %4117  ;;  %4125 = vpow2.f32 %v2287_v12  ;;  %v2289_v43 = vmul.f32 1.442695, %v2226_v28  ;;  %v2223_v51 = vsub.f32 %v5284_v24, %v2185_v57  ;;  %2352 = vadd.xlane.f32.xlu0 %v2351_v14  ;;  %v2421_v60 = vmul.f32 %v4116_v41, %v5296_v8 }
 0x509   : > { %v4120_v49 = vpop.eup %4119  ;;  %v2188_v18 = vpop.xlane.xlu1 %2187  ;;  %v2354_v23 = vsel %vm1610_vm0, %v5448_v7, 0.0 }
 0x50a   : > { %v4122_v48 = vpop.eup %4121  ;;  %4127 = vpow2.f32 %v2289_v43  ;;  %v2283_v6 = vmul.f32 1.442695, %v2223_v51  ;;  %2355 = vadd.xlane.f32.xlu1 %v2354_v23  ;;  %v2422_v52 = vmul.f32 %v4120_v49, %v5300_v9  ;;  %v2224_v31 = vsub.f32 %v5290_v0, %v2188_v18 }
 0x50b   : > { %v2419_v5 = vmul.f32 %v4122_v48, %v5304_v25  ;;  %v2452_v2 = vsel %vm1610_vm0, %v2421_v60, 0.0  ;;  %v5489_v14 = vpop.permute.xlu0 %1598 }
 0x50c   : > { %v4124_v10 = vpop.eup %4123  ;;  %4129 = vpow2.f32 %v2283_v6  ;;  %v2285_v29 = vmul.f32 1.442695, %v2224_v31  ;;  %v2455_v63 = vsel %vm1610_vm0, %v2422_v52, 0.0 }
 0x50d   : > { %v2451_v24 = vsel %vm1610_vm0, %v2419_v5, 0.0  ;;  %v2420_v1 = vmul.f32 %v4124_v10, %v5308_v16  ;;  %v5491_v43 = vpop.permute.xlu1 %1602 }
 0x50e   : > { %4131 = vpow2.f32 %v2285_v29  ;;  %v2453_v8 = vadd.f32 %v2452_v2, %v2451_v24 }
 0x50f   : > { %v2454_v55 = vsel %vm1610_vm0, %v2420_v1, 0.0 }
 0x510   : > { %v2456_v9 = vadd.f32 %v2455_v63, %v2454_v55 }
 0x512   : > { %v5462_v30 = vpop.eup %4125  ;;  %v2499_v25 = vpack.c.bf16 %v2456_v9, %v2453_v8 }
 0x513   : > { %v2381_v0 = vsel %vm1610_vm0, %v5462_v30, 0.0 }
 0x514   : > { %v5466_v12 = vpop.eup %4127  ;;  %3724 = vmatmul.mubr.msk.bf16.vlgmr.msra.gmra.mrb[24].mxu0 %vm1610_vm0, %v2499_v25  ;;  %2382 = vadd.xlane.f32.xlu0 %v2381_v0 }
 0x515   : > { %3736 = vmatpush3.bf16.msra.mxu0 %v5204_v39  ;;  %v2384_v16 = vsel %vm1610_vm0, %v5466_v12, 0.0  ;;  %3739 = vmatprep.mubr.msk.bf16.mxu0 %vm4402_vm1, %v4401_v3 }
 0x516   : > { %v5474_v28 = vpop.eup %4129  ;;  %2385 = vadd.xlane.f32.xlu1 %v2384_v16  ;;  %3737 = vmatprep.subr.bf16.mxu0 %v4401_v3 }
 0x517   : > { %v2375_v41 = vsel %vm1610_vm0, %v5474_v28, 0.0 }
 0x518   : > { %2376 = vadd.xlane.f32.xlu0 %v2375_v41  ;;  %v5479_v57 = vpop.eup %4131 }
 0x519   : > { %3738 = vmatpush3.bf16.msra.mxu0 %v5252_v13  ;;  %v2378_v39 = vsel %vm1610_vm0, %v5479_v57, 0.0 }
 0x51a   : > { %3751 = vmatprep.subr.bf16.mxu0 %v4401_v3  ;;  %2379 = vadd.xlane.f32.xlu1 %v2378_v39 }
 0x52b   : > { %1604 = vrot.lane.b32.xlu1 %v5142_v22, %s4400_s28 }
 0x52e   : > { %1600 = vrot.lane.b32.xlu0 %v5144_v34, %s4400_s28 }
 0x53c   : > { %v2311_v51 = vpop.xlane.xlu0 %2310 }
 0x53d   : > { %4133 = vrcp.f32 %v2311_v51 }
 0x53e   : > { %v2314_v49 = vpop.xlane.xlu1 %2313 }
 0x53f   : > { %4135 = vrcp.f32 %v2314_v49 }
 0x540   : > { %v2305_v13 = vpop.xlane.xlu0 %2304 }
 0x541   : > { %4137 = vrcp.f32 %v2305_v13 }
 0x542   : > { %v2308_v18 = vpop.xlane.xlu1 %2307 }
 0x543   : > { %4139 = vrcp.f32 %v2308_v18 }
 0x547   : > { %v4134_v23 = vpop.eup %4133 }
 0x548   : > { %v2425_v22 = vmul.f32 %v4134_v23, %v5334_v21 }
 0x549   : > { %v4136_v48 = vpop.eup %4135 }
 0x54a   : > { %v2426_v60 = vmul.f32 %v4136_v48, %v5336_v40  ;;  %v2458_v10 = vsel %vm1610_vm0, %v2425_v22, 0.0 }
 0x54b   : > { %v4138_v6 = vpop.eup %4137 }
 0x54c   : > { %v2423_v34 = vmul.f32 %v4138_v6, %v5340_v54  ;;  %v2461_v24 = vsel %vm1610_vm0, %v2426_v60, 0.0 }
 0x54d   : > { %v4140_v52 = vpop.eup %4139 }
 0x54e   : > { %v2457_v5 = vsel %vm1610_vm0, %v2423_v34, 0.0  ;;  %v2424_v31 = vmul.f32 %v4140_v52, %v5344_v50 }
 0x54f   : > { %v2459_v29 = vadd.f32 %v2458_v10, %v2457_v5 }
 0x550   : > { %v2460_v1 = vsel %vm1610_vm0, %v2424_v31, 0.0 }
 0x551   : > { %v2462_v2 = vadd.f32 %v2461_v24, %v2460_v1 }
 0x553   : > { %v2500_v63 = vpack.c.bf16 %v2462_v2, %v2459_v29 }
 0x555   : > { %3732 = vmatmul.mubr.msk.bf16.vlgmr.msra.gmra.mrb[32].mxu1 %vm1610_vm0, %v2500_v63 }
 0x556   : > { %3744 = vmatpush3.bf16.msra.mxu1 %v5202_v27  ;;  %3747 = vmatprep.mubr.msk.bf16.mxu1 %vm4402_vm1, %v4401_v3 }
 0x557   : > { %3745 = vmatprep.subr.bf16.mxu1 %v4401_v3 }
 0x55a   : > { %3746 = vmatpush3.bf16.msra.mxu1 %v5226_v62 }
 0x55b   : > { %3759 = vmatprep.subr.bf16.mxu1 %v4401_v3 }
 0x561   : > { %v2323_v21 = vpop.xlane.xlu0 %2322 }
 0x562   : > { %4141 = vrcp.f32 %v2323_v21 }
 0x563   : > { %v2326_v40 = vpop.xlane.xlu1 %2325 }
 0x564   : > { %4143 = vrcp.f32 %v2326_v40 }
 0x56c   : > { %v4142_v25 = vpop.eup %4141 }
 0x56d   : > { %v2429_v39 = vmul.f32 %v4142_v25, %v5352_v20 }
 0x56e   : > { %v4144_v0 = vpop.eup %4143 }
 0x56f   : > { %v2430_v51 = vmul.f32 %v4144_v0, %v5356_v35  ;;  %v2464_v52 = vsel %vm1610_vm0, %v2429_v39, 0.0 }
 0x571   : > { %v2467_v20 = vsel %vm1610_vm0, %v2430_v51, 0.0 }
 0x575   : > { %v2347_v54 = vpop.xlane.xlu0 %2346 }
 0x577   : > { %v2350_v50 = vpop.xlane.xlu1 %2349 }
 0x579   : > { %v2317_v55 = vpop.xlane.xlu0 %2316 }
 0x57a   : > { %4145 = vrcp.f32 %v2317_v55 }
 0x57b   : > { %v2320_v8 = vpop.xlane.xlu1 %2319 }
 0x57c   : > { %4147 = vrcp.f32 %v2320_v8 }
 0x57d   : > { %4149 = vrcp.f32 %v2350_v50  ;;  %v2341_v27 = vpop.xlane.xlu0 %2340 }
 0x57e   : > { %4151 = vrcp.f32 %v2341_v27 }
 0x57f   : > { %4153 = vrcp.f32 %v2347_v54  ;;  %v2344_v9 = vpop.xlane.xlu1 %2343 }
 0x580   : > { %4155 = vrcp.f32 %v2344_v9 }
 0x581   : > { %v2335_v62 = vpop.xlane.xlu0 %2334 }
 0x582   : > { %4157 = vrcp.f32 %v2335_v62 }
 0x583   : > { %v2338_v16 = vpop.xlane.xlu1 %2337 }
 0x584   : > { %v4146_v41 = vpop.eup %4145  ;;  %4159 = vrcp.f32 %v2338_v16 }
 0x585   : > { %v2427_v49 = vmul.f32 %v4146_v41, %v5377_v36  ;;  %v2371_v13 = vpop.xlane.xlu0 %2370 }
 0x586   : > { %v4148_v18 = vpop.eup %4147 }
 0x587   : > { %v4150_v23 = vpop.eup %4149  ;;  %v2463_v48 = vsel %vm1610_vm0, %v2427_v49, 0.0  ;;  %v2428_v6 = vmul.f32 %v4148_v18, %v5382_v45  ;;  %v2374_v22 = vpop.xlane.xlu1 %2373 }
 0x588   : > { %v4152_v60 = vpop.eup %4151  ;;  %v2465_v31 = vadd.f32 %v2464_v52, %v2463_v48  ;;  %v2438_v24 = vmul.f32 %v4150_v23, %v5372_v26 }
 0x589   : > { %v4154_v34 = vpop.eup %4153  ;;  %v2466_v35 = vsel %vm1610_vm0, %v2428_v6, 0.0  ;;  %v2329_v5 = vpop.xlane.xlu0 %2328  ;;  %v2435_v45 = vmul.f32 %v4152_v60, %v5387_v15 }
 0x58a   : > { %v4156_v36 = vpop.eup %4155  ;;  %4161 = vrcp.f32 %v2329_v5  ;;  %v2468_v10 = vadd.f32 %v2467_v20, %v2466_v35  ;;  %v2437_v63 = vmul.f32 %v4154_v34, %v5367_v61  ;;  %v2479_v54 = vsel %vm1610_vm0, %v2438_v24, 0.0 }
 0x58b   : > { %v2436_v1 = vmul.f32 %v4156_v36, %v5392_v47  ;;  %v2332_v29 = vpop.xlane.xlu1 %2331  ;;  %v2475_v50 = vsel %vm1610_vm0, %v2435_v45, 0.0 }
 0x58c   : > { %4163 = vrcp.f32 %v2332_v29  ;;  %v2501_v2 = vpack.c.bf16 %v2468_v10, %v2465_v31  ;;  %v4158_v47 = vpop.eup %4157  ;;  %v2476_v61 = vsel %vm1610_vm0, %v2437_v63, 0.0 }
 0x58d   : > { %v2478_v21 = vsel %vm1610_vm0, %v2436_v1, 0.0  ;;  %v2365_v40 = vpop.xlane.xlu0 %2364  ;;  %4165 = vrcp.f32 %v2374_v22  ;;  %v2477_v27 = vadd.f32 %v2476_v61, %v2475_v50  ;;  %v2433_v62 = vmul.f32 %v4158_v47, %v5397_v17 }
 0x58e   : > { %3740 = vmatmul.mubr.msk.bf16.vlgmr.msra.gmra.mrb[28].mxu0 %vm1610_vm0, %v2501_v2  ;;  %v2480_v15 = vadd.f32 %v2479_v54, %v2478_v21  ;;  %v4160_v8 = vpop.eup %4159 }
 0x58f   : > { %3752 = vmatpush3.bf16.msra.mxu0 %v5216_v59  ;;  %v2368_v26 = vpop.xlane.xlu1 %2367  ;;  %3755 = vmatprep.mubr.msk.bf16.mxu0 %vm4402_vm1, %v4401_v3  ;;  %v2434_v0 = vmul.f32 %v4160_v8, %v5402_v42  ;;  %v2470_v17 = vsel %vm1610_vm0, %v2433_v62, 0.0 }
 0x590   : > { %3753 = vmatprep.subr.bf16.mxu0 %v4401_v3  ;;  %4167 = vrcp.f32 %v2368_v26  ;;  %v2503_v25 = vpack.c.bf16 %v2480_v15, %v2477_v27 }
 0x591   : > { %v2359_v55 = vpop.xlane.xlu0 %2358  ;;  %v2473_v42 = vsel %vm1610_vm0, %v2434_v0, 0.0 }
 0x592   : > { %4169 = vrcp.f32 %v2359_v55 }
 0x593   : > { %3754 = vmatpush3.bf16.msra.mxu0 %v5232_v4  ;;  %v2362_v9 = vpop.xlane.xlu1 %2361 }
 0x594   : > { %v4162_v59 = vpop.eup %4161  ;;  %4171 = vrcp.f32 %v2362_v9  ;;  %3767 = vmatprep.subr.bf16.mxu0 %v4401_v3 }
 0x595   : > { %v2431_v16 = vmul.f32 %v4162_v59, %v5417_v32  ;;  %4173 = vrcp.f32 %v2365_v40  ;;  %v2353_v41 = vpop.xlane.xlu0 %2352 }
 0x596   : > { %v4164_v39 = vpop.eup %4163  ;;  %4175 = vrcp.f32 %v2353_v41  ;;  %3756 = vmatmul.mubr.msk.bf16.vlgmr.msra.gmra.mrb[32].mxu0 %vm1610_vm0, %v2503_v25 }
 0x597   : > { %4177 = vrcp.f32 %v2371_v13  ;;  %v2469_v4 = vsel %vm1610_vm0, %v2431_v16, 0.0  ;;  %v2432_v51 = vmul.f32 %v4164_v39, %v5422_v58  ;;  %3768 = vmatpush3.bf16.msra.mxu0 %v5489_v14  ;;  %v2356_v49 = vpop.xlane.xlu1 %2355  ;;  %3771 = vmatprep.mubr.msk.bf16.mxu0 %vm4402_vm1, %v4401_v3  ;;  %v4166_v23 = vpop.eup %4165 }
 0x598   : > { %4179 = vrcp.f32 %v2356_v49  ;;  %3769 = vmatprep.subr.bf16.mxu0 %v4401_v3  ;;  %v2471_v13 = vadd.f32 %v2470_v17, %v2469_v4  ;;  %v2446_v34 = vmul.f32 %v4166_v23, %v5412_v33 }
 0x599   : > { %v2472_v32 = vsel %vm1610_vm0, %v2432_v51, 0.0 }
 0x59a   : > { %v2474_v18 = vadd.f32 %v2473_v42, %v2472_v32  ;;  %v4168_v48 = vpop.eup %4167  ;;  %v2491_v1 = vsel %vm1610_vm0, %v2446_v34, 0.0 }
 0x59b   : > { %v2444_v52 = vmul.f32 %v4168_v48, %v5430_v56 }
 0x59c   : > { %v2502_v58 = vpack.c.bf16 %v2474_v18, %v2471_v13  ;;  %v4170_v6 = vpop.eup %4169 }
 0x59d   : > { %v2441_v35 = vmul.f32 %v4170_v6, %v5434_v38  ;;  %v2490_v38 = vsel %vm1610_vm0, %v2444_v52, 0.0  ;;  %v4005_v6 = vld [vmem:[#allocation11] sm:$0xff]   ;;  %v4007_v52 = vld [vmem:[#allocation11 + $0x10] sm:$0xff]  }
 0x59e   : > { %v4172_v14 = vpop.eup %4171  ;;  %3748 = vmatmul.mubr.msk.bf16.vlgmr.msra.gmra.mrb[36].mxu1 %vm1610_vm0, %v2502_v58  ;;  %v2492_v2 = vadd.f32 %v2491_v1, %v2490_v38 }
 0x59f   : > { %v4174_v22 = vpop.eup %4173  ;;  %3760 = vmatpush3.bf16.msra.mxu1 %v5212_v53  ;;  %3763 = vmatprep.mubr.msk.bf16.mxu1 %vm4402_vm1, %v4401_v3  ;;  %v2442_v5 = vmul.f32 %v4172_v14, %v5438_v37  ;;  %v2482_v37 = vsel %vm1610_vm0, %v2441_v35, 0.0 }
 0x5a0   : > { %v4176_v60 = vpop.eup %4175  ;;  %3761 = vmatprep.subr.bf16.mxu1 %v4401_v3  ;;  %v2443_v53 = vmul.f32 %v4174_v22, %v5426_v44  ;;  %v4006_v22 = vld [vmem:[#allocation11 + $0x8] sm:$0xff]  }
 0x5a1   : > { %v4178_v20 = vpop.eup %4177  ;;  %v2439_v36 = vmul.f32 %v4176_v60, %v5443_v46  ;;  %v2383_v31 = vpop.xlane.xlu0 %2382  ;;  %v2485_v44 = vsel %vm1610_vm0, %v2442_v5, 0.0 }
 0x5a2   : > { %v4180_v10 = vpop.eup %4179  ;;  %v2445_v56 = vmul.f32 %v4178_v20, %v5407_v11  ;;  %4181 = vrcp.f32 %v2383_v31 }
 0x5a3   : > { %v2481_v24 = vsel %vm1610_vm0, %v2439_v36, 0.0  ;;  %v2440_v45 = vmul.f32 %v4180_v10, %v5448_v7  ;;  %3762 = vmatpush3.bf16.msra.mxu1 %v5238_v19  ;;  %v2386_v33 = vpop.xlane.xlu1 %2385  ;;  %v2487_v19 = vsel %vm1610_vm0, %v2443_v53, 0.0  ;;  %v4008_v10 = vld [vmem:[#allocation11 + $0x18] sm:$0xff]   ;;  %v4009_v53 = vld [vmem:[#allocation11 + $0x20] sm:$0xff]  }
 0x5a4   : > { %3775 = vmatprep.subr.bf16.mxu1 %v4401_v3  ;;  %4183 = vrcp.f32 %v2386_v33  ;;  %v2483_v29 = vadd.f32 %v2482_v37, %v2481_v24  ;;  %v2488_v63 = vsel %vm1610_vm0, %v2445_v56, 0.0  ;;  %v4011_v56 = vld [vmem:[#allocation11 + $0x30] sm:$0xff]  }
 0x5a5   : > { %v2484_v46 = vsel %vm1610_vm0, %v2440_v45, 0.0  ;;  %v2377_v7 = vpop.xlane.xlu0 %2376  ;;  %v2489_v50 = vadd.f32 %v2488_v63, %v2487_v19  ;;  %v4010_v45 = vld [vmem:[#allocation11 + $0x28] sm:$0xff]  }
 0x5a6   : > { %4185 = vrcp.f32 %v2377_v7  ;;  %v2486_v11 = vadd.f32 %v2485_v44, %v2484_v46 }
 0x5a7   : > { %v2380_v21 = vpop.xlane.xlu1 %2379  ;;  %v2505_v26 = vpack.c.bf16 %v2492_v2, %v2489_v50 }
 0x5a8   : > { %v2504_v40 = vpack.c.bf16 %v2486_v11, %v2483_v29  ;;  %4187 = vrcp.f32 %v2380_v21  ;;  %v4012_v11 = vld [vmem:[#allocation11 + $0x38] sm:$0xff]  }
 0x5a9   : > { %v1601_v54 = vpop.permute.xlu0 %1600 }
 0x5aa   : > { %3764 = vmatmul.mubr.msk.bf16.vlgmr.msra.gmra.mrb[40].mxu1 %vm1610_vm0, %v2504_v40  ;;  %3770 = vmatpush3.bf16.msra.mxu0 %v1601_v54 }
 0x5ab   : > { %3776 = vmatpush3.bf16.msra.mxu1 %v5491_v43  ;;  %3779 = vmatprep.mubr.msk.bf16.mxu1 %vm4402_vm1, %v4401_v3  ;;  %v1605_v47 = vpop.permute.xlu1 %1604 }
 0x5ac   : > { %3777 = vmatprep.subr.bf16.mxu1 %v4401_v3  ;;  %v4182_v15 = vpop.eup %4181  ;;  %3783 = vmatprep.subr.bf16.mxu0 %v4005_v6 }
 0x5ad   : > { %3772 = vmatmul.mubr.msk.bf16.vlgmr.msra.gmra.mrb[36].mxu0 %vm1610_vm0, %v2505_v26  ;;  %v2449_v27 = vmul.f32 %v4182_v15, %v5462_v30 }
 0x5ae   : > { %v4184_v61 = vpop.eup %4183  ;;  %3784 = vmatpush3.bf16.msra.mxu0 %v4005_v6 }
 0x5af   : > { %3778 = vmatpush3.bf16.msra.mxu1 %v1605_v47  ;;  %v2450_v9 = vmul.f32 %v4184_v61, %v5466_v12  ;;  %v2494_v3 = vsel %vm1610_vm0, %v2449_v27, 0.0  ;;  %3785 = vmatprep.subr.bf16.mxu0 %v4006_v22 }
 0x5b0   : > { %v4186_v55 = vpop.eup %4185 }
 0x5b1   : > { %v2447_v8 = vmul.f32 %v4186_v55, %v5474_v28  ;;  %v2497_v62 = vsel %vm1610_vm0, %v2450_v9, 0.0 }
 0x5b2   : > { %v4188_v43 = vpop.eup %4187  ;;  %3786 = vmatpush3.bf16.msra.mxu0 %v4006_v22  ;;  %v3479_v22 = vld [vmem:[%s4725_s26 + $0x8] sm:$0xff]  }
 0x5b3   : > { %v2493_v59 = vsel %vm1610_vm0, %v2447_v8, 0.0  ;;  %v2448_v25 = vmul.f32 %v4188_v43, %v5479_v57  ;;  %3787 = vmatprep.subr.bf16.mxu0 %v4007_v52 }
 0x5b4   : > { %v2495_v16 = vadd.f32 %v2494_v3, %v2493_v59 }
 0x5b5   : > { %v2496_v0 = vsel %vm1610_vm0, %v2448_v25, 0.0 }
 0x5b6   : > { %v2498_v41 = vadd.f32 %v2497_v62, %v2496_v0  ;;  %3788 = vmatpush3.bf16.msra.mxu0 %v4007_v52 }
 0x5b7   : > { %3789 = vmatprep.subr.bf16.mxu0 %v4008_v10 }
 0x5b8   : > { %v2506_v39 = vpack.c.bf16 %v2498_v41, %v2495_v16 }
 0x5ba   : > { %3780 = vmatmul.mubr.msk.bf16.vlgmr.msra.gmra.mrb[44].mxu1 %vm1610_vm0, %v2506_v39  ;;  %3790 = vmatpush3.bf16.msra.mxu0 %v4008_v10 }
 0x5bb   : > { %3791 = vmatprep.subr.bf16.mxu0 %v4009_v53 }
 0x5be   : > { %3792 = vmatpush3.bf16.msra.mxu0 %v4009_v53 }
 0x5bf   : > { %3793 = vmatprep.subr.bf16.mxu0 %v4010_v45 }
 0x5c2   : > { %3794 = vmatpush3.bf16.msra.mxu0 %v4010_v45 }
 0x5c3   : > { %3795 = vmatprep.subr.bf16.mxu0 %v4011_v56 }
 0x5c6   : > { %3796 = vmatpush3.bf16.msra.mxu0 %v4011_v56 }
 0x5c7   : > { %3797 = vmatprep.subr.bf16.mxu0 %v4012_v11 }
 0x5ca   : > { %3798 = vmatpush3.bf16.msra.mxu0 %v4012_v11 }
 0x5e7   : > { %v5582_v28 = vpop.f32.mrb[24].mxu0 }
 0x5e8   : > { %v3725_v30 = vpop.f32.mrb[25].mxu0 }
 0x5e9   : > { %v5584_v12 = vpop.f32.mrb[26].mxu0 }
 0x5ea   : > { %v3726_v4 = vpop.f32.mrb[27].mxu0 }
 0x628   : > { %v5586_v51 = vpop.f32.mrb[32].mxu1 }
 0x629   : > { %v3733_v57 = vpop.f32.mrb[33].mxu1 }
 0x62a   : > { %v5588_v49 = vpop.f32.mrb[34].mxu1 }
 0x62b   : > { %v3734_v17 = vpop.f32.mrb[35].mxu1 }
 0x661   : > { %v2632_v42 = vpop.f32.mrb[28].mxu0 }
 0x662   : > { %v3741_v32 = vpop.f32.mrb[29].mxu0 }
 0x663   : > { %v2635_v13 = vpop.f32.mrb[30].mxu0 }
 0x664   : > { %v3951_v18 = vpack.i.bf16 %v2635_v13, %v2632_v42  ;;  %v3742_v23 = vpop.f32.mrb[31].mxu0 }
 0x666   : > { %3952 = vrot.lane.b32.xlu0 %v3951_v18, %s4400_s28 }
 0x669   : > { %v2720_v48 = vpop.f32.mrb[32].mxu0 }
 0x66a   : > { %v3757_v58 = vpop.f32.mrb[33].mxu0 }
 0x66b   : > { %v2723_v14 = vpop.f32.mrb[34].mxu0 }
 0x66c   : > { %v3956_v60 = vpack.i.bf16 %v2723_v14, %v2720_v48  ;;  %v3758_v34 = vpop.f32.mrb[35].mxu0 }
 0x66d   : > { %v3453_v34 = vld [vmem:[%s4725_s26] sm:$0xff]   ;;  %s656_s26 = scalar_lea.vmem [#allocation12], %s3311_s9  ;;  %s4403_s9 = smov [#allocation12]  }
 0x66e   : > { %3957 = vrot.lane.b32.xlu0 %v3956_v60, %s4399_s21  ;;  %s3099_s13 = sshll.u32 %s656_s26, 4  ;;  %s4277_s2 = sshll.u32 %s4403_s9, 4  ;;  %s5626_s13 = int_to_ptr.vmem [resolvable:$true] %s3099_s13  ;;  %s4278_s2 = int_to_ptr.vmem [resolvable:$false] %s4277_s2 }
 0x66f   : > { %s4273_s16 = scalar_lea.vmem %s5626_s13, 256  ;;  %s4279_s17 = scalar_lea.vmem %s4278_s2, 512 }
 0x670   : > { %p4274_p10 = scmp.ne.s32.totalorder %s5626_s13, %s4273_s16  ;;  %p4280_p1 = scmp.lt.s32.totalorder %s5626_s13, %s4278_s2 }
 0x671   : > { %v2676_v20 = vpop.f32.mrb[36].mxu1  ;;  %p4281_p6 = scmp.lt.s32.totalorder %s4279_s17, %s4273_s16 }
 0x672   : > { %v3749_v35 = vpop.f32.mrb[37].mxu1  ;;  %p4275_p12 = pnand %p4274_p10, %p5743_p11 }
 0x673   : > { %v2679_v5 = vpop.f32.mrb[38].mxu1  ;;  %p4282_p3 = por %p4281_p6, %p4280_p1 }
 0x674   : > { %v3961_v36 = vpack.i.bf16 %v2679_v5, %v2676_v20  ;;  %v3750_v31 = vpop.f32.mrb[39].mxu1  ;;  %v3458_v5 = vunpack.c.l.bf16 %v3479_v22  ;;  %p4276_p0 = pneg %p4275_p12 }
 0x675   : > { %v3459_v31 = vunpack.c.h.bf16 %v3479_v22 }
 0x676   : > { %3962 = vrot.lane.b32.xlu1 %v3961_v36, %s4400_s28  ;;  %s5742_s28 = sld [smem:[#allocation36_spill]]  ;;  %p4283_p7 = pnand %p4282_p3, %p4276_p0 }
 0x67c   : > { %s5624_s12 = scalar_lea.hbm %s5742_s28, %s3394_s1 }
 0x67d   : > { %v2764_v24 = vpop.f32.mrb[40].mxu1 }
 0x67e   : > { %v3765_v33 = vpop.f32.mrb[41].mxu1 }
 0x67f   : > { %v2767_v1 = vpop.f32.mrb[42].mxu1  ;;  %v3455_v33 = vunpack.c.h.bf16 %v3453_v34 }
 0x680   : > { %v3966_v38 = vpack.i.bf16 %v2767_v1, %v2764_v24  ;;  %v3766_v37 = vpop.f32.mrb[43].mxu1  ;;  %v2808_v44 = vpop.f32.mrb[36].mxu0  ;;  %v3454_v24 = vunpack.c.l.bf16 %v3453_v34 }
 0x681   : > { %v3773_v46 = vpop.f32.mrb[37].mxu0 }
 0x682   : > { %3967 = vrot.lane.b32.xlu1 %v3966_v38, %s4399_s21  ;;  %v2811_v7 = vpop.f32.mrb[38].mxu0 }
 0x683   : > { %v3971_v19 = vpack.i.bf16 %v2811_v7, %v2808_v44  ;;  %v3774_v29 = vpop.f32.mrb[39].mxu0 }
 0x685   : > { %3972 = vrot.lane.b32.xlu0 %v3971_v19, %s4398_s11 }
 0x68d   : > { %v2852_v2 = vpop.f32.mrb[44].mxu1 }
 0x68e   : > { %v3781_v63 = vpop.f32.mrb[45].mxu1 }
 0x68f   : > { %v2855_v21 = vpop.f32.mrb[46].mxu1 }
 0x690   : > { %v3976_v40 = vpack.i.bf16 %v2855_v21, %v2852_v2  ;;  %v3782_v54 = vpop.f32.mrb[47].mxu1 }
 0x692   : > { %3977 = vrot.lane.b32.xlu1 %v3976_v40, %s4398_s11 }
 0x6d8   : > { %v3953_v50 = vpop.permute.xlu0 %3952 }
 0x6d9   : > { %v3955_v15 = vunpack.i.h.bf16 %v3953_v50  ;;  %v3954_v47 = vunpack.i.l.bf16 %v3953_v50 }
 0x6db   : > { %v2908_v27 = vsel %vm1610_vm0, %v5584_v12, %v3955_v15  ;;  %v2907_v9 = vsel %vm1610_vm0, %v5582_v28, %v3954_v47 }
 0x6e0   : > { %v3958_v26 = vpop.permute.xlu0 %3957 }
 0x6e1   : > { %v3960_v61 = vunpack.i.h.bf16 %v3958_v26  ;;  %v3959_v55 = vunpack.i.l.bf16 %v3958_v26 }
 0x6e3   : > { %v2912_v25 = vsel %vm2911_vm2, %v2907_v9, %v3959_v55  ;;  %v2913_v3 = vsel %vm2911_vm2, %v2908_v27, %v3960_v61 }
 0x6e8   : > { %v3963_v41 = vpop.permute.xlu1 %3962 }
 0x6e9   : > { %v3965_v30 = vunpack.i.h.bf16 %v3963_v41  ;;  %v3964_v4 = vunpack.i.l.bf16 %v3963_v41 }
 0x6eb   : > { %v2910_v17 = vsel %vm1610_vm0, %v5588_v49, %v3965_v30  ;;  %v2909_v42 = vsel %vm1610_vm0, %v5586_v51, %v3964_v4  ;;  %v3386_v49 = vld [vmem:[%s5740_s22] ss:$0 sm:$0xff] }
 0x6f4   : > { %v3968_v39 = vpop.permute.xlu1 %3967 }
 0x6f5   : > { %v3970_v12 = vunpack.i.h.bf16 %v3968_v39  ;;  %v3969_v28 = vunpack.i.l.bf16 %v3968_v39 }
 0x6f7   : > { %v3973_v8 = vpop.permute.xlu0 %3972  ;;  %v2915_v18 = vsel %vm2911_vm2, %v2910_v17, %v3970_v12  ;;  %v2914_v23 = vsel %vm2911_vm2, %v2909_v42, %v3969_v28 }
 0x6f8   : > { %v3975_v43 = vunpack.i.h.bf16 %v3973_v8  ;;  %v3974_v59 = vunpack.i.l.bf16 %v3973_v8 }
 0x6fa   : > { %v2917_v62 = vsel %vm2916_vm3, %v2912_v25, %v3974_v59  ;;  %v2918_v0 = vsel %vm2916_vm3, %v2913_v3, %v3975_v43 }
 0x6fb   : > { %v2921_v16 = vpack.c.bf16 %v2918_v0, %v2917_v62 }
 0x6fd   : > { %3799 = vmatprep.mubr.bf16.mxu0 %v2921_v16 }
 0x704   : > { %v3978_v57 = vpop.permute.xlu1 %3977 }
 0x705   : > { %v3980_v32 = vunpack.i.h.bf16 %v3978_v57  ;;  %v3979_v13 = vunpack.i.l.bf16 %v3978_v57 }
 0x707   : > { %v2920_v48 = vsel %vm2916_vm3, %v2915_v18, %v3980_v32  ;;  %v2919_v58 = vsel %vm2916_vm3, %v2914_v23, %v3979_v13 }
 0x708   : > { %v2922_v6 = vpack.c.bf16 %v2920_v48, %v2919_v58 }
 0x70a   : > { %3800 = vmatmul.mubr.bf16.vlgmr.msra.gmra.mrb[40].mxu0 %v2922_v6 }
 0x7dd   : > { %v3801_v14 = vpop.f32.mrb[40].mxu0 }
 0x7de   : > { %v3038_v51 = vmul.f32 0.5, %v3801_v14  ;;  %v3021_v60 = vpop.f32.mrb[41].mxu0 }
 0x7df   : > { %v3036_v52 = vmul.f32 0.5, %v3021_v60  ;;  %v3802_v20 = vpop.f32.mrb[42].mxu0 }
 0x7e0   : > { %v3049_v35 = vadd.f32 %v3386_v49, %v3038_v51  ;;  %v3039_v36 = vmul.f32 0.5, %v3802_v20  ;;  %v3024_v10 = vpop.f32.mrb[43].mxu0 }
 0x7e1   : > { %v3047_v53 = vadd.f32 %v3386_v49, %v3036_v52  ;;  %v3037_v45 = vmul.f32 0.5, %v3024_v10 }
 0x7e2   : > { %v3050_v56 = vadd.f32 %v3386_v49, %v3039_v36  ;;  %v3061_v38 = vadd.f32 %v3458_v5, %v3049_v35 }
 0x7e3   : > { %v3048_v1 = vadd.f32 %v3386_v49, %v3037_v45  ;;  %v3059_v44 = vadd.f32 %v3454_v24, %v3047_v53 }
 0x7e4   : > { %v3062_v37 = vadd.f32 %v3459_v31, %v3050_v56 }
 0x7e5   : > { %v3060_v46 = vadd.f32 %v3455_v33, %v3048_v1 }
 0x7e6   : > { %v3468_v7 = vpack.c.bf16 %v3062_v37, %v3061_v38 }
 0x7e7   : > { %v3463_v19 = vpack.c.bf16 %v3060_v46, %v3059_v44 }
 0x7e8   : > { %3480 = vst [vmem:[%s656_s26 + $0x8] sm:$0xff] %v3468_v7  }
 0x7e9   : > { %3464 = vst [vmem:[%s656_s26] sm:$0xff] %v3463_v19  }
 0x7ea   : > { %4286 = shalt.err (!%p4283_p7)
}
 0x7eb   : > { %s4287_s25 = scalar_lea.hbm %s5624_s12, 256  ;;  %s4291_s30 = scalar_lea.hbm %s5742_s28, 1024 }
 0x7ec   : > { %p4288_p8 = scmp.ne.s32.totalorder %s5624_s12, %s4287_s25  ;;  %p4292_p2 = scmp.lt.u32.totalorder %s5624_s12, %s5742_s28 }
 0x7ed   : > { %p4293_p4 = scmp.lt.u32.totalorder %s4291_s30, %s4287_s25  ;;  %p4295_p10 = scmp.lt.u32.totalorder %s4287_s25, %s5624_s12 }
 0x7ee   : > { %p4289_p13 = pnand %p4288_p8, %p5743_p11 }
 0x7ef   : > { %p4294_p5 = por %p4293_p4, %p4292_p2 }
 0x7f0   : > { %p4290_p9 = pneg %p4289_p13 }
 0x7f1   : > { %p4296_p12 = por %p4295_p10, %p4294_p5 }
 0x7f3   : > { %p4297_p0 = pnand %p4296_p12, %p4290_p9 }
 0x7f5   : > { %4300 = shalt.err (!%p4297_p0)
}
 0x7f6   : > { %s4404_s26 = smov 4  }
 0x7f7   : > { %3847 = dma.vmem_to_hbm [thread:$0]  (%p5743_p11), %s5626_s13, 256, %s5624_s12, %s3084_s7, %s4399_s21, %s4399_s21, %s4404_s26  }
 0x7f8 PF: > { %s5744_s27 = sld [smem:[#allocation23_spill]]  ;;  %s5745_s11 = sld [smem:[#allocation29_spill]] }
 0x7f9   : > { %p3864_p1 = scmp.ge.s32.totalorder %s4379_s20, 2 }
 0x7fe   : > { %s3114_s16 = sand.u32 1, %s5744_s27   ;;  %p5746_p6 = scmp.ne.s32.totalorder %s5745_s11, 0 }
 0x7ff   : > { %s3115_s9 = scalar_lea.sflag [#allocation5], %s3114_s16 }
 0x800   : > { %p3857_p3 = pnand %p3864_p1, %p5746_p6 }
 0x802   : > { %4346 = dma.done.wait (!%p3857_p3), %s3115_s9, 256  }
 0x803   : > { %4348 = vsyncadd (!%p3857_p3), %s3115_s9, 4294967040  ;;  %s30_s20 = sadd.s32 1, %s4379_s20   ;;  %s5747_s24 = sld [smem:[#allocation30_spill]] }
 0x804   : > { %p27_p7 = scmp.ge.s32.totalorder %s30_s20, 6   ;;  %s5748_s21 = sld [smem:[#allocation26_spill]] }
 0x805   : > { %s5749_s23 = sld [smem:[#allocation27_spill]]  ;;  %s5750_s13 = smov %s4355_s14 }
 0x806   : > { %s5751_s14 = smov %s4359_s15  ;;  %s5753_s16 = smov %s4371_s18 }
 0x807   : > { %s5754_s17 = smov %s4375_s19  ;;  %29 = sbr.rel (!%p27_p7) target bundleno = 17 (0x11), region = 204 }
 0x809   : > { %s5752_s15 = smov %s5747_s24 }
 0x80a   : > { %s5755_s18 = smov %s5748_s21 }
 0x80b   : > { %s5756_s19 = smov %s5749_s23 }
 0x80e   :  { %3120 = vsyncpa [#allocation4], 1 }
 0x80f   :  { %3122 = vsyncpa [#allocation4 + $0x1], 1 }
 0x810   :  { %3123 = vsyncpa [#allocation7], 1 }
 0x811   :  { %3125 = vsyncpa [#allocation7 + $0x1], 1 }
 0x812   :  { %3126 = vsyncpa [#allocation10], 1 }
 0x813   :  { %3127 = vsyncpa [#allocation5], 1 }
 0x814   :  { %3129 = vsyncpa [#allocation5 + $0x1], 1 }

</bundles_post_ra>
